<compile_context>
chip_gen: v7x
topology: tpu7x:2x2x1
jax: 0.10.0
libtpu: 0.0.40
codegen_flags: <defaults>
</compile_context>

<pallas_src>
import jax
import jax.numpy as jnp
from jax.experimental import pallas as pl
from jax.experimental.pallas import tpu as pltpu


def _round_up(x, m):
    return (x + m - 1) // m * m


# ----------------------------------------------------------------------------
# Fused conv3x3 (valid) + bias + 2x2 max-pool kernel
# ----------------------------------------------------------------------------
def conv3x3_maxpool2(x_nhwc, w_k, bias, out_dtype=None):
    """x_nhwc: [B,H,W,C_in]; w_k: [9,C_in,C_out]; bias: [1,C_out] (f32).

    Returns the pooled conv output, NHWC-flattened per image: [B, PH*PW, C_out].
    """
    B, H, W, C_in = x_nhwc.shape
    KK, C_in2, C_out = w_k.shape
    assert KK == 9 and C_in2 == C_in, (w_k.shape, C_in)
    KH = KW = 3
    OH, OW = H - KH + 1, W - KW + 1
    assert OH % 2 == 0 and OW % 2 == 0, "MaxPool2d(2) needs even conv output"
    PH, PW = OH // 2, OW // 2
    out_dtype = out_dtype or x_nhwc.dtype

    def kernel(x_ref, w_ref, b_ref, o_ref, row_ref):
        bias_v = b_ref[...].astype(jnp.float32)              # [1, C_out] (hoisted)
        for pi in range(PH):                                 # static unroll (PH=6)
            # x rows feeding conv rows 2*pi and 2*pi+1
            x_rows = [x_ref[0, 2 * pi + t] for t in range(KH + 1)]   # each [W, C_in]
            conv_rows = []
            for r in range(2):                               # the two rows of the pool window
                acc = jnp.zeros((OW, C_out), jnp.float32)
                for di in range(KH):
                    xrow = x_rows[r + di]
                    for dj in range(KW):
                        acc += jnp.dot(
                            xrow[dj:dj + OW, :], w_ref[di * KW + dj],
                            preferred_element_type=jnp.float32)
                conv_rows.append(acc)
            # vertical (H) max of the 2x2 pool window
            row_ref[...] = jnp.maximum(conv_rows[0], conv_rows[1])   # [OW, C_out]
            # horizontal (W) max via strided reads of the VMEM row buffer
            even = row_ref[pl.ds(0, PW, stride=2), :]                # cols 0,2,...
            odd = row_ref[pl.ds(1, PW, stride=2), :]                 # cols 1,3,...
            # bias after max is equivalent (bias is constant per channel)
            pooled = jnp.maximum(even, odd) + bias_v                 # [PW, C_out]
            o_ref[0, pl.ds(pi * PW, PW), :] = pooled.astype(o_ref.dtype)

    return pl.pallas_call(
        kernel,
        out_shape=jax.ShapeDtypeStruct((B, PH * PW, C_out), out_dtype),
        grid=(B,),
        in_specs=[
            pl.BlockSpec((1, H, W, C_in), lambda b: (b, 0, 0, 0)),
            pl.BlockSpec((KK, C_in, C_out), lambda b: (0, 0, 0)),   # resident weights
            pl.BlockSpec((1, C_out), lambda b: (0, 0)),             # resident bias
        ],
        out_specs=pl.BlockSpec((1, PH * PW, C_out), lambda b: (b, 0, 0)),
        scratch_shapes=[pltpu.VMEM((OW, C_out), jnp.float32)],
        compiler_params=pltpu.CompilerParams(dimension_semantics=("parallel",)),
    )(x_nhwc, w_k, bias)


# ----------------------------------------------------------------------------
# Tiled matmul + bias kernel (f32 accumulator, bias folded into k==0 init)
# ----------------------------------------------------------------------------
def _matmul_bias_kernel(a_ref, w_ref, b_ref, o_ref, acc_ref):
    @pl.when(pl.program_id(2) == 0)
    def _init():
        acc_ref[...] = jnp.broadcast_to(
            b_ref[...].astype(jnp.float32), acc_ref.shape)

    acc_ref[...] += jnp.dot(a_ref[...], w_ref[...],
                            preferred_element_type=jnp.float32)

    @pl.when(pl.program_id(2) == pl.num_programs(2) - 1)
    def _store():
        o_ref[...] = acc_ref[...].astype(o_ref.dtype)


def matmul_bias(a, w, b, *, bm=256, bn=1024, bk=512, out_dtype=jnp.float32,
                vmem_limit_bytes=None):
    """y = a @ w + b, tiled over (M, N, K) with an f32 VMEM accumulator.

    Tiles are clamped to the (padded) problem; all dims are zero-padded to tile
    multiples so narrow outputs (e.g. the 10-wide head) become lane-dense.
    For real module sizes, size bn/bk per generation (smaller on v7x 64 MiB
    VMEM, larger on v6e/v5e 128 MiB; raise vmem_limit_bytes) and stream bf16
    weights.
    """
    M, K = a.shape
    K2, N = w.shape
    assert K == K2, (K, K2)
    bm = min(bm, _round_up(M, 8))
    bn = min(bn, _round_up(N, 128))
    bk = min(bk, _round_up(K, 128))
    Mp, Kp, Np = _round_up(M, bm), _round_up(K, bk), _round_up(N, bn)
    a_p = jnp.pad(a, ((0, Mp - M), (0, Kp - K)))
    w_p = jnp.pad(w, ((0, Kp - K), (0, Np - N)))
    b_p = jnp.pad(b.astype(jnp.float32).reshape(1, N), ((0, 0), (0, Np - N)))

    out = pl.pallas_call(
        _matmul_bias_kernel,
        out_shape=jax.ShapeDtypeStruct((Mp, Np), out_dtype),
        grid=(Mp // bm, Np // bn, Kp // bk),
        in_specs=[
            pl.BlockSpec((bm, bk), lambda i, j, k: (i, k)),
            pl.BlockSpec((bk, bn), lambda i, j, k: (k, j)),
            pl.BlockSpec((1, bn), lambda i, j, k: (0, j)),
        ],
        out_specs=pl.BlockSpec((bm, bn), lambda i, j, k: (i, j)),
        scratch_shapes=[pltpu.VMEM((bm, bn), jnp.float32)],
        compiler_params=pltpu.CompilerParams(
            dimension_semantics=("parallel", "parallel", "arbitrary"),
            vmem_limit_bytes=vmem_limit_bytes),
    )(a_p, w_p, b_p)
    return out[:M, :N]


# ----------------------------------------------------------------------------
# Parameter preparation (layout plumbing moved onto the weights, done once)
# ----------------------------------------------------------------------------
def prepare_params(raw, ph, pw, c_out, compute_dtype=jnp.float32):
    conv_w = raw["conv_w"]                                    # [C_out, C_in, 3, 3] OIHW
    c_in = conv_w.shape[1]
    conv_wk = jnp.transpose(conv_w, (2, 3, 1, 0)).reshape(9, c_in, c_out)
    # Permute linear1 rows from PyTorch's NCHW-flatten order to NHWC-flatten
    # order so the pooled activations are flattened without a transpose.
    perm = (jnp.arange(c_out)[None, None, :] * (ph * pw)
            + jnp.arange(ph)[:, None, None] * pw
            + jnp.arange(pw)[None, :, None]).reshape(-1)
    return {
        "conv_wk": conv_wk.astype(compute_dtype),
        "conv_b": raw["conv_b"].astype(jnp.float32).reshape(1, c_out),
        "w1": raw["w1"][perm].astype(compute_dtype),
        "b1": raw["b1"].astype(jnp.float32),
        "w2": raw["w2"].astype(compute_dtype),
        "b2": raw["b2"].astype(jnp.float32),
    }


@jax.jit
def regression_head_forward(x, params):
    """Forward pass of RegressionHead.  x: [B, C_in, H, W] (NCHW), float32."""
    cdt = params["conv_wk"].dtype
    x_nhwc = jnp.transpose(x, (0, 2, 3, 1)).astype(cdt)       # glue: NCHW -> NHWC
    pooled = conv3x3_maxpool2(x_nhwc, params["conv_wk"], params["conv_b"],
                              out_dtype=cdt)                  # [B, PH*PW, C_out]
    flat = pooled.reshape(x.shape[0], -1)                     # NHWC flatten (w1 pre-permuted)
    h = matmul_bias(flat, params["w1"], params["b1"])         # [B, hidden], f32
    out = matmul_bias(h.astype(cdt), params["w2"], params["b2"])
    return out


# ----------------------------------------------------------------------------
# Reference (pure JAX) for verification
# ----------------------------------------------------------------------------
def reference_forward(x, raw):
    y = jax.lax.conv_general_dilated(
        x, raw["conv_w"], window_strides=(1, 1), padding="VALID",
        dimension_numbers=("NCHW", "OIHW", "NCHW"),
        precision=jax.lax.Precision.HIGHEST,
    )
    y = y + raw["conv_b"][None, :, None, None]
    y = jax.lax.reduce_window(
        y, -jnp.inf, jax.lax.max, (1, 1, 2, 2), (1, 1, 2, 2), "VALID")
    flat = y.reshape(y.shape[0], -1)
    h = jnp.dot(flat, raw["w1"], precision=jax.lax.Precision.HIGHEST) + raw["b1"]
    return jnp.dot(h, raw["w2"], precision=jax.lax.Precision.HIGHEST) + raw["b2"]


# ----------------------------------------------------------------------------
# Deterministic parameter init + driver
# ----------------------------------------------------------------------------
def init_params(key, c_in, c_out, flat_dim, hidden, out_dim):
    ks = jax.random.split(key, 6)

    def _init(k, shape, fan_in):
        return jax.random.normal(k, shape, jnp.float32) / jnp.sqrt(fan_in)

    return {
        "conv_w": _init(ks[0], (c_out, c_in, 3, 3), c_in * 9),
        "conv_b": _init(ks[1], (c_out,), c_in * 9),
        "w1": _init(ks[2], (flat_dim, hidden), flat_dim),
        "b1": _init(ks[3], (hidden,), flat_dim),
        "w2": _init(ks[4], (hidden, out_dim), hidden),
        "b2": _init(ks[5], (out_dim,), hidden),
    }


if __name__ == "__main__":
    # Small shapes preserving the module geometry (14 -> 12 -> 6).
    B, C_IN, H, W = 2, 32, 14, 14
    C_OUT, HIDDEN, OUT = 64, 128, 10
    PH = PW = (H - 2) // 2
    FLAT = C_OUT * PH * PW                 # analogue of 18432

    key = jax.random.PRNGKey(0)
    k_x, k_p = jax.random.split(key)
    x = jax.random.normal(k_x, (B, C_IN, H, W), jnp.float32)
    raw = init_params(k_p, C_IN, C_OUT, FLAT, HIDDEN, OUT)
    ref = jax.block_until_ready(reference_forward(x, raw))

    # f32 path: tight check against the pure-JAX reference.
    out = regression_head_forward(x, prepare_params(raw, PH, PW, C_OUT, jnp.float32))
    out = jax.block_until_ready(out)
    assert out.shape == (B, OUT), out.shape
    err = float(jnp.max(jnp.abs(out - ref)))
    if err > 5e-3:
        raise AssertionError(f"f32 mismatch vs reference, max abs err = {err}")

    # bf16 weight/activation streaming (f32 accumulation): looser tolerance.
    out_bf16 = regression_head_forward(
        x, prepare_params(raw, PH, PW, C_OUT, jnp.bfloat16))
    out_bf16 = jax.block_until_ready(out_bf16)
    err_bf16 = float(jnp.max(jnp.abs(out_bf16 - ref)))
    if err_bf16 > 2e-1:
        raise AssertionError(f"bf16 mismatch vs reference, max abs err = {err_bf16}")

    print("KERNEL_OK")
</pallas_src>

<mosaic_0001>
module attributes {stable_mosaic.version = 11 : i64} {
  func.func @kernel(%arg0: i32, %arg1: memref<1x14x14x32xf32, #tpu.memory_space<vmem>>, %arg2: memref<9x32x64xf32, #tpu.memory_space<vmem>>, %arg3: memref<1x64xf32, #tpu.memory_space<vmem>>, %arg4: memref<1x36x64xf32, #tpu.memory_space<vmem>>, %arg5: memref<12x64xf32, #tpu.memory_space<vmem>>) attributes {dimension_semantics = [#tpu.dimension_semantics<parallel>], iteration_bounds = array<i64: 2>, scalar_prefetch = 0 : i64, scratch_operands = 1 : i64, tpu.core_type = #tpu.core_type<tc>, window_params = [{transform_indices = @transform_0, window_bounds = array<i64: 1, 14, 14, 32>}, {pipeline_mode = #tpu.pipeline_mode<synchronous>, transform_indices = @transform_1, window_bounds = array<i64: 9, 32, 64>}, {pipeline_mode = #tpu.pipeline_mode<synchronous>, transform_indices = @transform_2, window_bounds = array<i64: 1, 64>}, {transform_indices = @transform_3, window_bounds = array<i64: 1, 36, 64>}]} {
    %c0 = arith.constant 0 : index
    %c0_0 = arith.constant 0 : index
    %0 = vector.load %arg3[%c0, %c0_0] : memref<1x64xf32, #tpu.memory_space<vmem>>, vector<1x64xf32>
    %c0_1 = arith.constant 0 : index
    %c0_2 = arith.constant 0 : index
    %c0_3 = arith.constant 0 : index
    %c0_4 = arith.constant 0 : index
    %1 = vector.load %arg1[%c0_1, %c0_2, %c0_3, %c0_4] : memref<1x14x14x32xf32, #tpu.memory_space<vmem>>, vector<1x1x14x32xf32>
    %2 = vector.shape_cast %1 : vector<1x1x14x32xf32> to vector<14x32xf32>
    %c0_5 = arith.constant 0 : index
    %c1 = arith.constant 1 : index
    %c0_6 = arith.constant 0 : index
    %c0_7 = arith.constant 0 : index
    %3 = vector.load %arg1[%c0_5, %c1, %c0_6, %c0_7] : memref<1x14x14x32xf32, #tpu.memory_space<vmem>>, vector<1x1x14x32xf32>
    %4 = vector.shape_cast %3 : vector<1x1x14x32xf32> to vector<14x32xf32>
    %c0_8 = arith.constant 0 : index
    %c2 = arith.constant 2 : index
    %c0_9 = arith.constant 0 : index
    %c0_10 = arith.constant 0 : index
    %5 = vector.load %arg1[%c0_8, %c2, %c0_9, %c0_10] : memref<1x14x14x32xf32, #tpu.memory_space<vmem>>, vector<1x1x14x32xf32>
    %6 = vector.shape_cast %5 : vector<1x1x14x32xf32> to vector<14x32xf32>
    %c0_11 = arith.constant 0 : index
    %c3 = arith.constant 3 : index
    %c0_12 = arith.constant 0 : index
    %c0_13 = arith.constant 0 : index
    %7 = vector.load %arg1[%c0_11, %c3, %c0_12, %c0_13] : memref<1x14x14x32xf32, #tpu.memory_space<vmem>>, vector<1x1x14x32xf32>
    %8 = vector.shape_cast %7 : vector<1x1x14x32xf32> to vector<14x32xf32>
    %cst = arith.constant 0.000000e+00 : f32
    %9 = vector.broadcast %cst : f32 to vector<12x64xf32>
    %10 = vector.extract_strided_slice %2 {offsets = [0, 0], sizes = [12, 32], strides = [1, 1]} : vector<14x32xf32> to vector<12x32xf32>
    %c0_14 = arith.constant 0 : index
    %c0_15 = arith.constant 0 : index
    %c0_16 = arith.constant 0 : index
    %11 = vector.load %arg2[%c0_14, %c0_15, %c0_16] : memref<9x32x64xf32, #tpu.memory_space<vmem>>, vector<1x32x64xf32>
    %12 = vector.shape_cast %11 : vector<1x32x64xf32> to vector<32x64xf32>
    %cst_17 = arith.constant dense<0.000000e+00> : vector<12x64xf32>
    %13 = tpu.matmul %10, %12, %cst_17 {dimension_numbers = #tpu.dot_dimension_numbers<[1], [0], [0], [1], [0, 0, 1, 1], [], []>} : vector<12x32xf32>, vector<32x64xf32>, vector<12x64xf32> -> vector<12x64xf32>
    %14 = arith.addf %9, %13 : vector<12x64xf32>
    %15 = vector.extract_strided_slice %2 {offsets = [1, 0], sizes = [12, 32], strides = [1, 1]} : vector<14x32xf32> to vector<12x32xf32>
    %c1_18 = arith.constant 1 : index
    %c0_19 = arith.constant 0 : index
    %c0_20 = arith.constant 0 : index
    %16 = vector.load %arg2[%c1_18, %c0_19, %c0_20] : memref<9x32x64xf32, #tpu.memory_space<vmem>>, vector<1x32x64xf32>
    %17 = vector.shape_cast %16 : vector<1x32x64xf32> to vector<32x64xf32>
    %cst_21 = arith.constant dense<0.000000e+00> : vector<12x64xf32>
    %18 = tpu.matmul %15, %17, %cst_21 {dimension_numbers = #tpu.dot_dimension_numbers<[1], [0], [0], [1], [0, 0, 1, 1], [], []>} : vector<12x32xf32>, vector<32x64xf32>, vector<12x64xf32> -> vector<12x64xf32>
    %19 = arith.addf %14, %18 : vector<12x64xf32>
    %20 = vector.extract_strided_slice %2 {offsets = [2, 0], sizes = [12, 32], strides = [1, 1]} : vector<14x32xf32> to vector<12x32xf32>
    %c2_22 = arith.constant 2 : index
    %c0_23 = arith.constant 0 : index
    %c0_24 = arith.constant 0 : index
    %21 = vector.load %arg2[%c2_22, %c0_23, %c0_24] : memref<9x32x64xf32, #tpu.memory_space<vmem>>, vector<1x32x64xf32>
    %22 = vector.shape_cast %21 : vector<1x32x64xf32> to vector<32x64xf32>
    %cst_25 = arith.constant dense<0.000000e+00> : vector<12x64xf32>
    %23 = tpu.matmul %20, %22, %cst_25 {dimension_numbers = #tpu.dot_dimension_numbers<[1], [0], [0], [1], [0, 0, 1, 1], [], []>} : vector<12x32xf32>, vector<32x64xf32>, vector<12x64xf32> -> vector<12x64xf32>
    %24 = arith.addf %19, %23 : vector<12x64xf32>
    %25 = vector.extract_strided_slice %4 {offsets = [0, 0], sizes = [12, 32], strides = [1, 1]} : vector<14x32xf32> to vector<12x32xf32>
    %c3_26 = arith.constant 3 : index
    %c0_27 = arith.constant 0 : index
    %c0_28 = arith.constant 0 : index
    %26 = vector.load %arg2[%c3_26, %c0_27, %c0_28] : memref<9x32x64xf32, #tpu.memory_space<vmem>>, vector<1x32x64xf32>
    %27 = vector.shape_cast %26 : vector<1x32x64xf32> to vector<32x64xf32>
    %cst_29 = arith.constant dense<0.000000e+00> : vector<12x64xf32>
    %28 = tpu.matmul %25, %27, %cst_29 {dimension_numbers = #tpu.dot_dimension_numbers<[1], [0], [0], [1], [0, 0, 1, 1], [], []>} : vector<12x32xf32>, vector<32x64xf32>, vector<12x64xf32> -> vector<12x64xf32>
    %29 = arith.addf %24, %28 : vector<12x64xf32>
    %30 = vector.extract_strided_slice %4 {offsets = [1, 0], sizes = [12, 32], strides = [1, 1]} : vector<14x32xf32> to vector<12x32xf32>
    %c4 = arith.constant 4 : index
    %c0_30 = arith.constant 0 : index
    %c0_31 = arith.constant 0 : index
    %31 = vector.load %arg2[%c4, %c0_30, %c0_31] : memref<9x32x64xf32, #tpu.memory_space<vmem>>, vector<1x32x64xf32>
    %32 = vector.shape_cast %31 : vector<1x32x64xf32> to vector<32x64xf32>
    %cst_32 = arith.constant dense<0.000000e+00> : vector<12x64xf32>
    %33 = tpu.matmul %30, %32, %cst_32 {dimension_numbers = #tpu.dot_dimension_numbers<[1], [0], [0], [1], [0, 0, 1, 1], [], []>} : vector<12x32xf32>, vector<32x64xf32>, vector<12x64xf32> -> vector<12x64xf32>
    %34 = arith.addf %29, %33 : vector<12x64xf32>
    %35 = vector.extract_strided_slice %4 {offsets = [2, 0], sizes = [12, 32], strides = [1, 1]} : vector<14x32xf32> to vector<12x32xf32>
    %c5 = arith.constant 5 : index
    %c0_33 = arith.constant 0 : index
    %c0_34 = arith.constant 0 : index
    %36 = vector.load %arg2[%c5, %c0_33, %c0_34] : memref<9x32x64xf32, #tpu.memory_space<vmem>>, vector<1x32x64xf32>
    %37 = vector.shape_cast %36 : vector<1x32x64xf32> to vector<32x64xf32>
    %cst_35 = arith.constant dense<0.000000e+00> : vector<12x64xf32>
    %38 = tpu.matmul %35, %37, %cst_35 {dimension_numbers = #tpu.dot_dimension_numbers<[1], [0], [0], [1], [0, 0, 1, 1], [], []>} : vector<12x32xf32>, vector<32x64xf32>, vector<12x64xf32> -> vector<12x64xf32>
    %39 = arith.addf %34, %38 : vector<12x64xf32>
    %40 = vector.extract_strided_slice %6 {offsets = [0, 0], sizes = [12, 32], strides = [1, 1]} : vector<14x32xf32> to vector<12x32xf32>
    %c6 = arith.constant 6 : index
    %c0_36 = arith.constant 0 : index
    %c0_37 = arith.constant 0 : index
    %41 = vector.load %arg2[%c6, %c0_36, %c0_37] : memref<9x32x64xf32, #tpu.memory_space<vmem>>, vector<1x32x64xf32>
    %42 = vector.shape_cast %41 : vector<1x32x64xf32> to vector<32x64xf32>
    %cst_38 = arith.constant dense<0.000000e+00> : vector<12x64xf32>
    %43 = tpu.matmul %40, %42, %cst_38 {dimension_numbers = #tpu.dot_dimension_numbers<[1], [0], [0], [1], [0, 0, 1, 1], [], []>} : vector<12x32xf32>, vector<32x64xf32>, vector<12x64xf32> -> vector<12x64xf32>
    %44 = arith.addf %39, %43 : vector<12x64xf32>
    %45 = vector.extract_strided_slice %6 {offsets = [1, 0], sizes = [12, 32], strides = [1, 1]} : vector<14x32xf32> to vector<12x32xf32>
    %c7 = arith.constant 7 : index
    %c0_39 = arith.constant 0 : index
    %c0_40 = arith.constant 0 : index
    %46 = vector.load %arg2[%c7, %c0_39, %c0_40] : memref<9x32x64xf32, #tpu.memory_space<vmem>>, vector<1x32x64xf32>
    %47 = vector.shape_cast %46 : vector<1x32x64xf32> to vector<32x64xf32>
    %cst_41 = arith.constant dense<0.000000e+00> : vector<12x64xf32>
    %48 = tpu.matmul %45, %47, %cst_41 {dimension_numbers = #tpu.dot_dimension_numbers<[1], [0], [0], [1], [0, 0, 1, 1], [], []>} : vector<12x32xf32>, vector<32x64xf32>, vector<12x64xf32> -> vector<12x64xf32>
    %49 = arith.addf %44, %48 : vector<12x64xf32>
    %50 = vector.extract_strided_slice %6 {offsets = [2, 0], sizes = [12, 32], strides = [1, 1]} : vector<14x32xf32> to vector<12x32xf32>
    %c8 = arith.constant 8 : index
    %c0_42 = arith.constant 0 : index
    %c0_43 = arith.constant 0 : index
    %51 = vector.load %arg2[%c8, %c0_42, %c0_43] : memref<9x32x64xf32, #tpu.memory_space<vmem>>, vector<1x32x64xf32>
    %52 = vector.shape_cast %51 : vector<1x32x64xf32> to vector<32x64xf32>
    %cst_44 = arith.constant dense<0.000000e+00> : vector<12x64xf32>
    %53 = tpu.matmul %50, %52, %cst_44 {dimension_numbers = #tpu.dot_dimension_numbers<[1], [0], [0], [1], [0, 0, 1, 1], [], []>} : vector<12x32xf32>, vector<32x64xf32>, vector<12x64xf32> -> vector<12x64xf32>
    %54 = arith.addf %49, %53 : vector<12x64xf32>
    %cst_45 = arith.constant 0.000000e+00 : f32
    %55 = vector.broadcast %cst_45 : f32 to vector<12x64xf32>
    %56 = vector.extract_strided_slice %4 {offsets = [0, 0], sizes = [12, 32], strides = [1, 1]} : vector<14x32xf32> to vector<12x32xf32>
    %c0_46 = arith.constant 0 : index
    %c0_47 = arith.constant 0 : index
    %c0_48 = arith.constant 0 : index
    %57 = vector.load %arg2[%c0_46, %c0_47, %c0_48] : memref<9x32x64xf32, #tpu.memory_space<vmem>>, vector<1x32x64xf32>
    %58 = vector.shape_cast %57 : vector<1x32x64xf32> to vector<32x64xf32>
    %cst_49 = arith.constant dense<0.000000e+00> : vector<12x64xf32>
    %59 = tpu.matmul %56, %58, %cst_49 {dimension_numbers = #tpu.dot_dimension_numbers<[1], [0], [0], [1], [0, 0, 1, 1], [], []>} : vector<12x32xf32>, vector<32x64xf32>, vector<12x64xf32> -> vector<12x64xf32>
    %60 = arith.addf %55, %59 : vector<12x64xf32>
    %61 = vector.extract_strided_slice %4 {offsets = [1, 0], sizes = [12, 32], strides = [1, 1]} : vector<14x32xf32> to vector<12x32xf32>
    %c1_50 = arith.constant 1 : index
    %c0_51 = arith.constant 0 : index
    %c0_52 = arith.constant 0 : index
    %62 = vector.load %arg2[%c1_50, %c0_51, %c0_52] : memref<9x32x64xf32, #tpu.memory_space<vmem>>, vector<1x32x64xf32>
    %63 = vector.shape_cast %62 : vector<1x32x64xf32> to vector<32x64xf32>
    %cst_53 = arith.constant dense<0.000000e+00> : vector<12x64xf32>
    %64 = tpu.matmul %61, %63, %cst_53 {dimension_numbers = #tpu.dot_dimension_numbers<[1], [0], [0], [1], [0, 0, 1, 1], [], []>} : vector<12x32xf32>, vector<32x64xf32>, vector<12x64xf32> -> vector<12x64xf32>
    %65 = arith.addf %60, %64 : vector<12x64xf32>
    %66 = vector.extract_strided_slice %4 {offsets = [2, 0], sizes = [12, 32], strides = [1, 1]} : vector<14x32xf32> to vector<12x32xf32>
    %c2_54 = arith.constant 2 : index
    %c0_55 = arith.constant 0 : index
    %c0_56 = arith.constant 0 : index
    %67 = vector.load %arg2[%c2_54, %c0_55, %c0_56] : memref<9x32x64xf32, #tpu.memory_space<vmem>>, vector<1x32x64xf32>
    %68 = vector.shape_cast %67 : vector<1x32x64xf32> to vector<32x64xf32>
    %cst_57 = arith.constant dense<0.000000e+00> : vector<12x64xf32>
    %69 = tpu.matmul %66, %68, %cst_57 {dimension_numbers = #tpu.dot_dimension_numbers<[1], [0], [0], [1], [0, 0, 1, 1], [], []>} : vector<12x32xf32>, vector<32x64xf32>, vector<12x64xf32> -> vector<12x64xf32>
    %70 = arith.addf %65, %69 : vector<12x64xf32>
    %71 = vector.extract_strided_slice %6 {offsets = [0, 0], sizes = [12, 32], strides = [1, 1]} : vector<14x32xf32> to vector<12x32xf32>
    %c3_58 = arith.constant 3 : index
    %c0_59 = arith.constant 0 : index
    %c0_60 = arith.constant 0 : index
    %72 = vector.load %arg2[%c3_58, %c0_59, %c0_60] : memref<9x32x64xf32, #tpu.memory_space<vmem>>, vector<1x32x64xf32>
    %73 = vector.shape_cast %72 : vector<1x32x64xf32> to vector<32x64xf32>
    %cst_61 = arith.constant dense<0.000000e+00> : vector<12x64xf32>
    %74 = tpu.matmul %71, %73, %cst_61 {dimension_numbers = #tpu.dot_dimension_numbers<[1], [0], [0], [1], [0, 0, 1, 1], [], []>} : vector<12x32xf32>, vector<32x64xf32>, vector<12x64xf32> -> vector<12x64xf32>
    %75 = arith.addf %70, %74 : vector<12x64xf32>
    %76 = vector.extract_strided_slice %6 {offsets = [1, 0], sizes = [12, 32], strides = [1, 1]} : vector<14x32xf32> to vector<12x32xf32>
    %c4_62 = arith.constant 4 : index
    %c0_63 = arith.constant 0 : index
    %c0_64 = arith.constant 0 : index
    %77 = vector.load %arg2[%c4_62, %c0_63, %c0_64] : memref<9x32x64xf32, #tpu.memory_space<vmem>>, vector<1x32x64xf32>
    %78 = vector.shape_cast %77 : vector<1x32x64xf32> to vector<32x64xf32>
    %cst_65 = arith.constant dense<0.000000e+00> : vector<12x64xf32>
    %79 = tpu.matmul %76, %78, %cst_65 {dimension_numbers = #tpu.dot_dimension_numbers<[1], [0], [0], [1], [0, 0, 1, 1], [], []>} : vector<12x32xf32>, vector<32x64xf32>, vector<12x64xf32> -> vector<12x64xf32>
    %80 = arith.addf %75, %79 : vector<12x64xf32>
    %81 = vector.extract_strided_slice %6 {offsets = [2, 0], sizes = [12, 32], strides = [1, 1]} : vector<14x32xf32> to vector<12x32xf32>
    %c5_66 = arith.constant 5 : index
    %c0_67 = arith.constant 0 : index
    %c0_68 = arith.constant 0 : index
    %82 = vector.load %arg2[%c5_66, %c0_67, %c0_68] : memref<9x32x64xf32, #tpu.memory_space<vmem>>, vector<1x32x64xf32>
    %83 = vector.shape_cast %82 : vector<1x32x64xf32> to vector<32x64xf32>
    %cst_69 = arith.constant dense<0.000000e+00> : vector<12x64xf32>
    %84 = tpu.matmul %81, %83, %cst_69 {dimension_numbers = #tpu.dot_dimension_numbers<[1], [0], [0], [1], [0, 0, 1, 1], [], []>} : vector<12x32xf32>, vector<32x64xf32>, vector<12x64xf32> -> vector<12x64xf32>
    %85 = arith.addf %80, %84 : vector<12x64xf32>
    %86 = vector.extract_strided_slice %8 {offsets = [0, 0], sizes = [12, 32], strides = [1, 1]} : vector<14x32xf32> to vector<12x32xf32>
    %c6_70 = arith.constant 6 : index
    %c0_71 = arith.constant 0 : index
    %c0_72 = arith.constant 0 : index
    %87 = vector.load %arg2[%c6_70, %c0_71, %c0_72] : memref<9x32x64xf32, #tpu.memory_space<vmem>>, vector<1x32x64xf32>
    %88 = vector.shape_cast %87 : vector<1x32x64xf32> to vector<32x64xf32>
    %cst_73 = arith.constant dense<0.000000e+00> : vector<12x64xf32>
    %89 = tpu.matmul %86, %88, %cst_73 {dimension_numbers = #tpu.dot_dimension_numbers<[1], [0], [0], [1], [0, 0, 1, 1], [], []>} : vector<12x32xf32>, vector<32x64xf32>, vector<12x64xf32> -> vector<12x64xf32>
    %90 = arith.addf %85, %89 : vector<12x64xf32>
    %91 = vector.extract_strided_slice %8 {offsets = [1, 0], sizes = [12, 32], strides = [1, 1]} : vector<14x32xf32> to vector<12x32xf32>
    %c7_74 = arith.constant 7 : index
    %c0_75 = arith.constant 0 : index
    %c0_76 = arith.constant 0 : index
    %92 = vector.load %arg2[%c7_74, %c0_75, %c0_76] : memref<9x32x64xf32, #tpu.memory_space<vmem>>, vector<1x32x64xf32>
    %93 = vector.shape_cast %92 : vector<1x32x64xf32> to vector<32x64xf32>
    %cst_77 = arith.constant dense<0.000000e+00> : vector<12x64xf32>
    %94 = tpu.matmul %91, %93, %cst_77 {dimension_numbers = #tpu.dot_dimension_numbers<[1], [0], [0], [1], [0, 0, 1, 1], [], []>} : vector<12x32xf32>, vector<32x64xf32>, vector<12x64xf32> -> vector<12x64xf32>
    %95 = arith.addf %90, %94 : vector<12x64xf32>
    %96 = vector.extract_strided_slice %8 {offsets = [2, 0], sizes = [12, 32], strides = [1, 1]} : vector<14x32xf32> to vector<12x32xf32>
    %c8_78 = arith.constant 8 : index
    %c0_79 = arith.constant 0 : index
    %c0_80 = arith.constant 0 : index
    %97 = vector.load %arg2[%c8_78, %c0_79, %c0_80] : memref<9x32x64xf32, #tpu.memory_space<vmem>>, vector<1x32x64xf32>
    %98 = vector.shape_cast %97 : vector<1x32x64xf32> to vector<32x64xf32>
    %cst_81 = arith.constant dense<0.000000e+00> : vector<12x64xf32>
    %99 = tpu.matmul %96, %98, %cst_81 {dimension_numbers = #tpu.dot_dimension_numbers<[1], [0], [0], [1], [0, 0, 1, 1], [], []>} : vector<12x32xf32>, vector<32x64xf32>, vector<12x64xf32> -> vector<12x64xf32>
    %100 = arith.addf %95, %99 : vector<12x64xf32>
    %101 = arith.maximumf %54, %100 : vector<12x64xf32>
    %c0_82 = arith.constant 0 : index
    %c0_83 = arith.constant 0 : index
    %102 = vector.load %arg5[%c0_82, %c0_83] : memref<12x64xf32, #tpu.memory_space<vmem>>, vector<12x64xf32>
    tpu.vector_store %arg5[%c0_82, %c0_83], %101 {strides = array<i32>} : memref<12x64xf32, #tpu.memory_space<vmem>>, vector<12x64xf32>,
    %c0_84 = arith.constant 0 : index
    %c0_85 = arith.constant 0 : index
    %103 = tpu.strided_load %arg5[%c0_84, %c0_85] {strides = array<i32: 2, 1>} : memref<12x64xf32, #tpu.memory_space<vmem>>, vector<6x64xf32>
    %c1_86 = arith.constant 1 : index
    %c0_87 = arith.constant 0 : index
    %104 = tpu.strided_load %arg5[%c1_86, %c0_87] {strides = array<i32: 2, 1>} : memref<12x64xf32, #tpu.memory_space<vmem>>, vector<6x64xf32>
    %105 = arith.maximumf %103, %104 : vector<6x64xf32>
    %106 = vector.broadcast %0 : vector<1x64xf32> to vector<6x64xf32>
    %107 = arith.addf %105, %106 : vector<6x64xf32>
    %c0_88 = arith.constant 0 : index
    %c0_89 = arith.constant 0 : index
    %c0_90 = arith.constant 0 : index
    %108 = vector.load %arg4[%c0_88, %c0_89, %c0_90] : memref<1x36x64xf32, #tpu.memory_space<vmem>>, vector<1x6x64xf32>
    %109 = vector.shape_cast %108 : vector<1x6x64xf32> to vector<6x64xf32>
    %110 = vector.shape_cast %107 : vector<6x64xf32> to vector<1x6x64xf32>
    tpu.vector_store %arg4[%c0_88, %c0_89, %c0_90], %110 {strides = array<i32>} : memref<1x36x64xf32, #tpu.memory_space<vmem>>, vector<1x6x64xf32>,
    %c0_91 = arith.constant 0 : index
    %c2_92 = arith.constant 2 : index
    %c0_93 = arith.constant 0 : index
    %c0_94 = arith.constant 0 : index
    %111 = vector.load %arg1[%c0_91, %c2_92, %c0_93, %c0_94] : memref<1x14x14x32xf32, #tpu.memory_space<vmem>>, vector<1x1x14x32xf32>
    %112 = vector.shape_cast %111 : vector<1x1x14x32xf32> to vector<14x32xf32>
    %c0_95 = arith.constant 0 : index
    %c3_96 = arith.constant 3 : index
    %c0_97 = arith.constant 0 : index
    %c0_98 = arith.constant 0 : index
    %113 = vector.load %arg1[%c0_95, %c3_96, %c0_97, %c0_98] : memref<1x14x14x32xf32, #tpu.memory_space<vmem>>, vector<1x1x14x32xf32>
    %114 = vector.shape_cast %113 : vector<1x1x14x32xf32> to vector<14x32xf32>
    %c0_99 = arith.constant 0 : index
    %c4_100 = arith.constant 4 : index
    %c0_101 = arith.constant 0 : index
    %c0_102 = arith.constant 0 : index
    %115 = vector.load %arg1[%c0_99, %c4_100, %c0_101, %c0_102] : memref<1x14x14x32xf32, #tpu.memory_space<vmem>>, vector<1x1x14x32xf32>
    %116 = vector.shape_cast %115 : vector<1x1x14x32xf32> to vector<14x32xf32>
    %c0_103 = arith.constant 0 : index
    %c5_104 = arith.constant 5 : index
    %c0_105 = arith.constant 0 : index
    %c0_106 = arith.constant 0 : index
    %117 = vector.load %arg1[%c0_103, %c5_104, %c0_105, %c0_106] : memref<1x14x14x32xf32, #tpu.memory_space<vmem>>, vector<1x1x14x32xf32>
    %118 = vector.shape_cast %117 : vector<1x1x14x32xf32> to vector<14x32xf32>
    %cst_107 = arith.constant 0.000000e+00 : f32
    %119 = vector.broadcast %cst_107 : f32 to vector<12x64xf32>
    %120 = vector.extract_strided_slice %112 {offsets = [0, 0], sizes = [12, 32], strides = [1, 1]} : vector<14x32xf32> to vector<12x32xf32>
    %c0_108 = arith.constant 0 : index
    %c0_109 = arith.constant 0 : index
    %c0_110 = arith.constant 0 : index
    %121 = vector.load %arg2[%c0_108, %c0_109, %c0_110] : memref<9x32x64xf32, #tpu.memory_space<vmem>>, vector<1x32x64xf32>
    %122 = vector.shape_cast %121 : vector<1x32x64xf32> to vector<32x64xf32>
    %cst_111 = arith.constant dense<0.000000e+00> : vector<12x64xf32>
    %123 = tpu.matmul %120, %122, %cst_111 {dimension_numbers = #tpu.dot_dimension_numbers<[1], [0], [0], [1], [0, 0, 1, 1], [], []>} : vector<12x32xf32>, vector<32x64xf32>, vector<12x64xf32> -> vector<12x64xf32>
    %124 = arith.addf %119, %123 : vector<12x64xf32>
    %125 = vector.extract_strided_slice %112 {offsets = [1, 0], sizes = [12, 32], strides = [1, 1]} : vector<14x32xf32> to vector<12x32xf32>
    %c1_112 = arith.constant 1 : index
    %c0_113 = arith.constant 0 : index
    %c0_114 = arith.constant 0 : index
    %126 = vector.load %arg2[%c1_112, %c0_113, %c0_114] : memref<9x32x64xf32, #tpu.memory_space<vmem>>, vector<1x32x64xf32>
    %127 = vector.shape_cast %126 : vector<1x32x64xf32> to vector<32x64xf32>
    %cst_115 = arith.constant dense<0.000000e+00> : vector<12x64xf32>
    %128 = tpu.matmul %125, %127, %cst_115 {dimension_numbers = #tpu.dot_dimension_numbers<[1], [0], [0], [1], [0, 0, 1, 1], [], []>} : vector<12x32xf32>, vector<32x64xf32>, vector<12x64xf32> -> vector<12x64xf32>
    %129 = arith.addf %124, %128 : vector<12x64xf32>
    %130 = vector.extract_strided_slice %112 {offsets = [2, 0], sizes = [12, 32], strides = [1, 1]} : vector<14x32xf32> to vector<12x32xf32>
    %c2_116 = arith.constant 2 : index
    %c0_117 = arith.constant 0 : index
    %c0_118 = arith.constant 0 : index
    %131 = vector.load %arg2[%c2_116, %c0_117, %c0_118] : memref<9x32x64xf32, #tpu.memory_space<vmem>>, vector<1x32x64xf32>
    %132 = vector.shape_cast %131 : vector<1x32x64xf32> to vector<32x64xf32>
    %cst_119 = arith.constant dense<0.000000e+00> : vector<12x64xf32>
    %133 = tpu.matmul %130, %132, %cst_119 {dimension_numbers = #tpu.dot_dimension_numbers<[1], [0], [0], [1], [0, 0, 1, 1], [], []>} : vector<12x32xf32>, vector<32x64xf32>, vector<12x64xf32> -> vector<12x64xf32>
    %134 = arith.addf %129, %133 : vector<12x64xf32>
    %135 = vector.extract_strided_slice %114 {offsets = [0, 0], sizes = [12, 32], strides = [1, 1]} : vector<14x32xf32> to vector<12x32xf32>
    %c3_120 = arith.constant 3 : index
    %c0_121 = arith.constant 0 : index
    %c0_122 = arith.constant 0 : index
    %136 = vector.load %arg2[%c3_120, %c0_121, %c0_122] : memref<9x32x64xf32, #tpu.memory_space<vmem>>, vector<1x32x64xf32>
    %137 = vector.shape_cast %136 : vector<1x32x64xf32> to vector<32x64xf32>
    %cst_123 = arith.constant dense<0.000000e+00> : vector<12x64xf32>
    %138 = tpu.matmul %135, %137, %cst_123 {dimension_numbers = #tpu.dot_dimension_numbers<[1], [0], [0], [1], [0, 0, 1, 1], [], []>} : vector<12x32xf32>, vector<32x64xf32>, vector<12x64xf32> -> vector<12x64xf32>
    %139 = arith.addf %134, %138 : vector<12x64xf32>
    %140 = vector.extract_strided_slice %114 {offsets = [1, 0], sizes = [12, 32], strides = [1, 1]} : vector<14x32xf32> to vector<12x32xf32>
    %c4_124 = arith.constant 4 : index
    %c0_125 = arith.constant 0 : index
    %c0_126 = arith.constant 0 : index
    %141 = vector.load %arg2[%c4_124, %c0_125, %c0_126] : memref<9x32x64xf32, #tpu.memory_space<vmem>>, vector<1x32x64xf32>
    %142 = vector.shape_cast %141 : vector<1x32x64xf32> to vector<32x64xf32>
    %cst_127 = arith.constant dense<0.000000e+00> : vector<12x64xf32>
    %143 = tpu.matmul %140, %142, %cst_127 {dimension_numbers = #tpu.dot_dimension_numbers<[1], [0], [0], [1], [0, 0, 1, 1], [], []>} : vector<12x32xf32>, vector<32x64xf32>, vector<12x64xf32> -> vector<12x64xf32>
    %144 = arith.addf %139, %143 : vector<12x64xf32>
    %145 = vector.extract_strided_slice %114 {offsets = [2, 0], sizes = [12, 32], strides = [1, 1]} : vector<14x32xf32> to vector<12x32xf32>
    %c5_128 = arith.constant 5 : index
    %c0_129 = arith.constant 0 : index
    %c0_130 = arith.constant 0 : index
    %146 = vector.load %arg2[%c5_128, %c0_129, %c0_130] : memref<9x32x64xf32, #tpu.memory_space<vmem>>, vector<1x32x64xf32>
    %147 = vector.shape_cast %146 : vector<1x32x64xf32> to vector<32x64xf32>
    %cst_131 = arith.constant dense<0.000000e+00> : vector<12x64xf32>
    %148 = tpu.matmul %145, %147, %cst_131 {dimension_numbers = #tpu.dot_dimension_numbers<[1], [0], [0], [1], [0, 0, 1, 1], [], []>} : vector<12x32xf32>, vector<32x64xf32>, vector<12x64xf32> -> vector<12x64xf32>
    %149 = arith.addf %144, %148 : vector<12x64xf32>
    %150 = vector.extract_strided_slice %116 {offsets = [0, 0], sizes = [12, 32], strides = [1, 1]} : vector<14x32xf32> to vector<12x32xf32>
    %c6_132 = arith.constant 6 : index
    %c0_133 = arith.constant 0 : index
    %c0_134 = arith.constant 0 : index
    %151 = vector.load %arg2[%c6_132, %c0_133, %c0_134] : memref<9x32x64xf32, #tpu.memory_space<vmem>>, vector<1x32x64xf32>
    %152 = vector.shape_cast %151 : vector<1x32x64xf32> to vector<32x64xf32>
    %cst_135 = arith.constant dense<0.000000e+00> : vector<12x64xf32>
    %153 = tpu.matmul %150, %152, %cst_135 {dimension_numbers = #tpu.dot_dimension_numbers<[1], [0], [0], [1], [0, 0, 1, 1], [], []>} : vector<12x32xf32>, vector<32x64xf32>, vector<12x64xf32> -> vector<12x64xf32>
    %154 = arith.addf %149, %153 : vector<12x64xf32>
    %155 = vector.extract_strided_slice %116 {offsets = [1, 0], sizes = [12, 32], strides = [1, 1]} : vector<14x32xf32> to vector<12x32xf32>
    %c7_136 = arith.constant 7 : index
    %c0_137 = arith.constant 0 : index
    %c0_138 = arith.constant 0 : index
    %156 = vector.load %arg2[%c7_136, %c0_137, %c0_138] : memref<9x32x64xf32, #tpu.memory_space<vmem>>, vector<1x32x64xf32>
    %157 = vector.shape_cast %156 : vector<1x32x64xf32> to vector<32x64xf32>
    %cst_139 = arith.constant dense<0.000000e+00> : vector<12x64xf32>
    %158 = tpu.matmul %155, %157, %cst_139 {dimension_numbers = #tpu.dot_dimension_numbers<[1], [0], [0], [1], [0, 0, 1, 1], [], []>} : vector<12x32xf32>, vector<32x64xf32>, vector<12x64xf32> -> vector<12x64xf32>
    %159 = arith.addf %154, %158 : vector<12x64xf32>
    %160 = vector.extract_strided_slice %116 {offsets = [2, 0], sizes = [12, 32], strides = [1, 1]} : vector<14x32xf32> to vector<12x32xf32>
    %c8_140 = arith.constant 8 : index
    %c0_141 = arith.constant 0 : index
    %c0_142 = arith.constant 0 : index
    %161 = vector.load %arg2[%c8_140, %c0_141, %c0_142] : memref<9x32x64xf32, #tpu.memory_space<vmem>>, vector<1x32x64xf32>
    %162 = vector.shape_cast %161 : vector<1x32x64xf32> to vector<32x64xf32>
    %cst_143 = arith.constant dense<0.000000e+00> : vector<12x64xf32>
    %163 = tpu.matmul %160, %162, %cst_143 {dimension_numbers = #tpu.dot_dimension_numbers<[1], [0], [0], [1], [0, 0, 1, 1], [], []>} : vector<12x32xf32>, vector<32x64xf32>, vector<12x64xf32> -> vector<12x64xf32>
    %164 = arith.addf %159, %163 : vector<12x64xf32>
    %cst_144 = arith.constant 0.000000e+00 : f32
    %165 = vector.broadcast %cst_144 : f32 to vector<12x64xf32>
    %166 = vector.extract_strided_slice %114 {offsets = [0, 0], sizes = [12, 32], strides = [1, 1]} : vector<14x32xf32> to vector<12x32xf32>
    %c0_145 = arith.constant 0 : index
    %c0_146 = arith.constant 0 : index
    %c0_147 = arith.constant 0 : index
    %167 = vector.load %arg2[%c0_145, %c0_146, %c0_147] : memref<9x32x64xf32, #tpu.memory_space<vmem>>, vector<1x32x64xf32>
    %168 = vector.shape_cast %167 : vector<1x32x64xf32> to vector<32x64xf32>
    %cst_148 = arith.constant dense<0.000000e+00> : vector<12x64xf32>
    %169 = tpu.matmul %166, %168, %cst_148 {dimension_numbers = #tpu.dot_dimension_numbers<[1], [0], [0], [1], [0, 0, 1, 1], [], []>} : vector<12x32xf32>, vector<32x64xf32>, vector<12x64xf32> -> vector<12x64xf32>
    %170 = arith.addf %165, %169 : vector<12x64xf32>
    %171 = vector.extract_strided_slice %114 {offsets = [1, 0], sizes = [12, 32], strides = [1, 1]} : vector<14x32xf32> to vector<12x32xf32>
    %c1_149 = arith.constant 1 : index
    %c0_150 = arith.constant 0 : index
    %c0_151 = arith.constant 0 : index
    %172 = vector.load %arg2[%c1_149, %c0_150, %c0_151] : memref<9x32x64xf32, #tpu.memory_space<vmem>>, vector<1x32x64xf32>
    %173 = vector.shape_cast %172 : vector<1x32x64xf32> to vector<32x64xf32>
    %cst_152 = arith.constant dense<0.000000e+00> : vector<12x64xf32>
    %174 = tpu.matmul %171, %173, %cst_152 {dimension_numbers = #tpu.dot_dimension_numbers<[1], [0], [0], [1], [0, 0, 1, 1], [], []>} : vector<12x32xf32>, vector<32x64xf32>, vector<12x64xf32> -> vector<12x64xf32>
    %175 = arith.addf %170, %174 : vector<12x64xf32>
    %176 = vector.extract_strided_slice %114 {offsets = [2, 0], sizes = [12, 32], strides = [1, 1]} : vector<14x32xf32> to vector<12x32xf32>
    %c2_153 = arith.constant 2 : index
    %c0_154 = arith.constant 0 : index
    %c0_155 = arith.constant 0 : index
    %177 = vector.load %arg2[%c2_153, %c0_154, %c0_155] : memref<9x32x64xf32, #tpu.memory_space<vmem>>, vector<1x32x64xf32>
    %178 = vector.shape_cast %177 : vector<1x32x64xf32> to vector<32x64xf32>
    %cst_156 = arith.constant dense<0.000000e+00> : vector<12x64xf32>
    %179 = tpu.matmul %176, %178, %cst_156 {dimension_numbers = #tpu.dot_dimension_numbers<[1], [0], [0], [1], [0, 0, 1, 1], [], []>} : vector<12x32xf32>, vector<32x64xf32>, vector<12x64xf32> -> vector<12x64xf32>
    %180 = arith.addf %175, %179 : vector<12x64xf32>
    %181 = vector.extract_strided_slice %116 {offsets = [0, 0], sizes = [12, 32], strides = [1, 1]} : vector<14x32xf32> to vector<12x32xf32>
    %c3_157 = arith.constant 3 : index
    %c0_158 = arith.constant 0 : index
    %c0_159 = arith.constant 0 : index
    %182 = vector.load %arg2[%c3_157, %c0_158, %c0_159] : memref<9x32x64xf32, #tpu.memory_space<vmem>>, vector<1x32x64xf32>
    %183 = vector.shape_cast %182 : vector<1x32x64xf32> to vector<32x64xf32>
    %cst_160 = arith.constant dense<0.000000e+00> : vector<12x64xf32>
    %184 = tpu.matmul %181, %183, %cst_160 {dimension_numbers = #tpu.dot_dimension_numbers<[1], [0], [0], [1], [0, 0, 1, 1], [], []>} : vector<12x32xf32>, vector<32x64xf32>, vector<12x64xf32> -> vector<12x64xf32>
    %185 = arith.addf %180, %184 : vector<12x64xf32>
    %186 = vector.extract_strided_slice %116 {offsets = [1, 0], sizes = [12, 32], strides = [1, 1]} : vector<14x32xf32> to vector<12x32xf32>
    %c4_161 = arith.constant 4 : index
    %c0_162 = arith.constant 0 : index
    %c0_163 = arith.constant 0 : index
    %187 = vector.load %arg2[%c4_161, %c0_162, %c0_163] : memref<9x32x64xf32, #tpu.memory_space<vmem>>, vector<1x32x64xf32>
    %188 = vector.shape_cast %187 : vector<1x32x64xf32> to vector<32x64xf32>
    %cst_164 = arith.constant dense<0.000000e+00> : vector<12x64xf32>
    %189 = tpu.matmul %186, %188, %cst_164 {dimension_numbers = #tpu.dot_dimension_numbers<[1], [0], [0], [1], [0, 0, 1, 1], [], []>} : vector<12x32xf32>, vector<32x64xf32>, vector<12x64xf32> -> vector<12x64xf32>
    %190 = arith.addf %185, %189 : vector<12x64xf32>
    %191 = vector.extract_strided_slice %116 {offsets = [2, 0], sizes = [12, 32], strides = [1, 1]} : vector<14x32xf32> to vector<12x32xf32>
    %c5_165 = arith.constant 5 : index
    %c0_166 = arith.constant 0 : index
    %c0_167 = arith.constant 0 : index
    %192 = vector.load %arg2[%c5_165, %c0_166, %c0_167] : memref<9x32x64xf32, #tpu.memory_space<vmem>>, vector<1x32x64xf32>
    %193 = vector.shape_cast %192 : vector<1x32x64xf32> to vector<32x64xf32>
    %cst_168 = arith.constant dense<0.000000e+00> : vector<12x64xf32>
    %194 = tpu.matmul %191, %193, %cst_168 {dimension_numbers = #tpu.dot_dimension_numbers<[1], [0], [0], [1], [0, 0, 1, 1], [], []>} : vector<12x32xf32>, vector<32x64xf32>, vector<12x64xf32> -> vector<12x64xf32>
    %195 = arith.addf %190, %194 : vector<12x64xf32>
    %196 = vector.extract_strided_slice %118 {offsets = [0, 0], sizes = [12, 32], strides = [1, 1]} : vector<14x32xf32> to vector<12x32xf32>
    %c6_169 = arith.constant 6 : index
    %c0_170 = arith.constant 0 : index
    %c0_171 = arith.constant 0 : index
    %197 = vector.load %arg2[%c6_169, %c0_170, %c0_171] : memref<9x32x64xf32, #tpu.memory_space<vmem>>, vector<1x32x64xf32>
    %198 = vector.shape_cast %197 : vector<1x32x64xf32> to vector<32x64xf32>
    %cst_172 = arith.constant dense<0.000000e+00> : vector<12x64xf32>
    %199 = tpu.matmul %196, %198, %cst_172 {dimension_numbers = #tpu.dot_dimension_numbers<[1], [0], [0], [1], [0, 0, 1, 1], [], []>} : vector<12x32xf32>, vector<32x64xf32>, vector<12x64xf32> -> vector<12x64xf32>
    %200 = arith.addf %195, %199 : vector<12x64xf32>
    %201 = vector.extract_strided_slice %118 {offsets = [1, 0], sizes = [12, 32], strides = [1, 1]} : vector<14x32xf32> to vector<12x32xf32>
    %c7_173 = arith.constant 7 : index
    %c0_174 = arith.constant 0 : index
    %c0_175 = arith.constant 0 : index
    %202 = vector.load %arg2[%c7_173, %c0_174, %c0_175] : memref<9x32x64xf32, #tpu.memory_space<vmem>>, vector<1x32x64xf32>
    %203 = vector.shape_cast %202 : vector<1x32x64xf32> to vector<32x64xf32>
    %cst_176 = arith.constant dense<0.000000e+00> : vector<12x64xf32>
    %204 = tpu.matmul %201, %203, %cst_176 {dimension_numbers = #tpu.dot_dimension_numbers<[1], [0], [0], [1], [0, 0, 1, 1], [], []>} : vector<12x32xf32>, vector<32x64xf32>, vector<12x64xf32> -> vector<12x64xf32>
    %205 = arith.addf %200, %204 : vector<12x64xf32>
    %206 = vector.extract_strided_slice %118 {offsets = [2, 0], sizes = [12, 32], strides = [1, 1]} : vector<14x32xf32> to vector<12x32xf32>
    %c8_177 = arith.constant 8 : index
    %c0_178 = arith.constant 0 : index
    %c0_179 = arith.constant 0 : index
    %207 = vector.load %arg2[%c8_177, %c0_178, %c0_179] : memref<9x32x64xf32, #tpu.memory_space<vmem>>, vector<1x32x64xf32>
    %208 = vector.shape_cast %207 : vector<1x32x64xf32> to vector<32x64xf32>
    %cst_180 = arith.constant dense<0.000000e+00> : vector<12x64xf32>
    %209 = tpu.matmul %206, %208, %cst_180 {dimension_numbers = #tpu.dot_dimension_numbers<[1], [0], [0], [1], [0, 0, 1, 1], [], []>} : vector<12x32xf32>, vector<32x64xf32>, vector<12x64xf32> -> vector<12x64xf32>
    %210 = arith.addf %205, %209 : vector<12x64xf32>
    %211 = arith.maximumf %164, %210 : vector<12x64xf32>
    %c0_181 = arith.constant 0 : index
    %c0_182 = arith.constant 0 : index
    %212 = vector.load %arg5[%c0_181, %c0_182] : memref<12x64xf32, #tpu.memory_space<vmem>>, vector<12x64xf32>
    tpu.vector_store %arg5[%c0_181, %c0_182], %211 {strides = array<i32>} : memref<12x64xf32, #tpu.memory_space<vmem>>, vector<12x64xf32>,
    %c0_183 = arith.constant 0 : index
    %c0_184 = arith.constant 0 : index
    %213 = tpu.strided_load %arg5[%c0_183, %c0_184] {strides = array<i32: 2, 1>} : memref<12x64xf32, #tpu.memory_space<vmem>>, vector<6x64xf32>
    %c1_185 = arith.constant 1 : index
    %c0_186 = arith.constant 0 : index
    %214 = tpu.strided_load %arg5[%c1_185, %c0_186] {strides = array<i32: 2, 1>} : memref<12x64xf32, #tpu.memory_space<vmem>>, vector<6x64xf32>
    %215 = arith.maximumf %213, %214 : vector<6x64xf32>
    %216 = vector.broadcast %0 : vector<1x64xf32> to vector<6x64xf32>
    %217 = arith.addf %215, %216 : vector<6x64xf32>
    %c0_187 = arith.constant 0 : index
    %c6_188 = arith.constant 6 : index
    %c0_189 = arith.constant 0 : index
    %218 = vector.load %arg4[%c0_187, %c6_188, %c0_189] : memref<1x36x64xf32, #tpu.memory_space<vmem>>, vector<1x6x64xf32>
    %219 = vector.shape_cast %218 : vector<1x6x64xf32> to vector<6x64xf32>
    %220 = vector.shape_cast %217 : vector<6x64xf32> to vector<1x6x64xf32>
    tpu.vector_store %arg4[%c0_187, %c6_188, %c0_189], %220 {strides = array<i32>} : memref<1x36x64xf32, #tpu.memory_space<vmem>>, vector<1x6x64xf32>,
    %c0_190 = arith.constant 0 : index
    %c4_191 = arith.constant 4 : index
    %c0_192 = arith.constant 0 : index
    %c0_193 = arith.constant 0 : index
    %221 = vector.load %arg1[%c0_190, %c4_191, %c0_192, %c0_193] : memref<1x14x14x32xf32, #tpu.memory_space<vmem>>, vector<1x1x14x32xf32>
    %222 = vector.shape_cast %221 : vector<1x1x14x32xf32> to vector<14x32xf32>
    %c0_194 = arith.constant 0 : index
    %c5_195 = arith.constant 5 : index
    %c0_196 = arith.constant 0 : index
    %c0_197 = arith.constant 0 : index
    %223 = vector.load %arg1[%c0_194, %c5_195, %c0_196, %c0_197] : memref<1x14x14x32xf32, #tpu.memory_space<vmem>>, vector<1x1x14x32xf32>
    %224 = vector.shape_cast %223 : vector<1x1x14x32xf32> to vector<14x32xf32>
    %c0_198 = arith.constant 0 : index
    %c6_199 = arith.constant 6 : index
    %c0_200 = arith.constant 0 : index
    %c0_201 = arith.constant 0 : index
    %225 = vector.load %arg1[%c0_198, %c6_199, %c0_200, %c0_201] : memref<1x14x14x32xf32, #tpu.memory_space<vmem>>, vector<1x1x14x32xf32>
    %226 = vector.shape_cast %225 : vector<1x1x14x32xf32> to vector<14x32xf32>
    %c0_202 = arith.constant 0 : index
    %c7_203 = arith.constant 7 : index
    %c0_204 = arith.constant 0 : index
    %c0_205 = arith.constant 0 : index
    %227 = vector.load %arg1[%c0_202, %c7_203, %c0_204, %c0_205] : memref<1x14x14x32xf32, #tpu.memory_space<vmem>>, vector<1x1x14x32xf32>
    %228 = vector.shape_cast %227 : vector<1x1x14x32xf32> to vector<14x32xf32>
    %cst_206 = arith.constant 0.000000e+00 : f32
    %229 = vector.broadcast %cst_206 : f32 to vector<12x64xf32>
    %230 = vector.extract_strided_slice %222 {offsets = [0, 0], sizes = [12, 32], strides = [1, 1]} : vector<14x32xf32> to vector<12x32xf32>
    %c0_207 = arith.constant 0 : index
    %c0_208 = arith.constant 0 : index
    %c0_209 = arith.constant 0 : index
    %231 = vector.load %arg2[%c0_207, %c0_208, %c0_209] : memref<9x32x64xf32, #tpu.memory_space<vmem>>, vector<1x32x64xf32>
    %232 = vector.shape_cast %231 : vector<1x32x64xf32> to vector<32x64xf32>
    %cst_210 = arith.constant dense<0.000000e+00> : vector<12x64xf32>
    %233 = tpu.matmul %230, %232, %cst_210 {dimension_numbers = #tpu.dot_dimension_numbers<[1], [0], [0], [1], [0, 0, 1, 1], [], []>} : vector<12x32xf32>, vector<32x64xf32>, vector<12x64xf32> -> vector<12x64xf32>
    %234 = arith.addf %229, %233 : vector<12x64xf32>
    %235 = vector.extract_strided_slice %222 {offsets = [1, 0], sizes = [12, 32], strides = [1, 1]} : vector<14x32xf32> to vector<12x32xf32>
    %c1_211 = arith.constant 1 : index
    %c0_212 = arith.constant 0 : index
    %c0_213 = arith.constant 0 : index
    %236 = vector.load %arg2[%c1_211, %c0_212, %c0_213] : memref<9x32x64xf32, #tpu.memory_space<vmem>>, vector<1x32x64xf32>
    %237 = vector.shape_cast %236 : vector<1x32x64xf32> to vector<32x64xf32>
    %cst_214 = arith.constant dense<0.000000e+00> : vector<12x64xf32>
    %238 = tpu.matmul %235, %237, %cst_214 {dimension_numbers = #tpu.dot_dimension_numbers<[1], [0], [0], [1], [0, 0, 1, 1], [], []>} : vector<12x32xf32>, vector<32x64xf32>, vector<12x64xf32> -> vector<12x64xf32>
    %239 = arith.addf %234, %238 : vector<12x64xf32>
    %240 = vector.extract_strided_slice %222 {offsets = [2, 0], sizes = [12, 32], strides = [1, 1]} : vector<14x32xf32> to vector<12x32xf32>
    %c2_215 = arith.constant 2 : index
    %c0_216 = arith.constant 0 : index
    %c0_217 = arith.constant 0 : index
    %241 = vector.load %arg2[%c2_215, %c0_216, %c0_217] : memref<9x32x64xf32, #tpu.memory_space<vmem>>, vector<1x32x64xf32>
    %242 = vector.shape_cast %241 : vector<1x32x64xf32> to vector<32x64xf32>
    %cst_218 = arith.constant dense<0.000000e+00> : vector<12x64xf32>
    %243 = tpu.matmul %240, %242, %cst_218 {dimension_numbers = #tpu.dot_dimension_numbers<[1], [0], [0], [1], [0, 0, 1, 1], [], []>} : vector<12x32xf32>, vector<32x64xf32>, vector<12x64xf32> -> vector<12x64xf32>
    %244 = arith.addf %239, %243 : vector<12x64xf32>
    %245 = vector.extract_strided_slice %224 {offsets = [0, 0], sizes = [12, 32], strides = [1, 1]} : vector<14x32xf32> to vector<12x32xf32>
    %c3_219 = arith.constant 3 : index
    %c0_220 = arith.constant 0 : index
    %c0_221 = arith.constant 0 : index
    %246 = vector.load %arg2[%c3_219, %c0_220, %c0_221] : memref<9x32x64xf32, #tpu.memory_space<vmem>>, vector<1x32x64xf32>
    %247 = vector.shape_cast %246 : vector<1x32x64xf32> to vector<32x64xf32>
    %cst_222 = arith.constant dense<0.000000e+00> : vector<12x64xf32>
    %248 = tpu.matmul %245, %247, %cst_222 {dimension_numbers = #tpu.dot_dimension_numbers<[1], [0], [0], [1], [0, 0, 1, 1], [], []>} : vector<12x32xf32>, vector<32x64xf32>, vector<12x64xf32> -> vector<12x64xf32>
    %249 = arith.addf %244, %248 : vector<12x64xf32>
    %250 = vector.extract_strided_slice %224 {offsets = [1, 0], sizes = [12, 32], strides = [1, 1]} : vector<14x32xf32> to vector<12x32xf32>
    %c4_223 = arith.constant 4 : index
    %c0_224 = arith.constant 0 : index
    %c0_225 = arith.constant 0 : index
    %251 = vector.load %arg2[%c4_223, %c0_224, %c0_225] : memref<9x32x64xf32, #tpu.memory_space<vmem>>, vector<1x32x64xf32>
    %252 = vector.shape_cast %251 : vector<1x32x64xf32> to vector<32x64xf32>
    %cst_226 = arith.constant dense<0.000000e+00> : vector<12x64xf32>
    %253 = tpu.matmul %250, %252, %cst_226 {dimension_numbers = #tpu.dot_dimension_numbers<[1], [0], [0], [1], [0, 0, 1, 1], [], []>} : vector<12x32xf32>, vector<32x64xf32>, vector<12x64xf32> -> vector<12x64xf32>
    %254 = arith.addf %249, %253 : vector<12x64xf32>
    %255 = vector.extract_strided_slice %224 {offsets = [2, 0], sizes = [12, 32], strides = [1, 1]} : vector<14x32xf32> to vector<12x32xf32>
    %c5_227 = arith.constant 5 : index
    %c0_228 = arith.constant 0 : index
    %c0_229 = arith.constant 0 : index
    %256 = vector.load %arg2[%c5_227, %c0_228, %c0_229] : memref<9x32x64xf32, #tpu.memory_space<vmem>>, vector<1x32x64xf32>
    %257 = vector.shape_cast %256 : vector<1x32x64xf32> to vector<32x64xf32>
    %cst_230 = arith.constant dense<0.000000e+00> : vector<12x64xf32>
    %258 = tpu.matmul %255, %257, %cst_230 {dimension_numbers = #tpu.dot_dimension_numbers<[1], [0], [0], [1], [0, 0, 1, 1], [], []>} : vector<12x32xf32>, vector<32x64xf32>, vector<12x64xf32> -> vector<12x64xf32>
    %259 = arith.addf %254, %258 : vector<12x64xf32>
    %260 = vector.extract_strided_slice %226 {offsets = [0, 0], sizes = [12, 32], strides = [1, 1]} : vector<14x32xf32> to vector<12x32xf32>
    %c6_231 = arith.constant 6 : index
    %c0_232 = arith.constant 0 : index
    %c0_233 = arith.constant 0 : index
    %261 = vector.load %arg2[%c6_231, %c0_232, %c0_233] : memref<9x32x64xf32, #tpu.memory_space<vmem>>, vector<1x32x64xf32>
    %262 = vector.shape_cast %261 : vector<1x32x64xf32> to vector<32x64xf32>
    %cst_234 = arith.constant dense<0.000000e+00> : vector<12x64xf32>
    %263 = tpu.matmul %260, %262, %cst_234 {dimension_numbers = #tpu.dot_dimension_numbers<[1], [0], [0], [1], [0, 0, 1, 1], [], []>} : vector<12x32xf32>, vector<32x64xf32>, vector<12x64xf32> -> vector<12x64xf32>
    %264 = arith.addf %259, %263 : vector<12x64xf32>
    %265 = vector.extract_strided_slice %226 {offsets = [1, 0], sizes = [12, 32], strides = [1, 1]} : vector<14x32xf32> to vector<12x32xf32>
    %c7_235 = arith.constant 7 : index
    %c0_236 = arith.constant 0 : index
    %c0_237 = arith.constant 0 : index
    %266 = vector.load %arg2[%c7_235, %c0_236, %c0_237] : memref<9x32x64xf32, #tpu.memory_space<vmem>>, vector<1x32x64xf32>
    %267 = vector.shape_cast %266 : vector<1x32x64xf32> to vector<32x64xf32>
    %cst_238 = arith.constant dense<0.000000e+00> : vector<12x64xf32>
    %268 = tpu.matmul %265, %267, %cst_238 {dimension_numbers = #tpu.dot_dimension_numbers<[1], [0], [0], [1], [0, 0, 1, 1], [], []>} : vector<12x32xf32>, vector<32x64xf32>, vector<12x64xf32> -> vector<12x64xf32>
    %269 = arith.addf %264, %268 : vector<12x64xf32>
    %270 = vector.extract_strided_slice %226 {offsets = [2, 0], sizes = [12, 32], strides = [1, 1]} : vector<14x32xf32> to vector<12x32xf32>
    %c8_239 = arith.constant 8 : index
    %c0_240 = arith.constant 0 : index
    %c0_241 = arith.constant 0 : index
    %271 = vector.load %arg2[%c8_239, %c0_240, %c0_241] : memref<9x32x64xf32, #tpu.memory_space<vmem>>, vector<1x32x64xf32>
    %272 = vector.shape_cast %271 : vector<1x32x64xf32> to vector<32x64xf32>
    %cst_242 = arith.constant dense<0.000000e+00> : vector<12x64xf32>
    %273 = tpu.matmul %270, %272, %cst_242 {dimension_numbers = #tpu.dot_dimension_numbers<[1], [0], [0], [1], [0, 0, 1, 1], [], []>} : vector<12x32xf32>, vector<32x64xf32>, vector<12x64xf32> -> vector<12x64xf32>
    %274 = arith.addf %269, %273 : vector<12x64xf32>
    %cst_243 = arith.constant 0.000000e+00 : f32
    %275 = vector.broadcast %cst_243 : f32 to vector<12x64xf32>
    %276 = vector.extract_strided_slice %224 {offsets = [0, 0], sizes = [12, 32], strides = [1, 1]} : vector<14x32xf32> to vector<12x32xf32>
    %c0_244 = arith.constant 0 : index
    %c0_245 = arith.constant 0 : index
    %c0_246 = arith.constant 0 : index
    %277 = vector.load %arg2[%c0_244, %c0_245, %c0_246] : memref<9x32x64xf32, #tpu.memory_space<vmem>>, vector<1x32x64xf32>
    %278 = vector.shape_cast %277 : vector<1x32x64xf32> to vector<32x64xf32>
    %cst_247 = arith.constant dense<0.000000e+00> : vector<12x64xf32>
    %279 = tpu.matmul %276, %278, %cst_247 {dimension_numbers = #tpu.dot_dimension_numbers<[1], [0], [0], [1], [0, 0, 1, 1], [], []>} : vector<12x32xf32>, vector<32x64xf32>, vector<12x64xf32> -> vector<12x64xf32>
    %280 = arith.addf %275, %279 : vector<12x64xf32>
    %281 = vector.extract_strided_slice %224 {offsets = [1, 0], sizes = [12, 32], strides = [1, 1]} : vector<14x32xf32> to vector<12x32xf32>
    %c1_248 = arith.constant 1 : index
    %c0_249 = arith.constant 0 : index
    %c0_250 = arith.constant 0 : index
    %282 = vector.load %arg2[%c1_248, %c0_249, %c0_250] : memref<9x32x64xf32, #tpu.memory_space<vmem>>, vector<1x32x64xf32>
    %283 = vector.shape_cast %282 : vector<1x32x64xf32> to vector<32x64xf32>
    %cst_251 = arith.constant dense<0.000000e+00> : vector<12x64xf32>
    %284 = tpu.matmul %281, %283, %cst_251 {dimension_numbers = #tpu.dot_dimension_numbers<[1], [0], [0], [1], [0, 0, 1, 1], [], []>} : vector<12x32xf32>, vector<32x64xf32>, vector<12x64xf32> -> vector<12x64xf32>
    %285 = arith.addf %280, %284 : vector<12x64xf32>
    %286 = vector.extract_strided_slice %224 {offsets = [2, 0], sizes = [12, 32], strides = [1, 1]} : vector<14x32xf32> to vector<12x32xf32>
    %c2_252 = arith.constant 2 : index
    %c0_253 = arith.constant 0 : index
    %c0_254 = arith.constant 0 : index
    %287 = vector.load %arg2[%c2_252, %c0_253, %c0_254] : memref<9x32x64xf32, #tpu.memory_space<vmem>>, vector<1x32x64xf32>
    %288 = vector.shape_cast %287 : vector<1x32x64xf32> to vector<32x64xf32>
    %cst_255 = arith.constant dense<0.000000e+00> : vector<12x64xf32>
    %289 = tpu.matmul %286, %288, %cst_255 {dimension_numbers = #tpu.dot_dimension_numbers<[1], [0], [0], [1], [0, 0, 1, 1], [], []>} : vector<12x32xf32>, vector<32x64xf32>, vector<12x64xf32> -> vector<12x64xf32>
    %290 = arith.addf %285, %289 : vector<12x64xf32>
    %291 = vector.extract_strided_slice %226 {offsets = [0, 0], sizes = [12, 32], strides = [1, 1]} : vector<14x32xf32> to vector<12x32xf32>
    %c3_256 = arith.constant 3 : index
    %c0_257 = arith.constant 0 : index
    %c0_258 = arith.constant 0 : index
    %292 = vector.load %arg2[%c3_256, %c0_257, %c0_258] : memref<9x32x64xf32, #tpu.memory_space<vmem>>, vector<1x32x64xf32>
    %293 = vector.shape_cast %292 : vector<1x32x64xf32> to vector<32x64xf32>
    %cst_259 = arith.constant dense<0.000000e+00> : vector<12x64xf32>
    %294 = tpu.matmul %291, %293, %cst_259 {dimension_numbers = #tpu.dot_dimension_numbers<[1], [0], [0], [1], [0, 0, 1, 1], [], []>} : vector<12x32xf32>, vector<32x64xf32>, vector<12x64xf32> -> vector<12x64xf32>
    %295 = arith.addf %290, %294 : vector<12x64xf32>
    %296 = vector.extract_strided_slice %226 {offsets = [1, 0], sizes = [12, 32], strides = [1, 1]} : vector<14x32xf32> to vector<12x32xf32>
    %c4_260 = arith.constant 4 : index
    %c0_261 = arith.constant 0 : index
    %c0_262 = arith.constant 0 : index
    %297 = vector.load %arg2[%c4_260, %c0_261, %c0_262] : memref<9x32x64xf32, #tpu.memory_space<vmem>>, vector<1x32x64xf32>
    %298 = vector.shape_cast %297 : vector<1x32x64xf32> to vector<32x64xf32>
    %cst_263 = arith.constant dense<0.000000e+00> : vector<12x64xf32>
    %299 = tpu.matmul %296, %298, %cst_263 {dimension_numbers = #tpu.dot_dimension_numbers<[1], [0], [0], [1], [0, 0, 1, 1], [], []>} : vector<12x32xf32>, vector<32x64xf32>, vector<12x64xf32> -> vector<12x64xf32>
    %300 = arith.addf %295, %299 : vector<12x64xf32>
    %301 = vector.extract_strided_slice %226 {offsets = [2, 0], sizes = [12, 32], strides = [1, 1]} : vector<14x32xf32> to vector<12x32xf32>
    %c5_264 = arith.constant 5 : index
    %c0_265 = arith.constant 0 : index
    %c0_266 = arith.constant 0 : index
    %302 = vector.load %arg2[%c5_264, %c0_265, %c0_266] : memref<9x32x64xf32, #tpu.memory_space<vmem>>, vector<1x32x64xf32>
    %303 = vector.shape_cast %302 : vector<1x32x64xf32> to vector<32x64xf32>
    %cst_267 = arith.constant dense<0.000000e+00> : vector<12x64xf32>
    %304 = tpu.matmul %301, %303, %cst_267 {dimension_numbers = #tpu.dot_dimension_numbers<[1], [0], [0], [1], [0, 0, 1, 1], [], []>} : vector<12x32xf32>, vector<32x64xf32>, vector<12x64xf32> -> vector<12x64xf32>
    %305 = arith.addf %300, %304 : vector<12x64xf32>
    %306 = vector.extract_strided_slice %228 {offsets = [0, 0], sizes = [12, 32], strides = [1, 1]} : vector<14x32xf32> to vector<12x32xf32>
    %c6_268 = arith.constant 6 : index
    %c0_269 = arith.constant 0 : index
    %c0_270 = arith.constant 0 : index
    %307 = vector.load %arg2[%c6_268, %c0_269, %c0_270] : memref<9x32x64xf32, #tpu.memory_space<vmem>>, vector<1x32x64xf32>
    %308 = vector.shape_cast %307 : vector<1x32x64xf32> to vector<32x64xf32>
    %cst_271 = arith.constant dense<0.000000e+00> : vector<12x64xf32>
    %309 = tpu.matmul %306, %308, %cst_271 {dimension_numbers = #tpu.dot_dimension_numbers<[1], [0], [0], [1], [0, 0, 1, 1], [], []>} : vector<12x32xf32>, vector<32x64xf32>, vector<12x64xf32> -> vector<12x64xf32>
    %310 = arith.addf %305, %309 : vector<12x64xf32>
    %311 = vector.extract_strided_slice %228 {offsets = [1, 0], sizes = [12, 32], strides = [1, 1]} : vector<14x32xf32> to vector<12x32xf32>
    %c7_272 = arith.constant 7 : index
    %c0_273 = arith.constant 0 : index
    %c0_274 = arith.constant 0 : index
    %312 = vector.load %arg2[%c7_272, %c0_273, %c0_274] : memref<9x32x64xf32, #tpu.memory_space<vmem>>, vector<1x32x64xf32>
    %313 = vector.shape_cast %312 : vector<1x32x64xf32> to vector<32x64xf32>
    %cst_275 = arith.constant dense<0.000000e+00> : vector<12x64xf32>
    %314 = tpu.matmul %311, %313, %cst_275 {dimension_numbers = #tpu.dot_dimension_numbers<[1], [0], [0], [1], [0, 0, 1, 1], [], []>} : vector<12x32xf32>, vector<32x64xf32>, vector<12x64xf32> -> vector<12x64xf32>
    %315 = arith.addf %310, %314 : vector<12x64xf32>
    %316 = vector.extract_strided_slice %228 {offsets = [2, 0], sizes = [12, 32], strides = [1, 1]} : vector<14x32xf32> to vector<12x32xf32>
    %c8_276 = arith.constant 8 : index
    %c0_277 = arith.constant 0 : index
    %c0_278 = arith.constant 0 : index
    %317 = vector.load %arg2[%c8_276, %c0_277, %c0_278] : memref<9x32x64xf32, #tpu.memory_space<vmem>>, vector<1x32x64xf32>
    %318 = vector.shape_cast %317 : vector<1x32x64xf32> to vector<32x64xf32>
    %cst_279 = arith.constant dense<0.000000e+00> : vector<12x64xf32>
    %319 = tpu.matmul %316, %318, %cst_279 {dimension_numbers = #tpu.dot_dimension_numbers<[1], [0], [0], [1], [0, 0, 1, 1], [], []>} : vector<12x32xf32>, vector<32x64xf32>, vector<12x64xf32> -> vector<12x64xf32>
    %320 = arith.addf %315, %319 : vector<12x64xf32>
    %321 = arith.maximumf %274, %320 : vector<12x64xf32>
    %c0_280 = arith.constant 0 : index
    %c0_281 = arith.constant 0 : index
    %322 = vector.load %arg5[%c0_280, %c0_281] : memref<12x64xf32, #tpu.memory_space<vmem>>, vector<12x64xf32>
    tpu.vector_store %arg5[%c0_280, %c0_281], %321 {strides = array<i32>} : memref<12x64xf32, #tpu.memory_space<vmem>>, vector<12x64xf32>,
    %c0_282 = arith.constant 0 : index
    %c0_283 = arith.constant 0 : index
    %323 = tpu.strided_load %arg5[%c0_282, %c0_283] {strides = array<i32: 2, 1>} : memref<12x64xf32, #tpu.memory_space<vmem>>, vector<6x64xf32>
    %c1_284 = arith.constant 1 : index
    %c0_285 = arith.constant 0 : index
    %324 = tpu.strided_load %arg5[%c1_284, %c0_285] {strides = array<i32: 2, 1>} : memref<12x64xf32, #tpu.memory_space<vmem>>, vector<6x64xf32>
    %325 = arith.maximumf %323, %324 : vector<6x64xf32>
    %326 = vector.broadcast %0 : vector<1x64xf32> to vector<6x64xf32>
    %327 = arith.addf %325, %326 : vector<6x64xf32>
    %c0_286 = arith.constant 0 : index
    %c12 = arith.constant 12 : index
    %c0_287 = arith.constant 0 : index
    %328 = vector.load %arg4[%c0_286, %c12, %c0_287] : memref<1x36x64xf32, #tpu.memory_space<vmem>>, vector<1x6x64xf32>
    %329 = vector.shape_cast %328 : vector<1x6x64xf32> to vector<6x64xf32>
    %330 = vector.shape_cast %327 : vector<6x64xf32> to vector<1x6x64xf32>
    tpu.vector_store %arg4[%c0_286, %c12, %c0_287], %330 {strides = array<i32>} : memref<1x36x64xf32, #tpu.memory_space<vmem>>, vector<1x6x64xf32>,
    %c0_288 = arith.constant 0 : index
    %c6_289 = arith.constant 6 : index
    %c0_290 = arith.constant 0 : index
    %c0_291 = arith.constant 0 : index
    %331 = vector.load %arg1[%c0_288, %c6_289, %c0_290, %c0_291] : memref<1x14x14x32xf32, #tpu.memory_space<vmem>>, vector<1x1x14x32xf32>
    %332 = vector.shape_cast %331 : vector<1x1x14x32xf32> to vector<14x32xf32>
    %c0_292 = arith.constant 0 : index
    %c7_293 = arith.constant 7 : index
    %c0_294 = arith.constant 0 : index
    %c0_295 = arith.constant 0 : index
    %333 = vector.load %arg1[%c0_292, %c7_293, %c0_294, %c0_295] : memref<1x14x14x32xf32, #tpu.memory_space<vmem>>, vector<1x1x14x32xf32>
    %334 = vector.shape_cast %333 : vector<1x1x14x32xf32> to vector<14x32xf32>
    %c0_296 = arith.constant 0 : index
    %c8_297 = arith.constant 8 : index
    %c0_298 = arith.constant 0 : index
    %c0_299 = arith.constant 0 : index
    %335 = vector.load %arg1[%c0_296, %c8_297, %c0_298, %c0_299] : memref<1x14x14x32xf32, #tpu.memory_space<vmem>>, vector<1x1x14x32xf32>
    %336 = vector.shape_cast %335 : vector<1x1x14x32xf32> to vector<14x32xf32>
    %c0_300 = arith.constant 0 : index
    %c9 = arith.constant 9 : index
    %c0_301 = arith.constant 0 : index
    %c0_302 = arith.constant 0 : index
    %337 = vector.load %arg1[%c0_300, %c9, %c0_301, %c0_302] : memref<1x14x14x32xf32, #tpu.memory_space<vmem>>, vector<1x1x14x32xf32>
    %338 = vector.shape_cast %337 : vector<1x1x14x32xf32> to vector<14x32xf32>
    %cst_303 = arith.constant 0.000000e+00 : f32
    %339 = vector.broadcast %cst_303 : f32 to vector<12x64xf32>
    %340 = vector.extract_strided_slice %332 {offsets = [0, 0], sizes = [12, 32], strides = [1, 1]} : vector<14x32xf32> to vector<12x32xf32>
    %c0_304 = arith.constant 0 : index
    %c0_305 = arith.constant 0 : index
    %c0_306 = arith.constant 0 : index
    %341 = vector.load %arg2[%c0_304, %c0_305, %c0_306] : memref<9x32x64xf32, #tpu.memory_space<vmem>>, vector<1x32x64xf32>
    %342 = vector.shape_cast %341 : vector<1x32x64xf32> to vector<32x64xf32>
    %cst_307 = arith.constant dense<0.000000e+00> : vector<12x64xf32>
    %343 = tpu.matmul %340, %342, %cst_307 {dimension_numbers = #tpu.dot_dimension_numbers<[1], [0], [0], [1], [0, 0, 1, 1], [], []>} : vector<12x32xf32>, vector<32x64xf32>, vector<12x64xf32> -> vector<12x64xf32>
    %344 = arith.addf %339, %343 : vector<12x64xf32>
    %345 = vector.extract_strided_slice %332 {offsets = [1, 0], sizes = [12, 32], strides = [1, 1]} : vector<14x32xf32> to vector<12x32xf32>
    %c1_308 = arith.constant 1 : index
    %c0_309 = arith.constant 0 : index
    %c0_310 = arith.constant 0 : index
    %346 = vector.load %arg2[%c1_308, %c0_309, %c0_310] : memref<9x32x64xf32, #tpu.memory_space<vmem>>, vector<1x32x64xf32>
    %347 = vector.shape_cast %346 : vector<1x32x64xf32> to vector<32x64xf32>
    %cst_311 = arith.constant dense<0.000000e+00> : vector<12x64xf32>
    %348 = tpu.matmul %345, %347, %cst_311 {dimension_numbers = #tpu.dot_dimension_numbers<[1], [0], [0], [1], [0, 0, 1, 1], [], []>} : vector<12x32xf32>, vector<32x64xf32>, vector<12x64xf32> -> vector<12x64xf32>
    %349 = arith.addf %344, %348 : vector<12x64xf32>
    %350 = vector.extract_strided_slice %332 {offsets = [2, 0], sizes = [12, 32], strides = [1, 1]} : vector<14x32xf32> to vector<12x32xf32>
    %c2_312 = arith.constant 2 : index
    %c0_313 = arith.constant 0 : index
    %c0_314 = arith.constant 0 : index
    %351 = vector.load %arg2[%c2_312, %c0_313, %c0_314] : memref<9x32x64xf32, #tpu.memory_space<vmem>>, vector<1x32x64xf32>
    %352 = vector.shape_cast %351 : vector<1x32x64xf32> to vector<32x64xf32>
    %cst_315 = arith.constant dense<0.000000e+00> : vector<12x64xf32>
    %353 = tpu.matmul %350, %352, %cst_315 {dimension_numbers = #tpu.dot_dimension_numbers<[1], [0], [0], [1], [0, 0, 1, 1], [], []>} : vector<12x32xf32>, vector<32x64xf32>, vector<12x64xf32> -> vector<12x64xf32>
    %354 = arith.addf %349, %353 : vector<12x64xf32>
    %355 = vector.extract_strided_slice %334 {offsets = [0, 0], sizes = [12, 32], strides = [1, 1]} : vector<14x32xf32> to vector<12x32xf32>
    %c3_316 = arith.constant 3 : index
    %c0_317 = arith.constant 0 : index
    %c0_318 = arith.constant 0 : index
    %356 = vector.load %arg2[%c3_316, %c0_317, %c0_318] : memref<9x32x64xf32, #tpu.memory_space<vmem>>, vector<1x32x64xf32>
    %357 = vector.shape_cast %356 : vector<1x32x64xf32> to vector<32x64xf32>
    %cst_319 = arith.constant dense<0.000000e+00> : vector<12x64xf32>
    %358 = tpu.matmul %355, %357, %cst_319 {dimension_numbers = #tpu.dot_dimension_numbers<[1], [0], [0], [1], [0, 0, 1, 1], [], []>} : vector<12x32xf32>, vector<32x64xf32>, vector<12x64xf32> -> vector<12x64xf32>
    %359 = arith.addf %354, %358 : vector<12x64xf32>
    %360 = vector.extract_strided_slice %334 {offsets = [1, 0], sizes = [12, 32], strides = [1, 1]} : vector<14x32xf32> to vector<12x32xf32>
    %c4_320 = arith.constant 4 : index
    %c0_321 = arith.constant 0 : index
    %c0_322 = arith.constant 0 : index
    %361 = vector.load %arg2[%c4_320, %c0_321, %c0_322] : memref<9x32x64xf32, #tpu.memory_space<vmem>>, vector<1x32x64xf32>
    %362 = vector.shape_cast %361 : vector<1x32x64xf32> to vector<32x64xf32>
    %cst_323 = arith.constant dense<0.000000e+00> : vector<12x64xf32>
    %363 = tpu.matmul %360, %362, %cst_323 {dimension_numbers = #tpu.dot_dimension_numbers<[1], [0], [0], [1], [0, 0, 1, 1], [], []>} : vector<12x32xf32>, vector<32x64xf32>, vector<12x64xf32> -> vector<12x64xf32>
    %364 = arith.addf %359, %363 : vector<12x64xf32>
    %365 = vector.extract_strided_slice %334 {offsets = [2, 0], sizes = [12, 32], strides = [1, 1]} : vector<14x32xf32> to vector<12x32xf32>
    %c5_324 = arith.constant 5 : index
    %c0_325 = arith.constant 0 : index
    %c0_326 = arith.constant 0 : index
    %366 = vector.load %arg2[%c5_324, %c0_325, %c0_326] : memref<9x32x64xf32, #tpu.memory_space<vmem>>, vector<1x32x64xf32>
    %367 = vector.shape_cast %366 : vector<1x32x64xf32> to vector<32x64xf32>
    %cst_327 = arith.constant dense<0.000000e+00> : vector<12x64xf32>
    %368 = tpu.matmul %365, %367, %cst_327 {dimension_numbers = #tpu.dot_dimension_numbers<[1], [0], [0], [1], [0, 0, 1, 1], [], []>} : vector<12x32xf32>, vector<32x64xf32>, vector<12x64xf32> -> vector<12x64xf32>
    %369 = arith.addf %364, %368 : vector<12x64xf32>
    %370 = vector.extract_strided_slice %336 {offsets = [0, 0], sizes = [12, 32], strides = [1, 1]} : vector<14x32xf32> to vector<12x32xf32>
    %c6_328 = arith.constant 6 : index
    %c0_329 = arith.constant 0 : index
    %c0_330 = arith.constant 0 : index
    %371 = vector.load %arg2[%c6_328, %c0_329, %c0_330] : memref<9x32x64xf32, #tpu.memory_space<vmem>>, vector<1x32x64xf32>
    %372 = vector.shape_cast %371 : vector<1x32x64xf32> to vector<32x64xf32>
    %cst_331 = arith.constant dense<0.000000e+00> : vector<12x64xf32>
    %373 = tpu.matmul %370, %372, %cst_331 {dimension_numbers = #tpu.dot_dimension_numbers<[1], [0], [0], [1], [0, 0, 1, 1], [], []>} : vector<12x32xf32>, vector<32x64xf32>, vector<12x64xf32> -> vector<12x64xf32>
    %374 = arith.addf %369, %373 : vector<12x64xf32>
    %375 = vector.extract_strided_slice %336 {offsets = [1, 0], sizes = [12, 32], strides = [1, 1]} : vector<14x32xf32> to vector<12x32xf32>
    %c7_332 = arith.constant 7 : index
    %c0_333 = arith.constant 0 : index
    %c0_334 = arith.constant 0 : index
    %376 = vector.load %arg2[%c7_332, %c0_333, %c0_334] : memref<9x32x64xf32, #tpu.memory_space<vmem>>, vector<1x32x64xf32>
    %377 = vector.shape_cast %376 : vector<1x32x64xf32> to vector<32x64xf32>
    %cst_335 = arith.constant dense<0.000000e+00> : vector<12x64xf32>
    %378 = tpu.matmul %375, %377, %cst_335 {dimension_numbers = #tpu.dot_dimension_numbers<[1], [0], [0], [1], [0, 0, 1, 1], [], []>} : vector<12x32xf32>, vector<32x64xf32>, vector<12x64xf32> -> vector<12x64xf32>
    %379 = arith.addf %374, %378 : vector<12x64xf32>
    %380 = vector.extract_strided_slice %336 {offsets = [2, 0], sizes = [12, 32], strides = [1, 1]} : vector<14x32xf32> to vector<12x32xf32>
    %c8_336 = arith.constant 8 : index
    %c0_337 = arith.constant 0 : index
    %c0_338 = arith.constant 0 : index
    %381 = vector.load %arg2[%c8_336, %c0_337, %c0_338] : memref<9x32x64xf32, #tpu.memory_space<vmem>>, vector<1x32x64xf32>
    %382 = vector.shape_cast %381 : vector<1x32x64xf32> to vector<32x64xf32>
    %cst_339 = arith.constant dense<0.000000e+00> : vector<12x64xf32>
    %383 = tpu.matmul %380, %382, %cst_339 {dimension_numbers = #tpu.dot_dimension_numbers<[1], [0], [0], [1], [0, 0, 1, 1], [], []>} : vector<12x32xf32>, vector<32x64xf32>, vector<12x64xf32> -> vector<12x64xf32>
    %384 = arith.addf %379, %383 : vector<12x64xf32>
    %cst_340 = arith.constant 0.000000e+00 : f32
    %385 = vector.broadcast %cst_340 : f32 to vector<12x64xf32>
    %386 = vector.extract_strided_slice %334 {offsets = [0, 0], sizes = [12, 32], strides = [1, 1]} : vector<14x32xf32> to vector<12x32xf32>
    %c0_341 = arith.constant 0 : index
    %c0_342 = arith.constant 0 : index
    %c0_343 = arith.constant 0 : index
    %387 = vector.load %arg2[%c0_341, %c0_342, %c0_343] : memref<9x32x64xf32, #tpu.memory_space<vmem>>, vector<1x32x64xf32>
    %388 = vector.shape_cast %387 : vector<1x32x64xf32> to vector<32x64xf32>
    %cst_344 = arith.constant dense<0.000000e+00> : vector<12x64xf32>
    %389 = tpu.matmul %386, %388, %cst_344 {dimension_numbers = #tpu.dot_dimension_numbers<[1], [0], [0], [1], [0, 0, 1, 1], [], []>} : vector<12x32xf32>, vector<32x64xf32>, vector<12x64xf32> -> vector<12x64xf32>
    %390 = arith.addf %385, %389 : vector<12x64xf32>
    %391 = vector.extract_strided_slice %334 {offsets = [1, 0], sizes = [12, 32], strides = [1, 1]} : vector<14x32xf32> to vector<12x32xf32>
    %c1_345 = arith.constant 1 : index
    %c0_346 = arith.constant 0 : index
    %c0_347 = arith.constant 0 : index
    %392 = vector.load %arg2[%c1_345, %c0_346, %c0_347] : memref<9x32x64xf32, #tpu.memory_space<vmem>>, vector<1x32x64xf32>
    %393 = vector.shape_cast %392 : vector<1x32x64xf32> to vector<32x64xf32>
    %cst_348 = arith.constant dense<0.000000e+00> : vector<12x64xf32>
    %394 = tpu.matmul %391, %393, %cst_348 {dimension_numbers = #tpu.dot_dimension_numbers<[1], [0], [0], [1], [0, 0, 1, 1], [], []>} : vector<12x32xf32>, vector<32x64xf32>, vector<12x64xf32> -> vector<12x64xf32>
    %395 = arith.addf %390, %394 : vector<12x64xf32>
    %396 = vector.extract_strided_slice %334 {offsets = [2, 0], sizes = [12, 32], strides = [1, 1]} : vector<14x32xf32> to vector<12x32xf32>
    %c2_349 = arith.constant 2 : index
    %c0_350 = arith.constant 0 : index
    %c0_351 = arith.constant 0 : index
    %397 = vector.load %arg2[%c2_349, %c0_350, %c0_351] : memref<9x32x64xf32, #tpu.memory_space<vmem>>, vector<1x32x64xf32>
    %398 = vector.shape_cast %397 : vector<1x32x64xf32> to vector<32x64xf32>
    %cst_352 = arith.constant dense<0.000000e+00> : vector<12x64xf32>
    %399 = tpu.matmul %396, %398, %cst_352 {dimension_numbers = #tpu.dot_dimension_numbers<[1], [0], [0], [1], [0, 0, 1, 1], [], []>} : vector<12x32xf32>, vector<32x64xf32>, vector<12x64xf32> -> vector<12x64xf32>
    %400 = arith.addf %395, %399 : vector<12x64xf32>
    %401 = vector.extract_strided_slice %336 {offsets = [0, 0], sizes = [12, 32], strides = [1, 1]} : vector<14x32xf32> to vector<12x32xf32>
    %c3_353 = arith.constant 3 : index
    %c0_354 = arith.constant 0 : index
    %c0_355 = arith.constant 0 : index
    %402 = vector.load %arg2[%c3_353, %c0_354, %c0_355] : memref<9x32x64xf32, #tpu.memory_space<vmem>>, vector<1x32x64xf32>
    %403 = vector.shape_cast %402 : vector<1x32x64xf32> to vector<32x64xf32>
    %cst_356 = arith.constant dense<0.000000e+00> : vector<12x64xf32>
    %404 = tpu.matmul %401, %403, %cst_356 {dimension_numbers = #tpu.dot_dimension_numbers<[1], [0], [0], [1], [0, 0, 1, 1], [], []>} : vector<12x32xf32>, vector<32x64xf32>, vector<12x64xf32> -> vector<12x64xf32>
    %405 = arith.addf %400, %404 : vector<12x64xf32>
    %406 = vector.extract_strided_slice %336 {offsets = [1, 0], sizes = [12, 32], strides = [1, 1]} : vector<14x32xf32> to vector<12x32xf32>
    %c4_357 = arith.constant 4 : index
    %c0_358 = arith.constant 0 : index
    %c0_359 = arith.constant 0 : index
    %407 = vector.load %arg2[%c4_357, %c0_358, %c0_359] : memref<9x32x64xf32, #tpu.memory_space<vmem>>, vector<1x32x64xf32>
    %408 = vector.shape_cast %407 : vector<1x32x64xf32> to vector<32x64xf32>
    %cst_360 = arith.constant dense<0.000000e+00> : vector<12x64xf32>
    %409 = tpu.matmul %406, %408, %cst_360 {dimension_numbers = #tpu.dot_dimension_numbers<[1], [0], [0], [1], [0, 0, 1, 1], [], []>} : vector<12x32xf32>, vector<32x64xf32>, vector<12x64xf32> -> vector<12x64xf32>
    %410 = arith.addf %405, %409 : vector<12x64xf32>
    %411 = vector.extract_strided_slice %336 {offsets = [2, 0], sizes = [12, 32], strides = [1, 1]} : vector<14x32xf32> to vector<12x32xf32>
    %c5_361 = arith.constant 5 : index
    %c0_362 = arith.constant 0 : index
    %c0_363 = arith.constant 0 : index
    %412 = vector.load %arg2[%c5_361, %c0_362, %c0_363] : memref<9x32x64xf32, #tpu.memory_space<vmem>>, vector<1x32x64xf32>
    %413 = vector.shape_cast %412 : vector<1x32x64xf32> to vector<32x64xf32>
    %cst_364 = arith.constant dense<0.000000e+00> : vector<12x64xf32>
    %414 = tpu.matmul %411, %413, %cst_364 {dimension_numbers = #tpu.dot_dimension_numbers<[1], [0], [0], [1], [0, 0, 1, 1], [], []>} : vector<12x32xf32>, vector<32x64xf32>, vector<12x64xf32> -> vector<12x64xf32>
    %415 = arith.addf %410, %414 : vector<12x64xf32>
    %416 = vector.extract_strided_slice %338 {offsets = [0, 0], sizes = [12, 32], strides = [1, 1]} : vector<14x32xf32> to vector<12x32xf32>
    %c6_365 = arith.constant 6 : index
    %c0_366 = arith.constant 0 : index
    %c0_367 = arith.constant 0 : index
    %417 = vector.load %arg2[%c6_365, %c0_366, %c0_367] : memref<9x32x64xf32, #tpu.memory_space<vmem>>, vector<1x32x64xf32>
    %418 = vector.shape_cast %417 : vector<1x32x64xf32> to vector<32x64xf32>
    %cst_368 = arith.constant dense<0.000000e+00> : vector<12x64xf32>
    %419 = tpu.matmul %416, %418, %cst_368 {dimension_numbers = #tpu.dot_dimension_numbers<[1], [0], [0], [1], [0, 0, 1, 1], [], []>} : vector<12x32xf32>, vector<32x64xf32>, vector<12x64xf32> -> vector<12x64xf32>
    %420 = arith.addf %415, %419 : vector<12x64xf32>
    %421 = vector.extract_strided_slice %338 {offsets = [1, 0], sizes = [12, 32], strides = [1, 1]} : vector<14x32xf32> to vector<12x32xf32>
    %c7_369 = arith.constant 7 : index
    %c0_370 = arith.constant 0 : index
    %c0_371 = arith.constant 0 : index
    %422 = vector.load %arg2[%c7_369, %c0_370, %c0_371] : memref<9x32x64xf32, #tpu.memory_space<vmem>>, vector<1x32x64xf32>
    %423 = vector.shape_cast %422 : vector<1x32x64xf32> to vector<32x64xf32>
    %cst_372 = arith.constant dense<0.000000e+00> : vector<12x64xf32>
    %424 = tpu.matmul %421, %423, %cst_372 {dimension_numbers = #tpu.dot_dimension_numbers<[1], [0], [0], [1], [0, 0, 1, 1], [], []>} : vector<12x32xf32>, vector<32x64xf32>, vector<12x64xf32> -> vector<12x64xf32>
    %425 = arith.addf %420, %424 : vector<12x64xf32>
    %426 = vector.extract_strided_slice %338 {offsets = [2, 0], sizes = [12, 32], strides = [1, 1]} : vector<14x32xf32> to vector<12x32xf32>
    %c8_373 = arith.constant 8 : index
    %c0_374 = arith.constant 0 : index
    %c0_375 = arith.constant 0 : index
    %427 = vector.load %arg2[%c8_373, %c0_374, %c0_375] : memref<9x32x64xf32, #tpu.memory_space<vmem>>, vector<1x32x64xf32>
    %428 = vector.shape_cast %427 : vector<1x32x64xf32> to vector<32x64xf32>
    %cst_376 = arith.constant dense<0.000000e+00> : vector<12x64xf32>
    %429 = tpu.matmul %426, %428, %cst_376 {dimension_numbers = #tpu.dot_dimension_numbers<[1], [0], [0], [1], [0, 0, 1, 1], [], []>} : vector<12x32xf32>, vector<32x64xf32>, vector<12x64xf32> -> vector<12x64xf32>
    %430 = arith.addf %425, %429 : vector<12x64xf32>
    %431 = arith.maximumf %384, %430 : vector<12x64xf32>
    %c0_377 = arith.constant 0 : index
    %c0_378 = arith.constant 0 : index
    %432 = vector.load %arg5[%c0_377, %c0_378] : memref<12x64xf32, #tpu.memory_space<vmem>>, vector<12x64xf32>
    tpu.vector_store %arg5[%c0_377, %c0_378], %431 {strides = array<i32>} : memref<12x64xf32, #tpu.memory_space<vmem>>, vector<12x64xf32>,
    %c0_379 = arith.constant 0 : index
    %c0_380 = arith.constant 0 : index
    %433 = tpu.strided_load %arg5[%c0_379, %c0_380] {strides = array<i32: 2, 1>} : memref<12x64xf32, #tpu.memory_space<vmem>>, vector<6x64xf32>
    %c1_381 = arith.constant 1 : index
    %c0_382 = arith.constant 0 : index
    %434 = tpu.strided_load %arg5[%c1_381, %c0_382] {strides = array<i32: 2, 1>} : memref<12x64xf32, #tpu.memory_space<vmem>>, vector<6x64xf32>
    %435 = arith.maximumf %433, %434 : vector<6x64xf32>
    %436 = vector.broadcast %0 : vector<1x64xf32> to vector<6x64xf32>
    %437 = arith.addf %435, %436 : vector<6x64xf32>
    %c0_383 = arith.constant 0 : index
    %c18 = arith.constant 18 : index
    %c0_384 = arith.constant 0 : index
    %438 = vector.load %arg4[%c0_383, %c18, %c0_384] : memref<1x36x64xf32, #tpu.memory_space<vmem>>, vector<1x6x64xf32>
    %439 = vector.shape_cast %438 : vector<1x6x64xf32> to vector<6x64xf32>
    %440 = vector.shape_cast %437 : vector<6x64xf32> to vector<1x6x64xf32>
    tpu.vector_store %arg4[%c0_383, %c18, %c0_384], %440 {strides = array<i32>} : memref<1x36x64xf32, #tpu.memory_space<vmem>>, vector<1x6x64xf32>,
    %c0_385 = arith.constant 0 : index
    %c8_386 = arith.constant 8 : index
    %c0_387 = arith.constant 0 : index
    %c0_388 = arith.constant 0 : index
    %441 = vector.load %arg1[%c0_385, %c8_386, %c0_387, %c0_388] : memref<1x14x14x32xf32, #tpu.memory_space<vmem>>, vector<1x1x14x32xf32>
    %442 = vector.shape_cast %441 : vector<1x1x14x32xf32> to vector<14x32xf32>
    %c0_389 = arith.constant 0 : index
    %c9_390 = arith.constant 9 : index
    %c0_391 = arith.constant 0 : index
    %c0_392 = arith.constant 0 : index
    %443 = vector.load %arg1[%c0_389, %c9_390, %c0_391, %c0_392] : memref<1x14x14x32xf32, #tpu.memory_space<vmem>>, vector<1x1x14x32xf32>
    %444 = vector.shape_cast %443 : vector<1x1x14x32xf32> to vector<14x32xf32>
    %c0_393 = arith.constant 0 : index
    %c10 = arith.constant 10 : index
    %c0_394 = arith.constant 0 : index
    %c0_395 = arith.constant 0 : index
    %445 = vector.load %arg1[%c0_393, %c10, %c0_394, %c0_395] : memref<1x14x14x32xf32, #tpu.memory_space<vmem>>, vector<1x1x14x32xf32>
    %446 = vector.shape_cast %445 : vector<1x1x14x32xf32> to vector<14x32xf32>
    %c0_396 = arith.constant 0 : index
    %c11 = arith.constant 11 : index
    %c0_397 = arith.constant 0 : index
    %c0_398 = arith.constant 0 : index
    %447 = vector.load %arg1[%c0_396, %c11, %c0_397, %c0_398] : memref<1x14x14x32xf32, #tpu.memory_space<vmem>>, vector<1x1x14x32xf32>
    %448 = vector.shape_cast %447 : vector<1x1x14x32xf32> to vector<14x32xf32>
    %cst_399 = arith.constant 0.000000e+00 : f32
    %449 = vector.broadcast %cst_399 : f32 to vector<12x64xf32>
    %450 = vector.extract_strided_slice %442 {offsets = [0, 0], sizes = [12, 32], strides = [1, 1]} : vector<14x32xf32> to vector<12x32xf32>
    %c0_400 = arith.constant 0 : index
    %c0_401 = arith.constant 0 : index
    %c0_402 = arith.constant 0 : index
    %451 = vector.load %arg2[%c0_400, %c0_401, %c0_402] : memref<9x32x64xf32, #tpu.memory_space<vmem>>, vector<1x32x64xf32>
    %452 = vector.shape_cast %451 : vector<1x32x64xf32> to vector<32x64xf32>
    %cst_403 = arith.constant dense<0.000000e+00> : vector<12x64xf32>
    %453 = tpu.matmul %450, %452, %cst_403 {dimension_numbers = #tpu.dot_dimension_numbers<[1], [0], [0], [1], [0, 0, 1, 1], [], []>} : vector<12x32xf32>, vector<32x64xf32>, vector<12x64xf32> -> vector<12x64xf32>
    %454 = arith.addf %449, %453 : vector<12x64xf32>
    %455 = vector.extract_strided_slice %442 {offsets = [1, 0], sizes = [12, 32], strides = [1, 1]} : vector<14x32xf32> to vector<12x32xf32>
    %c1_404 = arith.constant 1 : index
    %c0_405 = arith.constant 0 : index
    %c0_406 = arith.constant 0 : index
    %456 = vector.load %arg2[%c1_404, %c0_405, %c0_406] : memref<9x32x64xf32, #tpu.memory_space<vmem>>, vector<1x32x64xf32>
    %457 = vector.shape_cast %456 : vector<1x32x64xf32> to vector<32x64xf32>
    %cst_407 = arith.constant dense<0.000000e+00> : vector<12x64xf32>
    %458 = tpu.matmul %455, %457, %cst_407 {dimension_numbers = #tpu.dot_dimension_numbers<[1], [0], [0], [1], [0, 0, 1, 1], [], []>} : vector<12x32xf32>, vector<32x64xf32>, vector<12x64xf32> -> vector<12x64xf32>
    %459 = arith.addf %454, %458 : vector<12x64xf32>
    %460 = vector.extract_strided_slice %442 {offsets = [2, 0], sizes = [12, 32], strides = [1, 1]} : vector<14x32xf32> to vector<12x32xf32>
    %c2_408 = arith.constant 2 : index
    %c0_409 = arith.constant 0 : index
    %c0_410 = arith.constant 0 : index
    %461 = vector.load %arg2[%c2_408, %c0_409, %c0_410] : memref<9x32x64xf32, #tpu.memory_space<vmem>>, vector<1x32x64xf32>
    %462 = vector.shape_cast %461 : vector<1x32x64xf32> to vector<32x64xf32>
    %cst_411 = arith.constant dense<0.000000e+00> : vector<12x64xf32>
    %463 = tpu.matmul %460, %462, %cst_411 {dimension_numbers = #tpu.dot_dimension_numbers<[1], [0], [0], [1], [0, 0, 1, 1], [], []>} : vector<12x32xf32>, vector<32x64xf32>, vector<12x64xf32> -> vector<12x64xf32>
    %464 = arith.addf %459, %463 : vector<12x64xf32>
    %465 = vector.extract_strided_slice %444 {offsets = [0, 0], sizes = [12, 32], strides = [1, 1]} : vector<14x32xf32> to vector<12x32xf32>
    %c3_412 = arith.constant 3 : index
    %c0_413 = arith.constant 0 : index
    %c0_414 = arith.constant 0 : index
    %466 = vector.load %arg2[%c3_412, %c0_413, %c0_414] : memref<9x32x64xf32, #tpu.memory_space<vmem>>, vector<1x32x64xf32>
    %467 = vector.shape_cast %466 : vector<1x32x64xf32> to vector<32x64xf32>
    %cst_415 = arith.constant dense<0.000000e+00> : vector<12x64xf32>
    %468 = tpu.matmul %465, %467, %cst_415 {dimension_numbers = #tpu.dot_dimension_numbers<[1], [0], [0], [1], [0, 0, 1, 1], [], []>} : vector<12x32xf32>, vector<32x64xf32>, vector<12x64xf32> -> vector<12x64xf32>
    %469 = arith.addf %464, %468 : vector<12x64xf32>
    %470 = vector.extract_strided_slice %444 {offsets = [1, 0], sizes = [12, 32], strides = [1, 1]} : vector<14x32xf32> to vector<12x32xf32>
    %c4_416 = arith.constant 4 : index
    %c0_417 = arith.constant 0 : index
    %c0_418 = arith.constant 0 : index
    %471 = vector.load %arg2[%c4_416, %c0_417, %c0_418] : memref<9x32x64xf32, #tpu.memory_space<vmem>>, vector<1x32x64xf32>
    %472 = vector.shape_cast %471 : vector<1x32x64xf32> to vector<32x64xf32>
    %cst_419 = arith.constant dense<0.000000e+00> : vector<12x64xf32>
    %473 = tpu.matmul %470, %472, %cst_419 {dimension_numbers = #tpu.dot_dimension_numbers<[1], [0], [0], [1], [0, 0, 1, 1], [], []>} : vector<12x32xf32>, vector<32x64xf32>, vector<12x64xf32> -> vector<12x64xf32>
    %474 = arith.addf %469, %473 : vector<12x64xf32>
    %475 = vector.extract_strided_slice %444 {offsets = [2, 0], sizes = [12, 32], strides = [1, 1]} : vector<14x32xf32> to vector<12x32xf32>
    %c5_420 = arith.constant 5 : index
    %c0_421 = arith.constant 0 : index
    %c0_422 = arith.constant 0 : index
    %476 = vector.load %arg2[%c5_420, %c0_421, %c0_422] : memref<9x32x64xf32, #tpu.memory_space<vmem>>, vector<1x32x64xf32>
    %477 = vector.shape_cast %476 : vector<1x32x64xf32> to vector<32x64xf32>
    %cst_423 = arith.constant dense<0.000000e+00> : vector<12x64xf32>
    %478 = tpu.matmul %475, %477, %cst_423 {dimension_numbers = #tpu.dot_dimension_numbers<[1], [0], [0], [1], [0, 0, 1, 1], [], []>} : vector<12x32xf32>, vector<32x64xf32>, vector<12x64xf32> -> vector<12x64xf32>
    %479 = arith.addf %474, %478 : vector<12x64xf32>
    %480 = vector.extract_strided_slice %446 {offsets = [0, 0], sizes = [12, 32], strides = [1, 1]} : vector<14x32xf32> to vector<12x32xf32>
    %c6_424 = arith.constant 6 : index
    %c0_425 = arith.constant 0 : index
    %c0_426 = arith.constant 0 : index
    %481 = vector.load %arg2[%c6_424, %c0_425, %c0_426] : memref<9x32x64xf32, #tpu.memory_space<vmem>>, vector<1x32x64xf32>
    %482 = vector.shape_cast %481 : vector<1x32x64xf32> to vector<32x64xf32>
    %cst_427 = arith.constant dense<0.000000e+00> : vector<12x64xf32>
    %483 = tpu.matmul %480, %482, %cst_427 {dimension_numbers = #tpu.dot_dimension_numbers<[1], [0], [0], [1], [0, 0, 1, 1], [], []>} : vector<12x32xf32>, vector<32x64xf32>, vector<12x64xf32> -> vector<12x64xf32>
    %484 = arith.addf %479, %483 : vector<12x64xf32>
    %485 = vector.extract_strided_slice %446 {offsets = [1, 0], sizes = [12, 32], strides = [1, 1]} : vector<14x32xf32> to vector<12x32xf32>
    %c7_428 = arith.constant 7 : index
    %c0_429 = arith.constant 0 : index
    %c0_430 = arith.constant 0 : index
    %486 = vector.load %arg2[%c7_428, %c0_429, %c0_430] : memref<9x32x64xf32, #tpu.memory_space<vmem>>, vector<1x32x64xf32>
    %487 = vector.shape_cast %486 : vector<1x32x64xf32> to vector<32x64xf32>
    %cst_431 = arith.constant dense<0.000000e+00> : vector<12x64xf32>
    %488 = tpu.matmul %485, %487, %cst_431 {dimension_numbers = #tpu.dot_dimension_numbers<[1], [0], [0], [1], [0, 0, 1, 1], [], []>} : vector<12x32xf32>, vector<32x64xf32>, vector<12x64xf32> -> vector<12x64xf32>
    %489 = arith.addf %484, %488 : vector<12x64xf32>
    %490 = vector.extract_strided_slice %446 {offsets = [2, 0], sizes = [12, 32], strides = [1, 1]} : vector<14x32xf32> to vector<12x32xf32>
    %c8_432 = arith.constant 8 : index
    %c0_433 = arith.constant 0 : index
    %c0_434 = arith.constant 0 : index
    %491 = vector.load %arg2[%c8_432, %c0_433, %c0_434] : memref<9x32x64xf32, #tpu.memory_space<vmem>>, vector<1x32x64xf32>
    %492 = vector.shape_cast %491 : vector<1x32x64xf32> to vector<32x64xf32>
    %cst_435 = arith.constant dense<0.000000e+00> : vector<12x64xf32>
    %493 = tpu.matmul %490, %492, %cst_435 {dimension_numbers = #tpu.dot_dimension_numbers<[1], [0], [0], [1], [0, 0, 1, 1], [], []>} : vector<12x32xf32>, vector<32x64xf32>, vector<12x64xf32> -> vector<12x64xf32>
    %494 = arith.addf %489, %493 : vector<12x64xf32>
    %cst_436 = arith.constant 0.000000e+00 : f32
    %495 = vector.broadcast %cst_436 : f32 to vector<12x64xf32>
    %496 = vector.extract_strided_slice %444 {offsets = [0, 0], sizes = [12, 32], strides = [1, 1]} : vector<14x32xf32> to vector<12x32xf32>
    %c0_437 = arith.constant 0 : index
    %c0_438 = arith.constant 0 : index
    %c0_439 = arith.constant 0 : index
    %497 = vector.load %arg2[%c0_437, %c0_438, %c0_439] : memref<9x32x64xf32, #tpu.memory_space<vmem>>, vector<1x32x64xf32>
    %498 = vector.shape_cast %497 : vector<1x32x64xf32> to vector<32x64xf32>
    %cst_440 = arith.constant dense<0.000000e+00> : vector<12x64xf32>
    %499 = tpu.matmul %496, %498, %cst_440 {dimension_numbers = #tpu.dot_dimension_numbers<[1], [0], [0], [1], [0, 0, 1, 1], [], []>} : vector<12x32xf32>, vector<32x64xf32>, vector<12x64xf32> -> vector<12x64xf32>
    %500 = arith.addf %495, %499 : vector<12x64xf32>
    %501 = vector.extract_strided_slice %444 {offsets = [1, 0], sizes = [12, 32], strides = [1, 1]} : vector<14x32xf32> to vector<12x32xf32>
    %c1_441 = arith.constant 1 : index
    %c0_442 = arith.constant 0 : index
    %c0_443 = arith.constant 0 : index
    %502 = vector.load %arg2[%c1_441, %c0_442, %c0_443] : memref<9x32x64xf32, #tpu.memory_space<vmem>>, vector<1x32x64xf32>
    %503 = vector.shape_cast %502 : vector<1x32x64xf32> to vector<32x64xf32>
    %cst_444 = arith.constant dense<0.000000e+00> : vector<12x64xf32>
    %504 = tpu.matmul %501, %503, %cst_444 {dimension_numbers = #tpu.dot_dimension_numbers<[1], [0], [0], [1], [0, 0, 1, 1], [], []>} : vector<12x32xf32>, vector<32x64xf32>, vector<12x64xf32> -> vector<12x64xf32>
    %505 = arith.addf %500, %504 : vector<12x64xf32>
    %506 = vector.extract_strided_slice %444 {offsets = [2, 0], sizes = [12, 32], strides = [1, 1]} : vector<14x32xf32> to vector<12x32xf32>
    %c2_445 = arith.constant 2 : index
    %c0_446 = arith.constant 0 : index
    %c0_447 = arith.constant 0 : index
    %507 = vector.load %arg2[%c2_445, %c0_446, %c0_447] : memref<9x32x64xf32, #tpu.memory_space<vmem>>, vector<1x32x64xf32>
    %508 = vector.shape_cast %507 : vector<1x32x64xf32> to vector<32x64xf32>
    %cst_448 = arith.constant dense<0.000000e+00> : vector<12x64xf32>
    %509 = tpu.matmul %506, %508, %cst_448 {dimension_numbers = #tpu.dot_dimension_numbers<[1], [0], [0], [1], [0, 0, 1, 1], [], []>} : vector<12x32xf32>, vector<32x64xf32>, vector<12x64xf32> -> vector<12x64xf32>
    %510 = arith.addf %505, %509 : vector<12x64xf32>
    %511 = vector.extract_strided_slice %446 {offsets = [0, 0], sizes = [12, 32], strides = [1, 1]} : vector<14x32xf32> to vector<12x32xf32>
    %c3_449 = arith.constant 3 : index
    %c0_450 = arith.constant 0 : index
    %c0_451 = arith.constant 0 : index
    %512 = vector.load %arg2[%c3_449, %c0_450, %c0_451] : memref<9x32x64xf32, #tpu.memory_space<vmem>>, vector<1x32x64xf32>
    %513 = vector.shape_cast %512 : vector<1x32x64xf32> to vector<32x64xf32>
    %cst_452 = arith.constant dense<0.000000e+00> : vector<12x64xf32>
    %514 = tpu.matmul %511, %513, %cst_452 {dimension_numbers = #tpu.dot_dimension_numbers<[1], [0], [0], [1], [0, 0, 1, 1], [], []>} : vector<12x32xf32>, vector<32x64xf32>, vector<12x64xf32> -> vector<12x64xf32>
    %515 = arith.addf %510, %514 : vector<12x64xf32>
    %516 = vector.extract_strided_slice %446 {offsets = [1, 0], sizes = [12, 32], strides = [1, 1]} : vector<14x32xf32> to vector<12x32xf32>
    %c4_453 = arith.constant 4 : index
    %c0_454 = arith.constant 0 : index
    %c0_455 = arith.constant 0 : index
    %517 = vector.load %arg2[%c4_453, %c0_454, %c0_455] : memref<9x32x64xf32, #tpu.memory_space<vmem>>, vector<1x32x64xf32>
    %518 = vector.shape_cast %517 : vector<1x32x64xf32> to vector<32x64xf32>
    %cst_456 = arith.constant dense<0.000000e+00> : vector<12x64xf32>
    %519 = tpu.matmul %516, %518, %cst_456 {dimension_numbers = #tpu.dot_dimension_numbers<[1], [0], [0], [1], [0, 0, 1, 1], [], []>} : vector<12x32xf32>, vector<32x64xf32>, vector<12x64xf32> -> vector<12x64xf32>
    %520 = arith.addf %515, %519 : vector<12x64xf32>
    %521 = vector.extract_strided_slice %446 {offsets = [2, 0], sizes = [12, 32], strides = [1, 1]} : vector<14x32xf32> to vector<12x32xf32>
    %c5_457 = arith.constant 5 : index
    %c0_458 = arith.constant 0 : index
    %c0_459 = arith.constant 0 : index
    %522 = vector.load %arg2[%c5_457, %c0_458, %c0_459] : memref<9x32x64xf32, #tpu.memory_space<vmem>>, vector<1x32x64xf32>
    %523 = vector.shape_cast %522 : vector<1x32x64xf32> to vector<32x64xf32>
    %cst_460 = arith.constant dense<0.000000e+00> : vector<12x64xf32>
    %524 = tpu.matmul %521, %523, %cst_460 {dimension_numbers = #tpu.dot_dimension_numbers<[1], [0], [0], [1], [0, 0, 1, 1], [], []>} : vector<12x32xf32>, vector<32x64xf32>, vector<12x64xf32> -> vector<12x64xf32>
    %525 = arith.addf %520, %524 : vector<12x64xf32>
    %526 = vector.extract_strided_slice %448 {offsets = [0, 0], sizes = [12, 32], strides = [1, 1]} : vector<14x32xf32> to vector<12x32xf32>
    %c6_461 = arith.constant 6 : index
    %c0_462 = arith.constant 0 : index
    %c0_463 = arith.constant 0 : index
    %527 = vector.load %arg2[%c6_461, %c0_462, %c0_463] : memref<9x32x64xf32, #tpu.memory_space<vmem>>, vector<1x32x64xf32>
    %528 = vector.shape_cast %527 : vector<1x32x64xf32> to vector<32x64xf32>
    %cst_464 = arith.constant dense<0.000000e+00> : vector<12x64xf32>
    %529 = tpu.matmul %526, %528, %cst_464 {dimension_numbers = #tpu.dot_dimension_numbers<[1], [0], [0], [1], [0, 0, 1, 1], [], []>} : vector<12x32xf32>, vector<32x64xf32>, vector<12x64xf32> -> vector<12x64xf32>
    %530 = arith.addf %525, %529 : vector<12x64xf32>
    %531 = vector.extract_strided_slice %448 {offsets = [1, 0], sizes = [12, 32], strides = [1, 1]} : vector<14x32xf32> to vector<12x32xf32>
    %c7_465 = arith.constant 7 : index
    %c0_466 = arith.constant 0 : index
    %c0_467 = arith.constant 0 : index
    %532 = vector.load %arg2[%c7_465, %c0_466, %c0_467] : memref<9x32x64xf32, #tpu.memory_space<vmem>>, vector<1x32x64xf32>
    %533 = vector.shape_cast %532 : vector<1x32x64xf32> to vector<32x64xf32>
    %cst_468 = arith.constant dense<0.000000e+00> : vector<12x64xf32>
    %534 = tpu.matmul %531, %533, %cst_468 {dimension_numbers = #tpu.dot_dimension_numbers<[1], [0], [0], [1], [0, 0, 1, 1], [], []>} : vector<12x32xf32>, vector<32x64xf32>, vector<12x64xf32> -> vector<12x64xf32>
    %535 = arith.addf %530, %534 : vector<12x64xf32>
    %536 = vector.extract_strided_slice %448 {offsets = [2, 0], sizes = [12, 32], strides = [1, 1]} : vector<14x32xf32> to vector<12x32xf32>
    %c8_469 = arith.constant 8 : index
    %c0_470 = arith.constant 0 : index
    %c0_471 = arith.constant 0 : index
    %537 = vector.load %arg2[%c8_469, %c0_470, %c0_471] : memref<9x32x64xf32, #tpu.memory_space<vmem>>, vector<1x32x64xf32>
    %538 = vector.shape_cast %537 : vector<1x32x64xf32> to vector<32x64xf32>
    %cst_472 = arith.constant dense<0.000000e+00> : vector<12x64xf32>
    %539 = tpu.matmul %536, %538, %cst_472 {dimension_numbers = #tpu.dot_dimension_numbers<[1], [0], [0], [1], [0, 0, 1, 1], [], []>} : vector<12x32xf32>, vector<32x64xf32>, vector<12x64xf32> -> vector<12x64xf32>
    %540 = arith.addf %535, %539 : vector<12x64xf32>
    %541 = arith.maximumf %494, %540 : vector<12x64xf32>
    %c0_473 = arith.constant 0 : index
    %c0_474 = arith.constant 0 : index
    %542 = vector.load %arg5[%c0_473, %c0_474] : memref<12x64xf32, #tpu.memory_space<vmem>>, vector<12x64xf32>
    tpu.vector_store %arg5[%c0_473, %c0_474], %541 {strides = array<i32>} : memref<12x64xf32, #tpu.memory_space<vmem>>, vector<12x64xf32>,
    %c0_475 = arith.constant 0 : index
    %c0_476 = arith.constant 0 : index
    %543 = tpu.strided_load %arg5[%c0_475, %c0_476] {strides = array<i32: 2, 1>} : memref<12x64xf32, #tpu.memory_space<vmem>>, vector<6x64xf32>
    %c1_477 = arith.constant 1 : index
    %c0_478 = arith.constant 0 : index
    %544 = tpu.strided_load %arg5[%c1_477, %c0_478] {strides = array<i32: 2, 1>} : memref<12x64xf32, #tpu.memory_space<vmem>>, vector<6x64xf32>
    %545 = arith.maximumf %543, %544 : vector<6x64xf32>
    %546 = vector.broadcast %0 : vector<1x64xf32> to vector<6x64xf32>
    %547 = arith.addf %545, %546 : vector<6x64xf32>
    %c0_479 = arith.constant 0 : index
    %c24 = arith.constant 24 : index
    %c0_480 = arith.constant 0 : index
    %548 = vector.load %arg4[%c0_479, %c24, %c0_480] : memref<1x36x64xf32, #tpu.memory_space<vmem>>, vector<1x6x64xf32>
    %549 = vector.shape_cast %548 : vector<1x6x64xf32> to vector<6x64xf32>
    %550 = vector.shape_cast %547 : vector<6x64xf32> to vector<1x6x64xf32>
    tpu.vector_store %arg4[%c0_479, %c24, %c0_480], %550 {strides = array<i32>} : memref<1x36x64xf32, #tpu.memory_space<vmem>>, vector<1x6x64xf32>,
    %c0_481 = arith.constant 0 : index
    %c10_482 = arith.constant 10 : index
    %c0_483 = arith.constant 0 : index
    %c0_484 = arith.constant 0 : index
    %551 = vector.load %arg1[%c0_481, %c10_482, %c0_483, %c0_484] : memref<1x14x14x32xf32, #tpu.memory_space<vmem>>, vector<1x1x14x32xf32>
    %552 = vector.shape_cast %551 : vector<1x1x14x32xf32> to vector<14x32xf32>
    %c0_485 = arith.constant 0 : index
    %c11_486 = arith.constant 11 : index
    %c0_487 = arith.constant 0 : index
    %c0_488 = arith.constant 0 : index
    %553 = vector.load %arg1[%c0_485, %c11_486, %c0_487, %c0_488] : memref<1x14x14x32xf32, #tpu.memory_space<vmem>>, vector<1x1x14x32xf32>
    %554 = vector.shape_cast %553 : vector<1x1x14x32xf32> to vector<14x32xf32>
    %c0_489 = arith.constant 0 : index
    %c12_490 = arith.constant 12 : index
    %c0_491 = arith.constant 0 : index
    %c0_492 = arith.constant 0 : index
    %555 = vector.load %arg1[%c0_489, %c12_490, %c0_491, %c0_492] : memref<1x14x14x32xf32, #tpu.memory_space<vmem>>, vector<1x1x14x32xf32>
    %556 = vector.shape_cast %555 : vector<1x1x14x32xf32> to vector<14x32xf32>
    %c0_493 = arith.constant 0 : index
    %c13 = arith.constant 13 : index
    %c0_494 = arith.constant 0 : index
    %c0_495 = arith.constant 0 : index
    %557 = vector.load %arg1[%c0_493, %c13, %c0_494, %c0_495] : memref<1x14x14x32xf32, #tpu.memory_space<vmem>>, vector<1x1x14x32xf32>
    %558 = vector.shape_cast %557 : vector<1x1x14x32xf32> to vector<14x32xf32>
    %cst_496 = arith.constant 0.000000e+00 : f32
    %559 = vector.broadcast %cst_496 : f32 to vector<12x64xf32>
    %560 = vector.extract_strided_slice %552 {offsets = [0, 0], sizes = [12, 32], strides = [1, 1]} : vector<14x32xf32> to vector<12x32xf32>
    %c0_497 = arith.constant 0 : index
    %c0_498 = arith.constant 0 : index
    %c0_499 = arith.constant 0 : index
    %561 = vector.load %arg2[%c0_497, %c0_498, %c0_499] : memref<9x32x64xf32, #tpu.memory_space<vmem>>, vector<1x32x64xf32>
    %562 = vector.shape_cast %561 : vector<1x32x64xf32> to vector<32x64xf32>
    %cst_500 = arith.constant dense<0.000000e+00> : vector<12x64xf32>
    %563 = tpu.matmul %560, %562, %cst_500 {dimension_numbers = #tpu.dot_dimension_numbers<[1], [0], [0], [1], [0, 0, 1, 1], [], []>} : vector<12x32xf32>, vector<32x64xf32>, vector<12x64xf32> -> vector<12x64xf32>
    %564 = arith.addf %559, %563 : vector<12x64xf32>
    %565 = vector.extract_strided_slice %552 {offsets = [1, 0], sizes = [12, 32], strides = [1, 1]} : vector<14x32xf32> to vector<12x32xf32>
    %c1_501 = arith.constant 1 : index
    %c0_502 = arith.constant 0 : index
    %c0_503 = arith.constant 0 : index
    %566 = vector.load %arg2[%c1_501, %c0_502, %c0_503] : memref<9x32x64xf32, #tpu.memory_space<vmem>>, vector<1x32x64xf32>
    %567 = vector.shape_cast %566 : vector<1x32x64xf32> to vector<32x64xf32>
    %cst_504 = arith.constant dense<0.000000e+00> : vector<12x64xf32>
    %568 = tpu.matmul %565, %567, %cst_504 {dimension_numbers = #tpu.dot_dimension_numbers<[1], [0], [0], [1], [0, 0, 1, 1], [], []>} : vector<12x32xf32>, vector<32x64xf32>, vector<12x64xf32> -> vector<12x64xf32>
    %569 = arith.addf %564, %568 : vector<12x64xf32>
    %570 = vector.extract_strided_slice %552 {offsets = [2, 0], sizes = [12, 32], strides = [1, 1]} : vector<14x32xf32> to vector<12x32xf32>
    %c2_505 = arith.constant 2 : index
    %c0_506 = arith.constant 0 : index
    %c0_507 = arith.constant 0 : index
    %571 = vector.load %arg2[%c2_505, %c0_506, %c0_507] : memref<9x32x64xf32, #tpu.memory_space<vmem>>, vector<1x32x64xf32>
    %572 = vector.shape_cast %571 : vector<1x32x64xf32> to vector<32x64xf32>
    %cst_508 = arith.constant dense<0.000000e+00> : vector<12x64xf32>
    %573 = tpu.matmul %570, %572, %cst_508 {dimension_numbers = #tpu.dot_dimension_numbers<[1], [0], [0], [1], [0, 0, 1, 1], [], []>} : vector<12x32xf32>, vector<32x64xf32>, vector<12x64xf32> -> vector<12x64xf32>
    %574 = arith.addf %569, %573 : vector<12x64xf32>
    %575 = vector.extract_strided_slice %554 {offsets = [0, 0], sizes = [12, 32], strides = [1, 1]} : vector<14x32xf32> to vector<12x32xf32>
    %c3_509 = arith.constant 3 : index
    %c0_510 = arith.constant 0 : index
    %c0_511 = arith.constant 0 : index
    %576 = vector.load %arg2[%c3_509, %c0_510, %c0_511] : memref<9x32x64xf32, #tpu.memory_space<vmem>>, vector<1x32x64xf32>
    %577 = vector.shape_cast %576 : vector<1x32x64xf32> to vector<32x64xf32>
    %cst_512 = arith.constant dense<0.000000e+00> : vector<12x64xf32>
    %578 = tpu.matmul %575, %577, %cst_512 {dimension_numbers = #tpu.dot_dimension_numbers<[1], [0], [0], [1], [0, 0, 1, 1], [], []>} : vector<12x32xf32>, vector<32x64xf32>, vector<12x64xf32> -> vector<12x64xf32>
    %579 = arith.addf %574, %578 : vector<12x64xf32>
    %580 = vector.extract_strided_slice %554 {offsets = [1, 0], sizes = [12, 32], strides = [1, 1]} : vector<14x32xf32> to vector<12x32xf32>
    %c4_513 = arith.constant 4 : index
    %c0_514 = arith.constant 0 : index
    %c0_515 = arith.constant 0 : index
    %581 = vector.load %arg2[%c4_513, %c0_514, %c0_515] : memref<9x32x64xf32, #tpu.memory_space<vmem>>, vector<1x32x64xf32>
    %582 = vector.shape_cast %581 : vector<1x32x64xf32> to vector<32x64xf32>
    %cst_516 = arith.constant dense<0.000000e+00> : vector<12x64xf32>
    %583 = tpu.matmul %580, %582, %cst_516 {dimension_numbers = #tpu.dot_dimension_numbers<[1], [0], [0], [1], [0, 0, 1, 1], [], []>} : vector<12x32xf32>, vector<32x64xf32>, vector<12x64xf32> -> vector<12x64xf32>
    %584 = arith.addf %579, %583 : vector<12x64xf32>
    %585 = vector.extract_strided_slice %554 {offsets = [2, 0], sizes = [12, 32], strides = [1, 1]} : vector<14x32xf32> to vector<12x32xf32>
    %c5_517 = arith.constant 5 : index
    %c0_518 = arith.constant 0 : index
    %c0_519 = arith.constant 0 : index
    %586 = vector.load %arg2[%c5_517, %c0_518, %c0_519] : memref<9x32x64xf32, #tpu.memory_space<vmem>>, vector<1x32x64xf32>
    %587 = vector.shape_cast %586 : vector<1x32x64xf32> to vector<32x64xf32>
    %cst_520 = arith.constant dense<0.000000e+00> : vector<12x64xf32>
    %588 = tpu.matmul %585, %587, %cst_520 {dimension_numbers = #tpu.dot_dimension_numbers<[1], [0], [0], [1], [0, 0, 1, 1], [], []>} : vector<12x32xf32>, vector<32x64xf32>, vector<12x64xf32> -> vector<12x64xf32>
    %589 = arith.addf %584, %588 : vector<12x64xf32>
    %590 = vector.extract_strided_slice %556 {offsets = [0, 0], sizes = [12, 32], strides = [1, 1]} : vector<14x32xf32> to vector<12x32xf32>
    %c6_521 = arith.constant 6 : index
    %c0_522 = arith.constant 0 : index
    %c0_523 = arith.constant 0 : index
    %591 = vector.load %arg2[%c6_521, %c0_522, %c0_523] : memref<9x32x64xf32, #tpu.memory_space<vmem>>, vector<1x32x64xf32>
    %592 = vector.shape_cast %591 : vector<1x32x64xf32> to vector<32x64xf32>
    %cst_524 = arith.constant dense<0.000000e+00> : vector<12x64xf32>
    %593 = tpu.matmul %590, %592, %cst_524 {dimension_numbers = #tpu.dot_dimension_numbers<[1], [0], [0], [1], [0, 0, 1, 1], [], []>} : vector<12x32xf32>, vector<32x64xf32>, vector<12x64xf32> -> vector<12x64xf32>
    %594 = arith.addf %589, %593 : vector<12x64xf32>
    %595 = vector.extract_strided_slice %556 {offsets = [1, 0], sizes = [12, 32], strides = [1, 1]} : vector<14x32xf32> to vector<12x32xf32>
    %c7_525 = arith.constant 7 : index
    %c0_526 = arith.constant 0 : index
    %c0_527 = arith.constant 0 : index
    %596 = vector.load %arg2[%c7_525, %c0_526, %c0_527] : memref<9x32x64xf32, #tpu.memory_space<vmem>>, vector<1x32x64xf32>
    %597 = vector.shape_cast %596 : vector<1x32x64xf32> to vector<32x64xf32>
    %cst_528 = arith.constant dense<0.000000e+00> : vector<12x64xf32>
    %598 = tpu.matmul %595, %597, %cst_528 {dimension_numbers = #tpu.dot_dimension_numbers<[1], [0], [0], [1], [0, 0, 1, 1], [], []>} : vector<12x32xf32>, vector<32x64xf32>, vector<12x64xf32> -> vector<12x64xf32>
    %599 = arith.addf %594, %598 : vector<12x64xf32>
    %600 = vector.extract_strided_slice %556 {offsets = [2, 0], sizes = [12, 32], strides = [1, 1]} : vector<14x32xf32> to vector<12x32xf32>
    %c8_529 = arith.constant 8 : index
    %c0_530 = arith.constant 0 : index
    %c0_531 = arith.constant 0 : index
    %601 = vector.load %arg2[%c8_529, %c0_530, %c0_531] : memref<9x32x64xf32, #tpu.memory_space<vmem>>, vector<1x32x64xf32>
    %602 = vector.shape_cast %601 : vector<1x32x64xf32> to vector<32x64xf32>
    %cst_532 = arith.constant dense<0.000000e+00> : vector<12x64xf32>
    %603 = tpu.matmul %600, %602, %cst_532 {dimension_numbers = #tpu.dot_dimension_numbers<[1], [0], [0], [1], [0, 0, 1, 1], [], []>} : vector<12x32xf32>, vector<32x64xf32>, vector<12x64xf32> -> vector<12x64xf32>
    %604 = arith.addf %599, %603 : vector<12x64xf32>
    %cst_533 = arith.constant 0.000000e+00 : f32
    %605 = vector.broadcast %cst_533 : f32 to vector<12x64xf32>
    %606 = vector.extract_strided_slice %554 {offsets = [0, 0], sizes = [12, 32], strides = [1, 1]} : vector<14x32xf32> to vector<12x32xf32>
    %c0_534 = arith.constant 0 : index
    %c0_535 = arith.constant 0 : index
    %c0_536 = arith.constant 0 : index
    %607 = vector.load %arg2[%c0_534, %c0_535, %c0_536] : memref<9x32x64xf32, #tpu.memory_space<vmem>>, vector<1x32x64xf32>
    %608 = vector.shape_cast %607 : vector<1x32x64xf32> to vector<32x64xf32>
    %cst_537 = arith.constant dense<0.000000e+00> : vector<12x64xf32>
    %609 = tpu.matmul %606, %608, %cst_537 {dimension_numbers = #tpu.dot_dimension_numbers<[1], [0], [0], [1], [0, 0, 1, 1], [], []>} : vector<12x32xf32>, vector<32x64xf32>, vector<12x64xf32> -> vector<12x64xf32>
    %610 = arith.addf %605, %609 : vector<12x64xf32>
    %611 = vector.extract_strided_slice %554 {offsets = [1, 0], sizes = [12, 32], strides = [1, 1]} : vector<14x32xf32> to vector<12x32xf32>
    %c1_538 = arith.constant 1 : index
    %c0_539 = arith.constant 0 : index
    %c0_540 = arith.constant 0 : index
    %612 = vector.load %arg2[%c1_538, %c0_539, %c0_540] : memref<9x32x64xf32, #tpu.memory_space<vmem>>, vector<1x32x64xf32>
    %613 = vector.shape_cast %612 : vector<1x32x64xf32> to vector<32x64xf32>
    %cst_541 = arith.constant dense<0.000000e+00> : vector<12x64xf32>
    %614 = tpu.matmul %611, %613, %cst_541 {dimension_numbers = #tpu.dot_dimension_numbers<[1], [0], [0], [1], [0, 0, 1, 1], [], []>} : vector<12x32xf32>, vector<32x64xf32>, vector<12x64xf32> -> vector<12x64xf32>
    %615 = arith.addf %610, %614 : vector<12x64xf32>
    %616 = vector.extract_strided_slice %554 {offsets = [2, 0], sizes = [12, 32], strides = [1, 1]} : vector<14x32xf32> to vector<12x32xf32>
    %c2_542 = arith.constant 2 : index
    %c0_543 = arith.constant 0 : index
    %c0_544 = arith.constant 0 : index
    %617 = vector.load %arg2[%c2_542, %c0_543, %c0_544] : memref<9x32x64xf32, #tpu.memory_space<vmem>>, vector<1x32x64xf32>
    %618 = vector.shape_cast %617 : vector<1x32x64xf32> to vector<32x64xf32>
    %cst_545 = arith.constant dense<0.000000e+00> : vector<12x64xf32>
    %619 = tpu.matmul %616, %618, %cst_545 {dimension_numbers = #tpu.dot_dimension_numbers<[1], [0], [0], [1], [0, 0, 1, 1], [], []>} : vector<12x32xf32>, vector<32x64xf32>, vector<12x64xf32> -> vector<12x64xf32>
    %620 = arith.addf %615, %619 : vector<12x64xf32>
    %621 = vector.extract_strided_slice %556 {offsets = [0, 0], sizes = [12, 32], strides = [1, 1]} : vector<14x32xf32> to vector<12x32xf32>
    %c3_546 = arith.constant 3 : index
    %c0_547 = arith.constant 0 : index
    %c0_548 = arith.constant 0 : index
    %622 = vector.load %arg2[%c3_546, %c0_547, %c0_548] : memref<9x32x64xf32, #tpu.memory_space<vmem>>, vector<1x32x64xf32>
    %623 = vector.shape_cast %622 : vector<1x32x64xf32> to vector<32x64xf32>
    %cst_549 = arith.constant dense<0.000000e+00> : vector<12x64xf32>
    %624 = tpu.matmul %621, %623, %cst_549 {dimension_numbers = #tpu.dot_dimension_numbers<[1], [0], [0], [1], [0, 0, 1, 1], [], []>} : vector<12x32xf32>, vector<32x64xf32>, vector<12x64xf32> -> vector<12x64xf32>
    %625 = arith.addf %620, %624 : vector<12x64xf32>
    %626 = vector.extract_strided_slice %556 {offsets = [1, 0], sizes = [12, 32], strides = [1, 1]} : vector<14x32xf32> to vector<12x32xf32>
    %c4_550 = arith.constant 4 : index
    %c0_551 = arith.constant 0 : index
    %c0_552 = arith.constant 0 : index
    %627 = vector.load %arg2[%c4_550, %c0_551, %c0_552] : memref<9x32x64xf32, #tpu.memory_space<vmem>>, vector<1x32x64xf32>
    %628 = vector.shape_cast %627 : vector<1x32x64xf32> to vector<32x64xf32>
    %cst_553 = arith.constant dense<0.000000e+00> : vector<12x64xf32>
    %629 = tpu.matmul %626, %628, %cst_553 {dimension_numbers = #tpu.dot_dimension_numbers<[1], [0], [0], [1], [0, 0, 1, 1], [], []>} : vector<12x32xf32>, vector<32x64xf32>, vector<12x64xf32> -> vector<12x64xf32>
    %630 = arith.addf %625, %629 : vector<12x64xf32>
    %631 = vector.extract_strided_slice %556 {offsets = [2, 0], sizes = [12, 32], strides = [1, 1]} : vector<14x32xf32> to vector<12x32xf32>
    %c5_554 = arith.constant 5 : index
    %c0_555 = arith.constant 0 : index
    %c0_556 = arith.constant 0 : index
    %632 = vector.load %arg2[%c5_554, %c0_555, %c0_556] : memref<9x32x64xf32, #tpu.memory_space<vmem>>, vector<1x32x64xf32>
    %633 = vector.shape_cast %632 : vector<1x32x64xf32> to vector<32x64xf32>
    %cst_557 = arith.constant dense<0.000000e+00> : vector<12x64xf32>
    %634 = tpu.matmul %631, %633, %cst_557 {dimension_numbers = #tpu.dot_dimension_numbers<[1], [0], [0], [1], [0, 0, 1, 1], [], []>} : vector<12x32xf32>, vector<32x64xf32>, vector<12x64xf32> -> vector<12x64xf32>
    %635 = arith.addf %630, %634 : vector<12x64xf32>
    %636 = vector.extract_strided_slice %558 {offsets = [0, 0], sizes = [12, 32], strides = [1, 1]} : vector<14x32xf32> to vector<12x32xf32>
    %c6_558 = arith.constant 6 : index
    %c0_559 = arith.constant 0 : index
    %c0_560 = arith.constant 0 : index
    %637 = vector.load %arg2[%c6_558, %c0_559, %c0_560] : memref<9x32x64xf32, #tpu.memory_space<vmem>>, vector<1x32x64xf32>
    %638 = vector.shape_cast %637 : vector<1x32x64xf32> to vector<32x64xf32>
    %cst_561 = arith.constant dense<0.000000e+00> : vector<12x64xf32>
    %639 = tpu.matmul %636, %638, %cst_561 {dimension_numbers = #tpu.dot_dimension_numbers<[1], [0], [0], [1], [0, 0, 1, 1], [], []>} : vector<12x32xf32>, vector<32x64xf32>, vector<12x64xf32> -> vector<12x64xf32>
    %640 = arith.addf %635, %639 : vector<12x64xf32>
    %641 = vector.extract_strided_slice %558 {offsets = [1, 0], sizes = [12, 32], strides = [1, 1]} : vector<14x32xf32> to vector<12x32xf32>
    %c7_562 = arith.constant 7 : index
    %c0_563 = arith.constant 0 : index
    %c0_564 = arith.constant 0 : index
    %642 = vector.load %arg2[%c7_562, %c0_563, %c0_564] : memref<9x32x64xf32, #tpu.memory_space<vmem>>, vector<1x32x64xf32>
    %643 = vector.shape_cast %642 : vector<1x32x64xf32> to vector<32x64xf32>
    %cst_565 = arith.constant dense<0.000000e+00> : vector<12x64xf32>
    %644 = tpu.matmul %641, %643, %cst_565 {dimension_numbers = #tpu.dot_dimension_numbers<[1], [0], [0], [1], [0, 0, 1, 1], [], []>} : vector<12x32xf32>, vector<32x64xf32>, vector<12x64xf32> -> vector<12x64xf32>
    %645 = arith.addf %640, %644 : vector<12x64xf32>
    %646 = vector.extract_strided_slice %558 {offsets = [2, 0], sizes = [12, 32], strides = [1, 1]} : vector<14x32xf32> to vector<12x32xf32>
    %c8_566 = arith.constant 8 : index
    %c0_567 = arith.constant 0 : index
    %c0_568 = arith.constant 0 : index
    %647 = vector.load %arg2[%c8_566, %c0_567, %c0_568] : memref<9x32x64xf32, #tpu.memory_space<vmem>>, vector<1x32x64xf32>
    %648 = vector.shape_cast %647 : vector<1x32x64xf32> to vector<32x64xf32>
    %cst_569 = arith.constant dense<0.000000e+00> : vector<12x64xf32>
    %649 = tpu.matmul %646, %648, %cst_569 {dimension_numbers = #tpu.dot_dimension_numbers<[1], [0], [0], [1], [0, 0, 1, 1], [], []>} : vector<12x32xf32>, vector<32x64xf32>, vector<12x64xf32> -> vector<12x64xf32>
    %650 = arith.addf %645, %649 : vector<12x64xf32>
    %651 = arith.maximumf %604, %650 : vector<12x64xf32>
    %c0_570 = arith.constant 0 : index
    %c0_571 = arith.constant 0 : index
    %652 = vector.load %arg5[%c0_570, %c0_571] : memref<12x64xf32, #tpu.memory_space<vmem>>, vector<12x64xf32>
    tpu.vector_store %arg5[%c0_570, %c0_571], %651 {strides = array<i32>} : memref<12x64xf32, #tpu.memory_space<vmem>>, vector<12x64xf32>,
    %c0_572 = arith.constant 0 : index
    %c0_573 = arith.constant 0 : index
    %653 = tpu.strided_load %arg5[%c0_572, %c0_573] {strides = array<i32: 2, 1>} : memref<12x64xf32, #tpu.memory_space<vmem>>, vector<6x64xf32>
    %c1_574 = arith.constant 1 : index
    %c0_575 = arith.constant 0 : index
    %654 = tpu.strided_load %arg5[%c1_574, %c0_575] {strides = array<i32: 2, 1>} : memref<12x64xf32, #tpu.memory_space<vmem>>, vector<6x64xf32>
    %655 = arith.maximumf %653, %654 : vector<6x64xf32>
    %656 = vector.broadcast %0 : vector<1x64xf32> to vector<6x64xf32>
    %657 = arith.addf %655, %656 : vector<6x64xf32>
    %c0_576 = arith.constant 0 : index
    %c30 = arith.constant 30 : index
    %c0_577 = arith.constant 0 : index
    %658 = vector.load %arg4[%c0_576, %c30, %c0_577] : memref<1x36x64xf32, #tpu.memory_space<vmem>>, vector<1x6x64xf32>
    %659 = vector.shape_cast %658 : vector<1x6x64xf32> to vector<6x64xf32>
    %660 = vector.shape_cast %657 : vector<6x64xf32> to vector<1x6x64xf32>
    tpu.vector_store %arg4[%c0_576, %c30, %c0_577], %660 {strides = array<i32>} : memref<1x36x64xf32, #tpu.memory_space<vmem>>, vector<1x6x64xf32>,
    return
  }
  func.func @transform_0(%arg0: i32) -> (i32, i32, i32, i32) {
    %c0_i32 = arith.constant 0 : i32
    %c0_i32_0 = arith.constant 0 : i32
    %c0_i32_1 = arith.constant 0 : i32
    %c0_i32_2 = arith.constant 0 : i32
    return %arg0, %c0_i32, %c0_i32_0, %c0_i32_1 : i32, i32, i32, i32
  }
  func.func @transform_1(%arg0: i32) -> (i32, i32, i32) {
    %c0_i32 = arith.constant 0 : i32
    %c0_i32_0 = arith.constant 0 : i32
    %c0_i32_1 = arith.constant 0 : i32
    %c0_i32_2 = arith.constant 0 : i32
    return %c0_i32, %c0_i32_0, %c0_i32_1 : i32, i32, i32
  }
  func.func @transform_2(%arg0: i32) -> (i32, i32) {
    %c0_i32 = arith.constant 0 : i32
    %c0_i32_0 = arith.constant 0 : i32
    %c0_i32_1 = arith.constant 0 : i32
    return %c0_i32, %c0_i32_0 : i32, i32
  }
  func.func @transform_3(%arg0: i32) -> (i32, i32, i32) {
    %c0_i32 = arith.constant 0 : i32
    %c0_i32_0 = arith.constant 0 : i32
    %c0_i32_1 = arith.constant 0 : i32
    return %arg0, %c0_i32, %c0_i32_0 : i32, i32, i32
  }
}

module attributes {stable_mosaic.version = 11 : i64} {
  func.func @_matmul_bias_kernel(%arg0: i32, %arg1: i32, %arg2: i32, %arg3: memref<8x512xf32, #tpu.memory_space<vmem>>, %arg4: memref<512x128xf32, #tpu.memory_space<vmem>>, %arg5: memref<1x128xf32, #tpu.memory_space<vmem>>, %arg6: memref<8x128xf32, #tpu.memory_space<vmem>>, %arg7: memref<8x128xf32, #tpu.memory_space<vmem>>) attributes {dimension_semantics = [#tpu.dimension_semantics<parallel>, #tpu.dimension_semantics<parallel>, #tpu.dimension_semantics<arbitrary>], iteration_bounds = array<i64: 1, 1, 5>, scalar_prefetch = 0 : i64, scratch_operands = 1 : i64, tpu.core_type = #tpu.core_type<tc>, window_params = [{transform_indices = @transform_0, window_bounds = array<i64: 8, 512>}, {transform_indices = @transform_1, window_bounds = array<i64: 512, 128>}, {transform_indices = @transform_2, window_bounds = array<i64: 1, 128>}, {transform_indices = @transform_3, window_bounds = array<i64: 8, 128>}]} {
    %c0_i32 = arith.constant 0 : i32
    %0 = arith.cmpi eq, %arg2, %c0_i32 : i32
    %1 = arith.extui %0 : i1 to i32
    %c0_i32_0 = arith.constant 0 : i32
    %2 = arith.cmpi ne, %1, %c0_i32_0 : i32
    scf.if %2 {
      %c0_9 = arith.constant 0 : index
      %c0_10 = arith.constant 0 : index
      %12 = vector.load %arg5[%c0_9, %c0_10] : memref<1x128xf32, #tpu.memory_space<vmem>>, vector<1x128xf32>
      %13 = vector.shape_cast %12 : vector<1x128xf32> to vector<1x128xf32>
      %14 = vector.broadcast %13 : vector<1x128xf32> to vector<8x128xf32>
      %c0_11 = arith.constant 0 : index
      %c0_12 = arith.constant 0 : index
      %15 = vector.load %arg7[%c0_11, %c0_12] : memref<8x128xf32, #tpu.memory_space<vmem>>, vector<8x128xf32>
      tpu.vector_store %arg7[%c0_11, %c0_12], %14 {strides = array<i32>} : memref<8x128xf32, #tpu.memory_space<vmem>>, vector<8x128xf32>,
    } else {
    }
    %c0 = arith.constant 0 : index
    %c0_1 = arith.constant 0 : index
    %3 = vector.load %arg7[%c0, %c0_1] : memref<8x128xf32, #tpu.memory_space<vmem>>, vector<8x128xf32>
    %c0_2 = arith.constant 0 : index
    %c0_3 = arith.constant 0 : index
    %4 = vector.load %arg3[%c0_2, %c0_3] : memref<8x512xf32, #tpu.memory_space<vmem>>, vector<8x512xf32>
    %c0_4 = arith.constant 0 : index
    %c0_5 = arith.constant 0 : index
    %5 = vector.load %arg4[%c0_4, %c0_5] : memref<512x128xf32, #tpu.memory_space<vmem>>, vector<512x128xf32>
    %cst = arith.constant dense<0.000000e+00> : vector<8x128xf32>
    %6 = tpu.matmul %4, %5, %cst {dimension_numbers = #tpu.dot_dimension_numbers<[1], [0], [0], [1], [0, 0, 1, 1], [], []>} : vector<8x512xf32>, vector<512x128xf32>, vector<8x128xf32> -> vector<8x128xf32>
    %7 = arith.addf %3, %6 : vector<8x128xf32>
    %c0_6 = arith.constant 0 : index
    %c0_7 = arith.constant 0 : index
    %8 = vector.load %arg7[%c0_6, %c0_7] : memref<8x128xf32, #tpu.memory_space<vmem>>, vector<8x128xf32>
    tpu.vector_store %arg7[%c0_6, %c0_7], %7 {strides = array<i32>} : memref<8x128xf32, #tpu.memory_space<vmem>>, vector<8x128xf32>,
    %c4_i32 = arith.constant 4 : i32
    %9 = arith.cmpi eq, %arg2, %c4_i32 : i32
    %10 = arith.extui %9 : i1 to i32
    %c0_i32_8 = arith.constant 0 : i32
    %11 = arith.cmpi ne, %10, %c0_i32_8 : i32
    scf.if %11 {
      %c0_9 = arith.constant 0 : index
      %c0_10 = arith.constant 0 : index
      %12 = vector.load %arg7[%c0_9, %c0_10] : memref<8x128xf32, #tpu.memory_space<vmem>>, vector<8x128xf32>
      %c0_11 = arith.constant 0 : index
      %c0_12 = arith.constant 0 : index
      %13 = vector.load %arg6[%c0_11, %c0_12] : memref<8x128xf32, #tpu.memory_space<vmem>>, vector<8x128xf32>
      tpu.vector_store %arg6[%c0_11, %c0_12], %12 {strides = array<i32>} : memref<8x128xf32, #tpu.memory_space<vmem>>, vector<8x128xf32>,
    } else {
    }
    return
  }
  func.func @transform_0(%arg0: i32, %arg1: i32, %arg2: i32) -> (i32, i32) {
    %c0_i32 = arith.constant 0 : i32
    return %arg0, %arg2 : i32, i32
  }
  func.func @transform_1(%arg0: i32, %arg1: i32, %arg2: i32) -> (i32, i32) {
    %c0_i32 = arith.constant 0 : i32
    return %arg2, %arg1 : i32, i32
  }
  func.func @transform_2(%arg0: i32, %arg1: i32, %arg2: i32) -> (i32, i32) {
    %c0_i32 = arith.constant 0 : i32
    %c0_i32_0 = arith.constant 0 : i32
    return %c0_i32, %arg1 : i32, i32
  }
  func.func @transform_3(%arg0: i32, %arg1: i32, %arg2: i32) -> (i32, i32) {
    %c0_i32 = arith.constant 0 : i32
    return %arg0, %arg1 : i32, i32
  }
}

module attributes {stable_mosaic.version = 11 : i64} {
  func.func @_matmul_bias_kernel(%arg0: i32, %arg1: i32, %arg2: i32, %arg3: memref<8x128xf32, #tpu.memory_space<vmem>>, %arg4: memref<128x128xf32, #tpu.memory_space<vmem>>, %arg5: memref<1x128xf32, #tpu.memory_space<vmem>>, %arg6: memref<8x128xf32, #tpu.memory_space<vmem>>, %arg7: memref<8x128xf32, #tpu.memory_space<vmem>>) attributes {dimension_semantics = [#tpu.dimension_semantics<parallel>, #tpu.dimension_semantics<parallel>, #tpu.dimension_semantics<arbitrary>], iteration_bounds = array<i64: 1, 1, 1>, scalar_prefetch = 0 : i64, scratch_operands = 1 : i64, tpu.core_type = #tpu.core_type<tc>, window_params = [{transform_indices = @transform_0, window_bounds = array<i64: 8, 128>}, {transform_indices = @transform_1, window_bounds = array<i64: 128, 128>}, {transform_indices = @transform_2, window_bounds = array<i64: 1, 128>}, {transform_indices = @transform_3, window_bounds = array<i64: 8, 128>}]} {
    %c0_i32 = arith.constant 0 : i32
    %0 = arith.cmpi eq, %arg2, %c0_i32 : i32
    %1 = arith.extui %0 : i1 to i32
    %c0_i32_0 = arith.constant 0 : i32
    %2 = arith.cmpi ne, %1, %c0_i32_0 : i32
    scf.if %2 {
      %c0_10 = arith.constant 0 : index
      %c0_11 = arith.constant 0 : index
      %12 = vector.load %arg5[%c0_10, %c0_11] : memref<1x128xf32, #tpu.memory_space<vmem>>, vector<1x128xf32>
      %13 = vector.shape_cast %12 : vector<1x128xf32> to vector<1x128xf32>
      %14 = vector.broadcast %13 : vector<1x128xf32> to vector<8x128xf32>
      %c0_12 = arith.constant 0 : index
      %c0_13 = arith.constant 0 : index
      %15 = vector.load %arg7[%c0_12, %c0_13] : memref<8x128xf32, #tpu.memory_space<vmem>>, vector<8x128xf32>
      tpu.vector_store %arg7[%c0_12, %c0_13], %14 {strides = array<i32>} : memref<8x128xf32, #tpu.memory_space<vmem>>, vector<8x128xf32>,
    } else {
    }
    %c0 = arith.constant 0 : index
    %c0_1 = arith.constant 0 : index
    %3 = vector.load %arg7[%c0, %c0_1] : memref<8x128xf32, #tpu.memory_space<vmem>>, vector<8x128xf32>
    %c0_2 = arith.constant 0 : index
    %c0_3 = arith.constant 0 : index
    %4 = vector.load %arg3[%c0_2, %c0_3] : memref<8x128xf32, #tpu.memory_space<vmem>>, vector<8x128xf32>
    %c0_4 = arith.constant 0 : index
    %c0_5 = arith.constant 0 : index
    %5 = vector.load %arg4[%c0_4, %c0_5] : memref<128x128xf32, #tpu.memory_space<vmem>>, vector<128x128xf32>
    %cst = arith.constant dense<0.000000e+00> : vector<8x128xf32>
    %6 = tpu.matmul %4, %5, %cst {dimension_numbers = #tpu.dot_dimension_numbers<[1], [0], [0], [1], [0, 0, 1, 1], [], []>} : vector<8x128xf32>, vector<128x128xf32>, vector<8x128xf32> -> vector<8x128xf32>
    %7 = arith.addf %3, %6 : vector<8x128xf32>
    %c0_6 = arith.constant 0 : index
    %c0_7 = arith.constant 0 : index
    %8 = vector.load %arg7[%c0_6, %c0_7] : memref<8x128xf32, #tpu.memory_space<vmem>>, vector<8x128xf32>
    tpu.vector_store %arg7[%c0_6, %c0_7], %7 {strides = array<i32>} : memref<8x128xf32, #tpu.memory_space<vmem>>, vector<8x128xf32>,
    %c0_i32_8 = arith.constant 0 : i32
    %9 = arith.cmpi eq, %arg2, %c0_i32_8 : i32
    %10 = arith.extui %9 : i1 to i32
    %c0_i32_9 = arith.constant 0 : i32
    %11 = arith.cmpi ne, %10, %c0_i32_9 : i32
    scf.if %11 {
      %c0_10 = arith.constant 0 : index
      %c0_11 = arith.constant 0 : index
      %12 = vector.load %arg7[%c0_10, %c0_11] : memref<8x128xf32, #tpu.memory_space<vmem>>, vector<8x128xf32>
      %c0_12 = arith.constant 0 : index
      %c0_13 = arith.constant 0 : index
      %13 = vector.load %arg6[%c0_12, %c0_13] : memref<8x128xf32, #tpu.memory_space<vmem>>, vector<8x128xf32>
      tpu.vector_store %arg6[%c0_12, %c0_13], %12 {strides = array<i32>} : memref<8x128xf32, #tpu.memory_space<vmem>>, vector<8x128xf32>,
    } else {
    }
    return
  }
  func.func @transform_0(%arg0: i32, %arg1: i32, %arg2: i32) -> (i32, i32) {
    %c0_i32 = arith.constant 0 : i32
    return %arg0, %arg2 : i32, i32
  }
  func.func @transform_1(%arg0: i32, %arg1: i32, %arg2: i32) -> (i32, i32) {
    %c0_i32 = arith.constant 0 : i32
    return %arg2, %arg1 : i32, i32
  }
  func.func @transform_2(%arg0: i32, %arg1: i32, %arg2: i32) -> (i32, i32) {
    %c0_i32 = arith.constant 0 : i32
    %c0_i32_0 = arith.constant 0 : i32
    return %c0_i32, %arg1 : i32, i32
  }
  func.func @transform_3(%arg0: i32, %arg1: i32, %arg2: i32) -> (i32, i32) {
    %c0_i32 = arith.constant 0 : i32
    return %arg0, %arg1 : i32, i32
  }
}

</mosaic_0001>

<bundles_post_ra>
// kernel: regression_head_forward.5
= control target key start
LH: loop header
LB: loop body
LE: loop exit
PB: predicated region body
PF: predicated region fallthrough
CT: control target
= control target key end

     0   :  { %v205_v0 = vmov 0.0|0.0   ;;  %vm206_vm0 = vmmov 0   ;;  %v207_v4 = vmov 0.0   ;;  %s285_s1 = inlined_call_operand.vmem [shape: f32[128,128], index: 1, kind: input, shape index: {}]   ;;  %s286_s0 = inlined_call_operand.vmem [shape: f32[8,128], index: 0, kind: input, shape index: {}]   ;;  %s287_s2 = inlined_call_operand.vmem [shape: f32[1,128], index: 2, kind: input, shape index: {}]   ;;  %s288_s3 = inlined_call_operand.vmem [shape: f32[8,128], index: 3, kind: output, shape index: {}]  }
   0x1   :  { %178 = vmatprep.subr.bf16.mxu0 %v205_v0  ;;  %v28_v1 = vld [vmem:[%s285_s1] sm:$0xff]  ;;  %v29_v2 = vld [vmem:[%s285_s1 + $0x8] sm:$0xff]  ;;  %v30_v3 = vld [vmem:[%s285_s1 + $0x10] sm:$0xff]  ;;  %175 = vmatprep.mubr.msk.f32.mxu0 %vm206_vm0, %v207_v4 }
   0x2   :  { %v179_v5 = vpack.c.bf16 %v29_v2, %v28_v1  ;;  %v31_v6 = vld [vmem:[%s285_s1 + $0x18] sm:$0xff]  ;;  %v32_v8 = vld [vmem:[%s285_s1 + $0x20] sm:$0xff]  ;;  %v33_v9 = vld [vmem:[%s285_s1 + $0x28] sm:$0xff] }
   0x3   :  { %v182_v7 = vpack.c.bf16 %v31_v6, %v30_v3  ;;  %v185_v10 = vpack.c.bf16 %v33_v9, %v32_v8  ;;  %v34_v11 = vld [vmem:[%s285_s1 + $0x30] sm:$0xff]  ;;  %v35_v12 = vld [vmem:[%s285_s1 + $0x38] sm:$0xff]  ;;  %v36_v14 = vld [vmem:[%s285_s1 + $0x40] sm:$0xff] }
   0x4   :  { %180 = vmatpush3.bf16.msra.mxu0 %v179_v5  ;;  %v188_v13 = vpack.c.bf16 %v35_v12, %v34_v11  ;;  %v37_v15 = vld [vmem:[%s285_s1 + $0x48] sm:$0xff]  ;;  %v38_v17 = vld [vmem:[%s285_s1 + $0x50] sm:$0xff]  ;;  %v39_v18 = vld [vmem:[%s285_s1 + $0x58] sm:$0xff] }
   0x5   :  { %181 = vmatprep.subr.bf16.mxu0 %v205_v0  ;;  %v191_v16 = vpack.c.bf16 %v37_v15, %v36_v14  ;;  %v194_v19 = vpack.c.bf16 %v39_v18, %v38_v17  ;;  %v40_v20 = vld [vmem:[%s285_s1 + $0x60] sm:$0xff]  ;;  %v41_v21 = vld [vmem:[%s285_s1 + $0x68] sm:$0xff]  ;;  %v42_v23 = vld [vmem:[%s285_s1 + $0x70] sm:$0xff] }
   0x6   :  { %v197_v22 = vpack.c.bf16 %v41_v21, %v40_v20  ;;  %v43_v24 = vld [vmem:[%s285_s1 + $0x78] sm:$0xff]  ;;  %v27_v26 = vld [vmem:[%s286_s0] sm:$0xff] }
   0x7   :  { %v200_v25 = vpack.c.bf16 %v43_v24, %v42_v23  ;;  %v125_v27 = vld [vmem:[%s287_s2] ss:$0 sm:$0xff] }
   0x8   :  { %183 = vmatpush3.bf16.msra.mxu0 %v182_v7 }
   0x9   :  { %184 = vmatprep.subr.bf16.mxu0 %v205_v0 }
   0xc   :  { %186 = vmatpush3.bf16.msra.mxu0 %v185_v10 }
   0xd   :  { %187 = vmatprep.subr.bf16.mxu0 %v205_v0 }
  0x10   :  { %189 = vmatpush3.bf16.msra.mxu0 %v188_v13 }
  0x11   :  { %190 = vmatprep.subr.bf16.mxu0 %v205_v0 }
  0x14   :  { %192 = vmatpush3.bf16.msra.mxu0 %v191_v16 }
  0x15   :  { %193 = vmatprep.subr.bf16.mxu0 %v205_v0 }
  0x18   :  { %195 = vmatpush3.bf16.msra.mxu0 %v194_v19 }
  0x19   :  { %196 = vmatprep.subr.bf16.mxu0 %v205_v0 }
  0x1c   :  { %198 = vmatpush3.bf16.msra.mxu0 %v197_v22 }
  0x1d   :  { %199 = vmatprep.subr.bf16.mxu0 %v205_v0 }
  0x20   :  { %201 = vmatpush3.bf16.msra.mxu0 %v200_v25 }
  0x23   :  { %176 = vmatmul.mubr.f32.vlgmr.msra.gmra.mrb[0].mxu0 %v27_v26 }
  0xf6   :  { %v110_v28 = vpop.f32.mrb[0].mxu0 }
  0xf7   :  { %v114_v29 = vadd.f32 %v125_v27, %v110_v28  ;;  %v177_v30 = vpop.f32.mrb[1].mxu0 }
  0xf9   :  { %120 = vst [vmem:[%s288_s3] sm:$0xff] %v114_v29 }

// kernel: regression_head_forward.4
= control target key start
LH: loop header
LB: loop body
LE: loop exit
PB: predicated region body
PF: predicated region fallthrough
CT: control target
= control target key end

     0   :  { %s810_s12 = smov 0   ;;  %s812_s13 = smov 0   ;;  %s927_s0 = inlined_call_operand.vmem [shape: f32[8,2560], index: 0, kind: input, shape index: {}]   ;;  %s928_s1 = inlined_call_operand.vmem [shape: f32[2560,128], index: 1, kind: input, shape index: {}]   ;;  %s929_s2 = inlined_call_operand.vmem [shape: f32[1,128], index: 2, kind: input, shape index: {}]   ;;  %s930_s3 = inlined_call_operand.vmem [shape: f32[8,128], index: 3, kind: output, shape index: {}]  }
   0x1   :  { %s814_s14 = smov 0  }
   0x2 LB: > { %s25_s15 = sadd.s32 1, %s784_s13  ;;  %p597_p0 = scmp.ge.s32.totalorder %s788_s14, 1  ;;  %s788_s14 = sphi %s814_s14, %s13_s14   ;;  %s784_s13 = sphi %s812_s13, %s932_s13   ;;  %s780_s12 = sphi %s810_s12, %s931_s12  }
   0x3   : > { %p26_p1 = scmp.ge.s32.totalorder %s25_s15, 5  ;;  %p189_p2 = scmp.lt.s32.totalorder %s788_s14, 6 }
   0x5   : > { %s934_s15 = smov (%p26_p1, %s25_s15), 0  ;;  %p190_p3 = pnand %p597_p0, %p189_p2 }
   0x6   : > { %s598_s16 = sshll.u32 (!%p190_p3), %s780_s12, 2  ;;  %s600_s17 = sshll.u32 (!%p190_p3), %s780_s12, 6 }
   0x7   : > { %193 = sbr.rel (%p190_p3) target bundleno = 289 (0x121), region = 32  ;;  %p233_p4 = scmp.lt.s32.totalorder (!%p190_p3), %s598_s16, 19 }
   0x8   : > { %p241_p5 = scmp.lt.s32.totalorder (!%p190_p3), %s600_s17, 319  ;;  %p602_p6 = scmp.ne.s32.totalorder (!%p190_p3), %s780_s12, 0 }
   0xe   : > { %s936_s16 = smov (!%p233_p4, %s598_s16), 19  ;;  %s938_s17 = smov (!%p241_p5, %s600_s17), 319 }
   0xf   : > { %s599_s18 = sshll.u32 %s936_s16, 3  ;;  %s601_s22 = sshll.u32 %s938_s17, 3  ;;  %v603_v0 = vld [vmem:[%s929_s2] ss:$0 sm:$0xff] (!%p602_p6) }
  0x10   : > { %s835_s21 = scalar_lea.vmem %s927_s0, %s599_s18  ;;  %s840_s25 = scalar_lea.vmem %s928_s1, %s601_s22  ;;  %270 = vst [vmem:[#allocation2] sm:$0xff] (!%p602_p6), %v603_v0 }
  0x11   : > { %262 = sbr.rel (%p602_p6) target bundleno = 24 (0x18), region = 36 }
  0x18 PF: > { %v292_v1 = vld [vmem:[%s840_s25 + $0x80] sm:$0xff]  ;;  %v293_v2 = vld [vmem:[%s840_s25 + $0x88] sm:$0xff]  ;;  %v294_v12 = vld [vmem:[%s840_s25 + $0x90] sm:$0xff]  ;;  %p604_p7 = scmp.ne.s32.totalorder %s780_s12, 4 }
  0x19   : > { %v324_v3 = vld [vmem:[%s840_s25 + $0x180] sm:$0xff]  ;;  %v678_v4 = vpack.c.bf16 %v293_v2, %v292_v1  ;;  %v325_v5 = vld [vmem:[%s840_s25 + $0x188] sm:$0xff]  ;;  %v295_v14 = vld [vmem:[%s840_s25 + $0x98] sm:$0xff] }
  0x1a   : > { %v276_v6 = vld [vmem:[%s840_s25] sm:$0xff]  ;;  %v277_v7 = vld [vmem:[%s840_s25 + $0x8] sm:$0xff]  ;;  %v710_v8 = vpack.c.bf16 %v325_v5, %v324_v3  ;;  %v326_v15 = vld [vmem:[%s840_s25 + $0x190] sm:$0xff]  ;;  %v682_v17 = vpack.c.bf16 %v295_v14, %v294_v12 }
  0x1b   : > { %v680_v9 = vpack.c.bf16 %v277_v7, %v276_v6  ;;  %v308_v10 = vld [vmem:[%s840_s25 + $0x100] sm:$0xff]  ;;  %v309_v11 = vld [vmem:[%s840_s25 + $0x108] sm:$0xff]  ;;  %679 = vmatprep.subr.bf16.mxu0 %v678_v4  ;;  %v327_v16 = vld [vmem:[%s840_s25 + $0x198] sm:$0xff] }
  0x1c   : > { %v712_v13 = vpack.c.bf16 %v309_v11, %v308_v10  ;;  %711 = vmatprep.subr.bf16.mxu1 %v710_v8  ;;  %v714_v18 = vpack.c.bf16 %v327_v16, %v326_v15  ;;  %v278_v19 = vld [vmem:[%s840_s25 + $0x10] sm:$0xff]  ;;  %v279_v20 = vld [vmem:[%s840_s25 + $0x18] sm:$0xff]  ;;  %v296_v24 = vld [vmem:[%s840_s25 + $0xa0] sm:$0xff] }
  0x1d   : > { %681 = vmatpush3.bf16.msra.mxu0 %v680_v9  ;;  %v310_v21 = vld [vmem:[%s840_s25 + $0x110] sm:$0xff]  ;;  %v684_v22 = vpack.c.bf16 %v279_v20, %v278_v19  ;;  %v311_v23 = vld [vmem:[%s840_s25 + $0x118] sm:$0xff]  ;;  %v297_v25 = vld [vmem:[%s840_s25 + $0xa8] sm:$0xff] }
  0x1e   : > { %713 = vmatpush3.bf16.msra.mxu1 %v712_v13  ;;  %683 = vmatprep.subr.bf16.mxu0 %v682_v17  ;;  %v716_v26 = vpack.c.bf16 %v311_v23, %v310_v21  ;;  %v686_v27 = vpack.c.bf16 %v297_v25, %v296_v24  ;;  %v328_v28 = vld [vmem:[%s840_s25 + $0x1a0] sm:$0xff]  ;;  %v329_v29 = vld [vmem:[%s840_s25 + $0x1a8] sm:$0xff]  ;;  %v298_v36 = vld [vmem:[%s840_s25 + $0xb0] sm:$0xff] }
  0x1f   : > { %715 = vmatprep.subr.bf16.mxu1 %v714_v18  ;;  %v280_v30 = vld [vmem:[%s840_s25 + $0x20] sm:$0xff]  ;;  %v718_v31 = vpack.c.bf16 %v329_v29, %v328_v28  ;;  %v281_v32 = vld [vmem:[%s840_s25 + $0x28] sm:$0xff]  ;;  %v299_v37 = vld [vmem:[%s840_s25 + $0xb8] sm:$0xff] }
  0x20   : > { %v312_v33 = vld [vmem:[%s840_s25 + $0x120] sm:$0xff]  ;;  %v313_v34 = vld [vmem:[%s840_s25 + $0x128] sm:$0xff]  ;;  %v688_v35 = vpack.c.bf16 %v281_v32, %v280_v30  ;;  %v330_v38 = vld [vmem:[%s840_s25 + $0x1b0] sm:$0xff]  ;;  %v690_v40 = vpack.c.bf16 %v299_v37, %v298_v36 }
  0x21   : > { %685 = vmatpush3.bf16.msra.mxu0 %v684_v22  ;;  %v720_v39 = vpack.c.bf16 %v313_v34, %v312_v33  ;;  %v331_v41 = vld [vmem:[%s840_s25 + $0x1b8] sm:$0xff]  ;;  %v282_v42 = vld [vmem:[%s840_s25 + $0x30] sm:$0xff]  ;;  %v300_v47 = vld [vmem:[%s840_s25 + $0xc0] sm:$0xff] }
  0x22   : > { %717 = vmatpush3.bf16.msra.mxu1 %v716_v26  ;;  %687 = vmatprep.subr.bf16.mxu0 %v686_v27  ;;  %v283_v43 = vld [vmem:[%s840_s25 + $0x38] sm:$0xff]  ;;  %v722_v44 = vpack.c.bf16 %v331_v41, %v330_v38  ;;  %v314_v45 = vld [vmem:[%s840_s25 + $0x130] sm:$0xff]  ;;  %v301_v48 = vld [vmem:[%s840_s25 + $0xc8] sm:$0xff] }
  0x23   : > { %719 = vmatprep.subr.bf16.mxu1 %v718_v31  ;;  %v315_v46 = vld [vmem:[%s840_s25 + $0x138] sm:$0xff]  ;;  %v332_v49 = vld [vmem:[%s840_s25 + $0x1c0] sm:$0xff]  ;;  %v333_v50 = vld [vmem:[%s840_s25 + $0x1c8] sm:$0xff]  ;;  %v692_v51 = vpack.c.bf16 %v283_v43, %v282_v42  ;;  %v694_v53 = vpack.c.bf16 %v301_v48, %v300_v47 }
  0x24   : > { %v724_v52 = vpack.c.bf16 %v315_v46, %v314_v45  ;;  %v284_v54 = vld [vmem:[%s840_s25 + $0x40] sm:$0xff]  ;;  %v285_v55 = vld [vmem:[%s840_s25 + $0x48] sm:$0xff]  ;;  %v726_v57 = vpack.c.bf16 %v333_v50, %v332_v49  ;;  %v302_v59 = vld [vmem:[%s840_s25 + $0xd0] sm:$0xff] }
  0x25   : > { %689 = vmatpush3.bf16.msra.mxu0 %v688_v35  ;;  %v316_v56 = vld [vmem:[%s840_s25 + $0x140] sm:$0xff]  ;;  %v317_v58 = vld [vmem:[%s840_s25 + $0x148] sm:$0xff]  ;;  %v303_v60 = vld [vmem:[%s840_s25 + $0xd8] sm:$0xff]  ;;  %v696_v63 = vpack.c.bf16 %v285_v55, %v284_v54 }
  0x26   : > { %721 = vmatpush3.bf16.msra.mxu1 %v720_v39  ;;  %691 = vmatprep.subr.bf16.mxu0 %v690_v40  ;;  %v334_v61 = vld [vmem:[%s840_s25 + $0x1d0] sm:$0xff]  ;;  %v335_v62 = vld [vmem:[%s840_s25 + $0x1d8] sm:$0xff]  ;;  %v728_v0 = vpack.c.bf16 %v317_v58, %v316_v56  ;;  %v698_v1 = vpack.c.bf16 %v303_v60, %v302_v59  ;;  %v304_v7 = vld [vmem:[%s840_s25 + $0xe0] sm:$0xff] }
  0x27   : > { %723 = vmatprep.subr.bf16.mxu1 %v722_v44  ;;  %v286_v2 = vld [vmem:[%s840_s25 + $0x50] sm:$0xff]  ;;  %v287_v3 = vld [vmem:[%s840_s25 + $0x58] sm:$0xff]  ;;  %v730_v5 = vpack.c.bf16 %v335_v62, %v334_v61  ;;  %v305_v8 = vld [vmem:[%s840_s25 + $0xe8] sm:$0xff] }
  0x28   : > { %v318_v4 = vld [vmem:[%s840_s25 + $0x150] sm:$0xff]  ;;  %v319_v6 = vld [vmem:[%s840_s25 + $0x158] sm:$0xff]  ;;  %v336_v9 = vld [vmem:[%s840_s25 + $0x1e0] sm:$0xff]  ;;  %v700_v11 = vpack.c.bf16 %v287_v3, %v286_v2  ;;  %v702_v15 = vpack.c.bf16 %v305_v8, %v304_v7 }
  0x29   : > { %693 = vmatpush3.bf16.msra.mxu0 %v692_v51  ;;  %v337_v10 = vld [vmem:[%s840_s25 + $0x1e8] sm:$0xff]  ;;  %v288_v12 = vld [vmem:[%s840_s25 + $0x60] sm:$0xff]  ;;  %v732_v14 = vpack.c.bf16 %v319_v6, %v318_v4  ;;  %v275_v18 = vld [vmem:[%s835_s21 + $0x18] sm:$0xff] }
  0x2a   : > { %725 = vmatpush3.bf16.msra.mxu1 %v724_v52  ;;  %695 = vmatprep.subr.bf16.mxu0 %v694_v53  ;;  %v289_v13 = vld [vmem:[%s840_s25 + $0x68] sm:$0xff]  ;;  %v320_v16 = vld [vmem:[%s840_s25 + $0x160] sm:$0xff]  ;;  %v734_v19 = vpack.c.bf16 %v337_v10, %v336_v9  ;;  %v306_v21 = vld [vmem:[%s840_s25 + $0xf0] sm:$0xff] }
  0x2b   : > { %727 = vmatprep.subr.bf16.mxu1 %v726_v57  ;;  %v273_v17 = vld [vmem:[%s835_s21 + $0x8] sm:$0xff]  ;;  %v307_v22 = vld [vmem:[%s840_s25 + $0xf8] sm:$0xff]  ;;  %v338_v23 = vld [vmem:[%s840_s25 + $0x1f0] sm:$0xff]  ;;  %474 = vmatprep.mubr.f32.mxu1 %v275_v18  ;;  %v704_v25 = vpack.c.bf16 %v289_v13, %v288_v12 }
  0x2c   : > { %v321_v20 = vld [vmem:[%s840_s25 + $0x168] sm:$0xff]  ;;  %404 = vmatprep.mubr.f32.mxu0 %v273_v17  ;;  %v339_v24 = vld [vmem:[%s840_s25 + $0x1f8] sm:$0xff]  ;;  %v706_v27 = vpack.c.bf16 %v307_v22, %v306_v21  ;;  %v290_v28 = vld [vmem:[%s840_s25 + $0x70] sm:$0xff] }
  0x2d   : > { %697 = vmatpush3.bf16.msra.mxu0 %v696_v63  ;;  %v736_v26 = vpack.c.bf16 %v321_v20, %v320_v16  ;;  %v291_v29 = vld [vmem:[%s840_s25 + $0x78] sm:$0xff]  ;;  %v738_v30 = vpack.c.bf16 %v339_v24, %v338_v23  ;;  %v322_v31 = vld [vmem:[%s840_s25 + $0x170] sm:$0xff]  ;;  %v272_v35 = vld [vmem:[%s835_s21] sm:$0xff] }
  0x2e   : > { %729 = vmatpush3.bf16.msra.mxu1 %v728_v0  ;;  %699 = vmatprep.subr.bf16.mxu0 %v698_v1  ;;  %v323_v32 = vld [vmem:[%s840_s25 + $0x178] sm:$0xff]  ;;  %v708_v33 = vpack.c.bf16 %v291_v29, %v290_v28  ;;  %v274_v36 = vld [vmem:[%s835_s21 + $0x10] sm:$0xff]  ;;  %v271_v43 = vld [vmem:[#allocation2] sm:$0xff] }
  0x2f   : > { %731 = vmatprep.subr.bf16.mxu1 %v730_v5  ;;  %v740_v34 = vpack.c.bf16 %v323_v32, %v322_v31 }
  0x31   : > { %701 = vmatpush3.bf16.msra.mxu0 %v700_v11 }
  0x32   : > { %733 = vmatpush3.bf16.msra.mxu1 %v732_v14  ;;  %703 = vmatprep.subr.bf16.mxu0 %v702_v15 }
  0x33   : > { %735 = vmatprep.subr.bf16.mxu1 %v734_v19 }
  0x35   : > { %705 = vmatpush3.bf16.msra.mxu0 %v704_v25 }
  0x36   : > { %737 = vmatpush3.bf16.msra.mxu1 %v736_v26  ;;  %707 = vmatprep.subr.bf16.mxu0 %v706_v27 }
  0x37   : > { %739 = vmatprep.subr.bf16.mxu1 %v738_v30 }
  0x39   : > { %709 = vmatpush3.bf16.msra.mxu0 %v708_v33 }
  0x3a   : > { %741 = vmatpush3.bf16.msra.mxu1 %v740_v34 }
  0x3c   : > { %405 = vmatmul.mubr.f32.vlgmr.msra.gmra.mrb[0].mxu0 %v272_v35 }
  0x3d   : > { %475 = vmatmul.mubr.f32.vlgmr.msra.gmra.mrb[0].mxu1 %v274_v36 }
 0x10f   : > { %v640_v37 = vpop.f32.mrb[0].mxu0 }
 0x110   : > { %v675_v38 = vpop.f32.mrb[0].mxu1  ;;  %v641_v39 = vpop.f32.mrb[1].mxu0 }
 0x111   : > { %v642_v40 = vadd.f32 %v641_v39, %v640_v37  ;;  %v676_v41 = vpop.f32.mrb[1].mxu1 }
 0x112   : > { %v677_v42 = vadd.f32 %v676_v41, %v675_v38  ;;  %485 = sbr.rel (%p604_p7) target bundleno = 289 (0x121), region = 40 }
 0x114   : > { %v477_v44 = vadd.f32 %v677_v42, %v642_v40 }
 0x116   : > { %v480_v45 = vadd.f32 %v477_v44, %v271_v43 }
 0x118   : > { %481 = vst [vmem:[#allocation2] sm:$0xff] %v480_v45 }
 0x11f   : > { %v486_v46 = vld [vmem:[#allocation2] sm:$0xff] }
 0x120   : > { %487 = vst [vmem:[%s930_s3] sm:$0xff] %v486_v46 }
 0x121 PF: > { %s13_s14 = sadd.s32 1, %s788_s14   ;;  %s931_s12 = smov %s784_s13 }
 0x122   : > { %p10_p8 = scmp.ge.s32.totalorder %s13_s14, 7   ;;  %s932_s13 = smov %s934_s15 }
 0x124   :  { %12 = sbr.rel (!%p10_p8) target bundleno = 2 (0x2), region = 76 }

// kernel: regression_head_forward.3
= control target key start
LH: loop header
LB: loop body
LE: loop exit
PB: predicated region body
PF: predicated region fallthrough
CT: control target
= control target key end

     0   :  { %8 = vsyncpa [#allocation4], 0  ;;  %s13970_s0 = inlined_call_operand.vmem [shape: f32[2,14,14,32], index: 0, kind: input, shape index: {}]   ;;  %s13971_s1 = inlined_call_operand.hbm [shape: f32[9,32,64], index: 1, kind: input, shape index: {}]   ;;  %s13972_s2 = inlined_call_operand.hbm [shape: f32[1,64], index: 2, kind: input, shape index: {}]   ;;  %s13973_s3 = inlined_call_operand.vmem [shape: f32[2,36,64], index: 3, kind: output, shape index: {}]  }
   0x1   :  { %9 = vsyncpa [#allocation6], 0  ;;  %s12674_s12 = smov 0  }
   0x2 LB: > { %s12680_s13 = sadd.s32 4294967295, %s12648_s12   ;;  %p9379_p0 = scmp.ge.s32.totalorder %s12648_s12, 1  ;;  %s12648_s12 = sphi %s12674_s12, %s15_s12  }
   0x3   : > { %p114_p1 = scmp.lt.s32.totalorder %s12648_s12, 3  ;;  %s12650_s14 = smov [#allocation3]  }
   0x4   : > { %s126_s15 = sshll.u32 %s12650_s14, 4  ;;  %p13974_p3 = scmp.eq.s32.totalorder %s12680_s13, 0  ;;  %s127_s15 = int_to_ptr.vmem [resolvable:$true] %s126_s15 }
   0x5   : > { %p12684_p2 = pnand %p9379_p0, %p114_p1  ;;  %s12651_s17 = smov [#allocation5]  }
   0x6   : > { %s140_s18 = sshll.u32 %s12651_s17, 4  ;;  %s12578_s22 = scalar_lea.hbm %s13971_s1, 4608  ;;  %s12697_s18 = int_to_ptr.vmem [resolvable:$true] %s140_s18 }
   0x7   : > { %s13976_s16 = scalar_select %p12684_p2, 1, 0 }
   0x8   : > { %p12555_p4 = pneg %p12684_p2  ;;  %p12579_p6 = scmp.ne.s32.totalorder %s13971_s1, %s12578_s22 }
   0x9   : > { %p12585_p10 = scmp.lt.u32.totalorder %s12578_s22, %s13971_s1 }
   0xa   : > { %p12693_p5 = pnand %p13974_p3, %p12555_p4 }
   0xc   : > { %p12580_p7 = pneg %p12693_p5 }
   0xe   : > { %p12581_p8 = pnand %p12580_p7, %p12579_p6 }
  0x10   : > { %p12582_p9 = pneg %p12581_p8 }
  0x12   : > { %p12587_p11 = pnand %p12585_p10, %p12582_p9 }
  0x14   : > { %12590 = shalt.err (!%p12587_p11)
}
  0x15   : > { %s12591_s27 = scalar_lea.vmem %s127_s15, 4608  ;;  %p12599_p1 = scmp.lt.s32.totalorder %s127_s15, %s127_s15 }
  0x16   : > { %p12592_p12 = scmp.ne.s32.totalorder %s127_s15, %s12591_s27  ;;  %p12600_p4 = scmp.lt.s32.totalorder %s12591_s27, %s12591_s27 }
  0x18   : > { %p12594_p13 = pnand %p12592_p12, %p12580_p7  ;;  %p12601_p3 = por %p12600_p4, %p12599_p1 }
  0x1a   : > { %p12595_p0 = pneg %p12594_p13 }
  0x1c   : > { %p12602_p2 = pnand %p12601_p3, %p12595_p0 }
  0x1e   : > { %12605 = shalt.err (!%p12602_p2)
}
  0x1f   : > { %s12652_s28 = smov 128   ;;  %s12653_s29 = smov 8  }
  0x20   : > { %12558 = dma.hbm_to_vmem [thread:$0]  (!%p12693_p5), %s13971_s1, 4608, %s127_s15, [#allocation4], %s12652_s28, %s12652_s28, %s12653_s29  }
  0x21   : > { %s12606_s7 = scalar_lea.hbm %s13972_s2, 16 }
  0x22   : > { %p12607_p6 = scmp.ne.s32.totalorder %s13972_s2, %s12606_s7  ;;  %p12613_p8 = scmp.lt.u32.totalorder %s12606_s7, %s13972_s2 }
  0x24   : > { %p12609_p2 = pnand %p12607_p6, %p12580_p7 }
  0x26   : > { %p12610_p3 = pneg %p12609_p2 }
  0x28   : > { %p12615_p9 = pnand %p12613_p8, %p12610_p3 }
  0x2a   : > { %12618 = shalt.err (!%p12615_p9)
}
  0x2b   : > { %s12619_s14 = scalar_lea.vmem %s12697_s18, 16  ;;  %s12626_s15 = scalar_lea.vmem %s12697_s18, 32 }
  0x2c   : > { %p12620_p10 = scmp.ne.s32.totalorder %s12697_s18, %s12619_s14  ;;  %p12627_p13 = scmp.lt.s32.totalorder %s12697_s18, %s12697_s18 }
  0x2d   : > { %p12628_p0 = scmp.lt.s32.totalorder %s12626_s15, %s12619_s14 }
  0x2e   : > { %p12622_p11 = pnand %p12620_p10, %p12580_p7 }
  0x2f   : > { %p12629_p1 = por %p12628_p0, %p12627_p13 }
  0x30   : > { %p12623_p12 = pneg %p12622_p11 }
  0x32   : > { %p12630_p4 = pnand %p12629_p1, %p12623_p12 }
  0x34   : > { %12633 = shalt.err (!%p12630_p4)
}
  0x35   : > { %12561 = dma.hbm_to_vmem [thread:$0]  (!%p12693_p5), %s13972_s2, 16, %s12697_s18, [#allocation6]  }
  0x36   : > { %p13978_p6 = scmp.ne.s32.totalorder %s13976_s16, 0 }
  0x37   : > { %p13979_p7 = scmp.eq.s32.totalorder (!%p13978_p6), %s12680_s13, 0 }
  0x38   : > { %161 = sbr.rel (%p13978_p6) target bundleno = 732 (0x2dc), region = 32 }
  0x3f   : > { %12639 = dma.done.wait (%p13979_p7), [#allocation4], 4608   ;;  %p13980_p2 = pmov %p13979_p7 }
  0x41   : > { %12641 = vsyncadd (%p13980_p2), [#allocation4], 4294962688  ;;  %p13981_p3 = pmov %p13980_p2 }
  0x42   : > { %p13982_p8 = pmov %p13980_p2 }
  0x43   : > { %12643 = dma.done.wait (%p13981_p3), [#allocation6], 16  }
  0x44   : > { %12645 = vsyncadd (%p13982_p8), [#allocation6], 4294967280  ;;  %p189_p9 = scmp.lt.s32.totalorder %s12680_s13, 1  ;;  %v216_v0 = vld [vmem:[#allocation3 + $0x20] sm:$0xff]  ;;  %v217_v1 = vld [vmem:[#allocation3 + $0x28] sm:$0xff]  ;;  %vm222_vm0 = vcmask 1046528  }
  0x45   : > { %v218_v2 = vld [vmem:[#allocation3 + $0x30] sm:$0xff]  ;;  %v12767_v3 = vpack.c.bf16 %v217_v1, %v216_v0  ;;  %v219_v4 = vld [vmem:[#allocation3 + $0x38] sm:$0xff]  ;;  %v211_v12 = vld [vmem:[#allocation3] sm:$0xff]  ;;  %vm226_vm1 = vcmask 261120   ;;  %vm390_vm2 = vcmask 1045504   ;;  %vm1720_vm3 = vcmask 519168  }
  0x46   : > { %s13984_s13 = smov (!%p189_p9, %s12680_s13), 1  ;;  %v12773_v7 = vpack.c.bf16 %v219_v4, %v218_v2  ;;  %v212_v15 = vld [vmem:[#allocation3 + $0x8] sm:$0xff]  ;;  %v213_v19 = vld [vmem:[#allocation3 + $0x10] sm:$0xff]  ;;  %v214_v20 = vld [vmem:[#allocation3 + $0x18] sm:$0xff]  ;;  %vm1718_vm4 = vcmask 523264   ;;  %vm1733_vm5 = vcmask 521216  }
  0x47   : > { %s12545_s16 = smul.u32 224, %s13984_s13  ;;  %11490 = vmatprep.subr.bf16.mxu0 %v12767_v3  ;;  %11562 = vmatprep.subr.bf16.mxu1 %v12767_v3  ;;  %v12797_v18 = vpack.c.bf16 %v212_v15, %v211_v12  ;;  %v12806_v21 = vpack.c.bf16 %v214_v20, %v213_v19  ;;  %v386_v22 = vld [vmem:[#allocation3 + $0x40] sm:$0xff]  ;;  %v387_v23 = vld [vmem:[#allocation3 + $0x48] sm:$0xff]  ;;  %v388_v25 = vld [vmem:[#allocation3 + $0x50] sm:$0xff] }
  0x48   : > { %11492 = vmatpush3.bf16.msra.mxu0 %v12767_v3  ;;  %11564 = vmatpush3.bf16.msra.mxu1 %v12767_v3  ;;  %v12815_v24 = vpack.c.bf16 %v387_v23, %v386_v22  ;;  %v389_v26 = vld [vmem:[#allocation3 + $0x58] sm:$0xff]  ;;  %v476_v32 = vld [vmem:[#allocation3 + $0x60] sm:$0xff]  ;;  %v477_v33 = vld [vmem:[#allocation3 + $0x68] sm:$0xff]  ;;  %s12546_s22 = smul.u32 40, %s13984_s13 }
  0x49   : > { %s12765_s21 = scalar_lea.vmem %s13970_s0, %s12545_s16  ;;  %11494 = vmatprep.subr.bf16.mxu0 %v12773_v7  ;;  %11566 = vmatprep.subr.bf16.mxu1 %v12773_v7  ;;  %v12829_v31 = vpack.c.bf16 %v389_v26, %v388_v25  ;;  %v12844_v36 = vpack.c.bf16 %v477_v33, %v476_v32  ;;  %v478_v37 = vld [vmem:[#allocation3 + $0x70] sm:$0xff]  ;;  %v479_v38 = vld [vmem:[#allocation3 + $0x78] sm:$0xff]  ;;  %v564_v40 = vld [vmem:[#allocation3 + $0x80] sm:$0xff] }
  0x4a   : > { %v200_v5 = vld [vmem:[%s12765_s21] sm:$0xff]  ;;  %v12771_v6 = vld [vmem:[%s12765_s21 + $0x8] sm:$0x3f]  ;;  %v12777_v10 = vld [vmem:[%s12765_s21 + $0x10] sm:$0xff]  ;;  %v12853_v39 = vpack.c.bf16 %v479_v38, %v478_v37  ;;  %s13618_s25 = scalar_lea.vmem %s13973_s3, %s12546_s22 }
  0x4b   : > { %v223_v8 = vrot.slane %v200_v5, 1  ;;  %v224_v9 = vrot.slane %v12771_v6, 1  ;;  %v12780_v11 = vld [vmem:[%s12765_s21 + $0x18] sm:$0x3f]  ;;  %v568_v13 = vrot.slane %v12777_v10, 1  ;;  %v391_v27 = vrot.slane %v200_v5, 2 }
  0x4c   : > { %v12786_v14 = vrot.slane %v12780_v11, 1  ;;  %11496 = vmatpush3.bf16.msra.mxu0 %v12773_v7  ;;  %11568 = vmatpush3.bf16.msra.mxu1 %v12773_v7  ;;  %v392_v28 = vrot.slane %v12771_v6, 2  ;;  %v657_v29 = vrot.slane %v12777_v10, 2  ;;  %v12823_v30 = vrot.slane %v12780_v11, 2  ;;  %v565_v41 = vld [vmem:[#allocation3 + $0x88] sm:$0xff]  ;;  %v12859_v42 = vld [vmem:[%s12765_s21 + $0x20] sm:$0xff] }
  0x4d   : > { %v225_v16 = vsel %vm222_vm0, %v223_v8, %v224_v9  ;;  %11498 = vmatprep.subr.bf16.mxu0 %v12797_v18  ;;  %11570 = vmatprep.subr.bf16.mxu1 %v12797_v18  ;;  %v12865_v43 = vpack.c.bf16 %v565_v41, %v564_v40  ;;  %v12872_v44 = vld [vmem:[%s12765_s21 + $0x28] sm:$0x3f]  ;;  %v566_v45 = vld [vmem:[#allocation3 + $0x90] sm:$0xff]  ;;  %v834_v47 = vrot.slane %v12859_v42, 1  ;;  %v653_v50 = vld [vmem:[#allocation3 + $0xa0] sm:$0xff]  ;;  %v923_v56 = vrot.slane %v12859_v42, 2 }
  0x4e   : > { %v12795_v17 = vsel %vm222_vm0, %v568_v13, %v12786_v14  ;;  %10309 = vmatprep.mubr.msk.f32.mxu0 %vm226_vm1, %v225_v16  ;;  %v393_v34 = vsel %vm390_vm2, %v391_v27, %v392_v28  ;;  %v12838_v35 = vsel %vm390_vm2, %v657_v29, %v12823_v30  ;;  %v567_v46 = vld [vmem:[#allocation3 + $0x98] sm:$0xff]  ;;  %v12876_v48 = vrot.slane %v12872_v44, 1  ;;  %v654_v51 = vld [vmem:[#allocation3 + $0xa8] sm:$0xff]  ;;  %v655_v54 = vld [vmem:[#allocation3 + $0xb0] sm:$0xff] }
  0x4f   : > { %10408 = vmatprep.mubr.msk.f32.mxu1 %vm226_vm1, %v12795_v17  ;;  %10310 = vmatmul.mubr.msk.f32.vlgmr.msra.gmra.mrb[0].mxu0 %vm226_vm1, %v224_v9  ;;  %v12882_v49 = vpack.c.bf16 %v567_v46, %v566_v45  ;;  %v12898_v53 = vpack.c.bf16 %v654_v51, %v653_v50  ;;  %v656_v55 = vld [vmem:[#allocation3 + $0xb8] sm:$0xff]  ;;  %v12906_v57 = vrot.slane %v12872_v44, 2  ;;  %v742_v59 = vld [vmem:[#allocation3 + $0xc0] sm:$0xff]  ;;  %v743_v60 = vld [vmem:[#allocation3 + $0xc8] sm:$0xff] }
  0x50   : > { %10409 = vmatmul.mubr.msk.f32.vlgmr.msra.gmra.mrb[0].mxu1 %vm226_vm1, %v12786_v14  ;;  %11500 = vmatpush3.bf16.msra.mxu0 %v12797_v18  ;;  %v12892_v52 = vsel %vm222_vm0, %v834_v47, %v12876_v48  ;;  %v12912_v58 = vpack.c.bf16 %v656_v55, %v655_v54  ;;  %v12928_v62 = vpack.c.bf16 %v743_v60, %v742_v59  ;;  %v744_v63 = vld [vmem:[#allocation3 + $0xd0] sm:$0xff]  ;;  %v745_v0 = vld [vmem:[#allocation3 + $0xd8] sm:$0xff]  ;;  %v830_v2 = vld [vmem:[#allocation3 + $0xe0] sm:$0xff] }
  0x51   : > { %11572 = vmatpush3.bf16.msra.mxu1 %v12797_v18  ;;  %11502 = vmatprep.subr.bf16.mxu0 %v12806_v21  ;;  %v12922_v61 = vsel %vm390_vm2, %v923_v56, %v12906_v57  ;;  %v12938_v1 = vpack.c.bf16 %v745_v0, %v744_v63  ;;  %v831_v4 = vld [vmem:[#allocation3 + $0xe8] sm:$0xff]  ;;  %v832_v9 = vld [vmem:[#allocation3 + $0xf0] sm:$0xff]  ;;  %v922_v20 = vld [vmem:[#allocation3 + $0x118] sm:$0xff] }
  0x52   : > { %11574 = vmatprep.subr.bf16.mxu1 %v12806_v21  ;;  %10320 = vmatprep.mubr.msk.f32.mxu0 %vm226_vm1, %v200_v5  ;;  %v12945_v5 = vld [vmem:[%s12765_s21 + $0x30] sm:$0xff]  ;;  %v9393_v8 = vld [vmem:[%s12765_s21 + $0x38] sm:$0x3f]  ;;  %v921_v19 = vld [vmem:[#allocation3 + $0x110] sm:$0xff] }
  0x53   : > { %10419 = vmatprep.mubr.msk.f32.mxu1 %vm226_vm1, %v12777_v10  ;;  %v1549_v12 = vrot.slane %v9393_v8, 1  ;;  %v920_v15 = vld [vmem:[#allocation3 + $0x108] sm:$0xff]  ;;  %v1632_v22 = vrot.slane %v12945_v5, 2  ;;  %v1633_v23 = vrot.slane %v9393_v8, 2  ;;  %v12983_v25 = vpack.c.bf16 %v922_v20, %v921_v19  ;;  %v9432_v27 = vld [vmem:[%s12765_s21 + $0x28] sm:$0x3f] }
  0x54   : > { %11504 = vmatpush3.bf16.msra.mxu0 %v12806_v21  ;;  %v1756_v29 = vrot.slane %v9432_v27, 1  ;;  %v13065_v40 = vld [vmem:[%s12765_s21 + $0x40] sm:$0xff]  ;;  %v9436_v41 = vld [vmem:[%s12765_s21 + $0x48] sm:$0x3f]  ;;  %v13126_v50 = vld [vmem:[%s12765_s21 + $0x50] sm:$0xff] }
  0x55   : > { %11576 = vmatpush3.bf16.msra.mxu1 %v12806_v21  ;;  %11506 = vmatprep.subr.bf16.mxu0 %v12815_v24  ;;  %v1634_v26 = vsel %vm390_vm2, %v1632_v22, %v1633_v23  ;;  %v2446_v46 = vrot.slane %v13065_v40, 2  ;;  %v9438_v51 = vld [vmem:[%s12765_s21 + $0x58] sm:$0x3f]  ;;  %v9476_v60 = vld [vmem:[%s12765_s21 + $0x48] sm:$0x3f]  ;;  %v4777_v19 = vld [vmem:[#allocation3 + $0x30] sm:$0xff] }
  0x56   : > { %11578 = vmatprep.subr.bf16.mxu1 %v12815_v24  ;;  %v1757_v32 = vsel %vm222_vm0, %v834_v47, %v1756_v29  ;;  %v13097_v47 = vrot.slane %v9436_v41, 2  ;;  %v3072_v54 = vrot.slane %v9438_v51, 1  ;;  %v3269_v63 = vrot.slane %v9476_v60, 1  ;;  %v4778_v20 = vld [vmem:[#allocation3 + $0x38] sm:$0xff] }
  0x57   : > { %10321 = vmatmul.mubr.msk.f32.vlgmr.msra.gmra.mrb[0].mxu0 %vm226_vm1, %v12771_v6  ;;  %v12951_v6 = vpack.c.bf16 %v831_v4, %v830_v2 }
  0x58   : > { %10420 = vmatmul.mubr.msk.f32.vlgmr.msra.gmra.mrb[0].mxu1 %vm226_vm1, %v12780_v11  ;;  %11508 = vmatpush3.bf16.msra.mxu0 %v12815_v24 }
  0x59   : > { %11580 = vmatpush3.bf16.msra.mxu1 %v12815_v24  ;;  %11510 = vmatprep.subr.bf16.mxu0 %v12829_v31 }
  0x5a   : > { %11582 = vmatprep.subr.bf16.mxu1 %v12829_v31  ;;  %10331 = vmatprep.mubr.msk.f32.mxu0 %vm226_vm1, %v393_v34  ;;  %v1921_v34 = vrot.slane %v9432_v27, 2 }
  0x5b   : > { %10430 = vmatprep.mubr.msk.f32.mxu1 %vm226_vm1, %v12838_v35 }
  0x5c   : > { %11512 = vmatpush3.bf16.msra.mxu0 %v12829_v31  ;;  %v1922_v37 = vsel %vm390_vm2, %v923_v56, %v1921_v34  ;;  %v3155_v56 = vrot.slane %v13126_v50, 2 }
  0x5d   : > { %11584 = vmatpush3.bf16.msra.mxu1 %v12829_v31  ;;  %11514 = vmatprep.subr.bf16.mxu0 %v12844_v36 }
  0x5e   : > { %11586 = vmatprep.subr.bf16.mxu1 %v12844_v36 }
  0x5f   : > { %10332 = vmatmul.mubr.msk.f32.vlgmr.msra.gmra.mrb[0].mxu0 %vm226_vm1, %v392_v28  ;;  %v12993_v28 = vld [vmem:[%s12765_s21 + $0x38] sm:$0x3f] }
  0x60   : > { %10431 = vmatmul.mubr.msk.f32.vlgmr.msra.gmra.mrb[0].mxu1 %vm226_vm1, %v12823_v30  ;;  %11516 = vmatpush3.bf16.msra.mxu0 %v12844_v36 }
  0x61   : > { %11588 = vmatpush3.bf16.msra.mxu1 %v12844_v36  ;;  %11518 = vmatprep.subr.bf16.mxu0 %v12853_v39 }
  0x62   : > { %11590 = vmatprep.subr.bf16.mxu1 %v12853_v39  ;;  %10342 = vmatprep.mubr.msk.f32.mxu0 %vm226_vm1, %v12777_v10  ;;  %v833_v10 = vld [vmem:[#allocation3 + $0xf8] sm:$0xff] }
  0x63   : > { %10441 = vmatprep.mubr.msk.f32.mxu1 %vm226_vm1, %v12859_v42  ;;  %v12963_v13 = vpack.c.bf16 %v833_v10, %v832_v9 }
  0x64   : > { %11520 = vmatpush3.bf16.msra.mxu0 %v12853_v39 }
  0x65   : > { %11592 = vmatpush3.bf16.msra.mxu1 %v12853_v39  ;;  %11522 = vmatprep.subr.bf16.mxu0 %v12865_v43 }
  0x66   : > { %11594 = vmatprep.subr.bf16.mxu1 %v12865_v43 }
  0x67   : > { %10343 = vmatmul.mubr.msk.f32.vlgmr.msra.gmra.mrb[0].mxu0 %vm226_vm1, %v12780_v11  ;;  %v1548_v11 = vrot.slane %v12945_v5, 1 }
  0x68   : > { %10442 = vmatmul.mubr.msk.f32.vlgmr.msra.gmra.mrb[0].mxu1 %vm226_vm1, %v12872_v44  ;;  %11524 = vmatpush3.bf16.msra.mxu0 %v12865_v43 }
  0x69   : > { %11596 = vmatpush3.bf16.msra.mxu1 %v12865_v43  ;;  %11526 = vmatprep.subr.bf16.mxu0 %v12882_v49  ;;  %v1550_v16 = vsel %vm222_vm0, %v1548_v11, %v1549_v12 }
  0x6a   : > { %11598 = vmatprep.subr.bf16.mxu1 %v12882_v49  ;;  %10353 = vmatprep.mubr.msk.f32.mxu0 %vm226_vm1, %v12795_v17 }
  0x6b   : > { %10452 = vmatprep.mubr.msk.f32.mxu1 %vm226_vm1, %v12892_v52 }
  0x6c   : > { %11528 = vmatpush3.bf16.msra.mxu0 %v12882_v49 }
  0x6d   : > { %11600 = vmatpush3.bf16.msra.mxu1 %v12882_v49  ;;  %11530 = vmatprep.subr.bf16.mxu0 %v12898_v53 }
  0x6e   : > { %11602 = vmatprep.subr.bf16.mxu1 %v12898_v53 }
  0x6f   : > { %10354 = vmatmul.mubr.msk.f32.vlgmr.msra.gmra.mrb[0].mxu0 %vm226_vm1, %v12786_v14  ;;  %v919_v14 = vld [vmem:[#allocation3 + $0x100] sm:$0xff] }
  0x70   : > { %10453 = vmatmul.mubr.msk.f32.vlgmr.msra.gmra.mrb[0].mxu1 %vm226_vm1, %v12876_v48  ;;  %11532 = vmatpush3.bf16.msra.mxu0 %v12898_v53  ;;  %v12973_v17 = vpack.c.bf16 %v920_v15, %v919_v14  ;;  %v13338_v15 = vld [vmem:[%s12765_s21 + $0x78] sm:$0x3f] }
  0x71   : > { %11604 = vmatpush3.bf16.msra.mxu1 %v12898_v53  ;;  %11534 = vmatprep.subr.bf16.mxu0 %v12912_v58 }
  0x72   : > { %11606 = vmatprep.subr.bf16.mxu1 %v12912_v58  ;;  %10364 = vmatprep.mubr.msk.f32.mxu0 %vm226_vm1, %v12838_v35  ;;  %v13037_v35 = vrot.slane %v12993_v28, 2 }
  0x73   : > { %10463 = vmatprep.mubr.msk.f32.mxu1 %vm226_vm1, %v12922_v61 }
  0x74   : > { %11536 = vmatpush3.bf16.msra.mxu0 %v12912_v58  ;;  %v2185_v38 = vsel %vm390_vm2, %v1632_v22, %v13037_v35 }
  0x75   : > { %11608 = vmatpush3.bf16.msra.mxu1 %v12912_v58  ;;  %11538 = vmatprep.subr.bf16.mxu0 %v12928_v62 }
  0x76   : > { %11610 = vmatprep.subr.bf16.mxu1 %v12928_v62 }
  0x77   : > { %10365 = vmatmul.mubr.msk.f32.vlgmr.msra.gmra.mrb[0].mxu0 %vm226_vm1, %v12823_v30  ;;  %v13001_v30 = vrot.slane %v12993_v28, 1 }
  0x78   : > { %10464 = vmatmul.mubr.msk.f32.vlgmr.msra.gmra.mrb[0].mxu1 %vm226_vm1, %v12906_v57  ;;  %11540 = vmatpush3.bf16.msra.mxu0 %v12928_v62 }
  0x79   : > { %11612 = vmatpush3.bf16.msra.mxu1 %v12928_v62  ;;  %11542 = vmatprep.subr.bf16.mxu0 %v12938_v1  ;;  %v2097_v33 = vsel %vm222_vm0, %v1548_v11, %v13001_v30 }
  0x7a   : > { %11614 = vmatprep.subr.bf16.mxu1 %v12938_v1  ;;  %10375 = vmatprep.mubr.msk.f32.mxu0 %vm226_vm1, %v12859_v42 }
  0x7b   : > { %10474 = vmatprep.mubr.msk.f32.mxu1 %vm226_vm1, %v12945_v5 }
  0x7c   : > { %11544 = vmatpush3.bf16.msra.mxu0 %v12938_v1 }
  0x7d   : > { %11616 = vmatpush3.bf16.msra.mxu1 %v12938_v1  ;;  %11546 = vmatprep.subr.bf16.mxu0 %v12951_v6 }
  0x7e   : > { %11618 = vmatprep.subr.bf16.mxu1 %v12951_v6 }
  0x7f   : > { %10376 = vmatmul.mubr.msk.f32.vlgmr.msra.gmra.mrb[0].mxu0 %vm226_vm1, %v12872_v44  ;;  %v13077_v44 = vrot.slane %v9436_v41, 1 }
  0x80   : > { %10475 = vmatmul.mubr.msk.f32.vlgmr.msra.gmra.mrb[0].mxu1 %vm226_vm1, %v9393_v8  ;;  %11548 = vmatpush3.bf16.msra.mxu0 %v12951_v6 }
  0x81   : > { %11620 = vmatpush3.bf16.msra.mxu1 %v12951_v6  ;;  %11550 = vmatprep.subr.bf16.mxu0 %v12963_v13 }
  0x82   : > { %11622 = vmatprep.subr.bf16.mxu1 %v12963_v13  ;;  %10386 = vmatprep.mubr.msk.f32.mxu0 %vm226_vm1, %v12892_v52  ;;  %v3071_v52 = vrot.slane %v13126_v50, 1 }
  0x83   : > { %10485 = vmatprep.mubr.msk.f32.mxu1 %vm226_vm1, %v1550_v16 }
  0x84   : > { %11552 = vmatpush3.bf16.msra.mxu0 %v12963_v13  ;;  %v3073_v55 = vsel %vm222_vm0, %v3071_v52, %v3072_v54 }
  0x85   : > { %11624 = vmatpush3.bf16.msra.mxu1 %v12963_v13  ;;  %11554 = vmatprep.subr.bf16.mxu0 %v12973_v17 }
  0x86   : > { %11626 = vmatprep.subr.bf16.mxu1 %v12973_v17 }
  0x87   : > { %10387 = vmatmul.mubr.msk.f32.vlgmr.msra.gmra.mrb[0].mxu0 %vm226_vm1, %v12876_v48  ;;  %v2448_v48 = vsel %vm390_vm2, %v2446_v46, %v13097_v47 }
  0x88   : > { %10486 = vmatmul.mubr.msk.f32.vlgmr.msra.gmra.mrb[0].mxu1 %vm226_vm1, %v1549_v12  ;;  %11556 = vmatpush3.bf16.msra.mxu0 %v12973_v17  ;;  %v4776_v12 = vld [vmem:[#allocation3 + $0x28] sm:$0xff] }
  0x89   : > { %11628 = vmatpush3.bf16.msra.mxu1 %v12973_v17  ;;  %11558 = vmatprep.subr.bf16.mxu0 %v12983_v25 }
  0x8a   : > { %11630 = vmatprep.subr.bf16.mxu1 %v12983_v25  ;;  %10397 = vmatprep.mubr.msk.f32.mxu0 %vm226_vm1, %v12922_v61  ;;  %v13164_v61 = vld [vmem:[%s12765_s21 + $0x58] sm:$0x3f] }
  0x8b   : > { %10496 = vmatprep.mubr.msk.f32.mxu1 %vm226_vm1, %v1634_v26  ;;  %v13171_v0 = vrot.slane %v13164_v61, 1  ;;  %v4771_v26 = vld [vmem:[#allocation3] sm:$0xff] }
  0x8c   : > { %11560 = vmatpush3.bf16.msra.mxu0 %v12983_v25 }
  0x8d   : > { %11632 = vmatpush3.bf16.msra.mxu1 %v12983_v25  ;;  %11634 = vmatprep.subr.bf16.mxu0 %v12767_v3  ;;  %v3610_v4 = vsel %vm222_vm0, %v3071_v52, %v13171_v0  ;;  %v5033_v52 = vld [vmem:[#allocation3 + $0x78] sm:$0xff] }
  0x8e   : > { %11706 = vmatprep.subr.bf16.mxu1 %v12767_v3 }
  0x8f   : > { %10398 = vmatmul.mubr.msk.f32.vlgmr.msra.gmra.mrb[0].mxu0 %vm226_vm1, %v12906_v57  ;;  %v3156_v57 = vrot.slane %v9438_v51, 2 }
  0x90   : > { %10497 = vmatmul.mubr.msk.f32.vlgmr.msra.gmra.mrb[0].mxu1 %vm226_vm1, %v1633_v23  ;;  %11636 = vmatpush3.bf16.msra.mxu0 %v12767_v3  ;;  %v13354_v23 = vpack.c.bf16 %v4778_v20, %v4777_v19 }
  0x91   : > { %11708 = vmatpush3.bf16.msra.mxu1 %v12767_v3  ;;  %11638 = vmatprep.subr.bf16.mxu0 %v12773_v7  ;;  %v3157_v59 = vsel %vm390_vm2, %v3155_v56, %v3156_v57 }
  0x92   : > { %11710 = vmatprep.subr.bf16.mxu1 %v12773_v7  ;;  %10507 = vmatprep.mubr.msk.f32.mxu0 %vm226_vm1, %v1757_v32  ;;  %v4774_v32 = vld [vmem:[#allocation3 + $0x18] sm:$0xff] }
  0x93   : > { %10606 = vmatprep.mubr.msk.f32.mxu1 %vm226_vm1, %v2097_v33 }
  0x94   : > { %11640 = vmatpush3.bf16.msra.mxu0 %v12773_v7 }
  0x95   : > { %11712 = vmatpush3.bf16.msra.mxu1 %v12773_v7  ;;  %11642 = vmatprep.subr.bf16.mxu0 %v12797_v18 }
  0x96   : > { %11714 = vmatprep.subr.bf16.mxu1 %v12797_v18 }
  0x97   : > { %10508 = vmatmul.mubr.msk.f32.vlgmr.msra.gmra.mrb[2].mxu0 %vm226_vm1, %v1756_v29 }
  0x98   : > { %10607 = vmatmul.mubr.msk.f32.vlgmr.msra.gmra.mrb[2].mxu1 %vm226_vm1, %v13001_v30  ;;  %11644 = vmatpush3.bf16.msra.mxu0 %v12797_v18 }
  0x99   : > { %11716 = vmatpush3.bf16.msra.mxu1 %v12797_v18  ;;  %11646 = vmatprep.subr.bf16.mxu0 %v12806_v21 }
  0x9a   : > { %11718 = vmatprep.subr.bf16.mxu1 %v12806_v21  ;;  %10518 = vmatprep.mubr.msk.f32.mxu0 %vm226_vm1, %v12859_v42  ;;  %v2358_v42 = vrot.slane %v13065_v40, 1 }
  0x9b   : > { %10617 = vmatprep.mubr.msk.f32.mxu1 %vm226_vm1, %v12945_v5 }
  0x9c   : > { %11648 = vmatpush3.bf16.msra.mxu0 %v12806_v21  ;;  %v2360_v45 = vsel %vm222_vm0, %v2358_v42, %v13077_v44  ;;  %v3270_v2 = vsel %vm222_vm0, %v2358_v42, %v3269_v63  ;;  %v13396_v42 = vrot.slane %v13338_v15, 2 }
  0x9d   : > { %11720 = vmatpush3.bf16.msra.mxu1 %v12806_v21  ;;  %11650 = vmatprep.subr.bf16.mxu0 %v12815_v24 }
  0x9e   : > { %11722 = vmatprep.subr.bf16.mxu1 %v12815_v24 }
  0x9f   : > { %10519 = vmatmul.mubr.msk.f32.vlgmr.msra.gmra.mrb[2].mxu0 %vm226_vm1, %v9432_v27  ;;  %v4772_v27 = vld [vmem:[#allocation3 + $0x8] sm:$0xff] }
  0xa0   : > { %10618 = vmatmul.mubr.msk.f32.vlgmr.msra.gmra.mrb[2].mxu1 %vm226_vm1, %v12993_v28  ;;  %11652 = vmatpush3.bf16.msra.mxu0 %v12815_v24  ;;  %v13370_v29 = vpack.c.bf16 %v4772_v27, %v4771_v26 }
  0xa1   : > { %11724 = vmatpush3.bf16.msra.mxu1 %v12815_v24  ;;  %11654 = vmatprep.subr.bf16.mxu0 %v12829_v31 }
  0xa2   : > { %11726 = vmatprep.subr.bf16.mxu1 %v12829_v31  ;;  %10529 = vmatprep.mubr.msk.f32.mxu0 %vm226_vm1, %v1922_v37 }
  0xa3   : > { %10628 = vmatprep.mubr.msk.f32.mxu1 %vm226_vm1, %v2185_v38 }
  0xa4   : > { %11656 = vmatpush3.bf16.msra.mxu0 %v12829_v31 }
  0xa5   : > { %11728 = vmatpush3.bf16.msra.mxu1 %v12829_v31  ;;  %11658 = vmatprep.subr.bf16.mxu0 %v12844_v36 }
  0xa6   : > { %11730 = vmatprep.subr.bf16.mxu1 %v12844_v36 }
  0xa7   : > { %10530 = vmatmul.mubr.msk.f32.vlgmr.msra.gmra.mrb[2].mxu0 %vm226_vm1, %v1921_v34  ;;  %v4942_v34 = vld [vmem:[#allocation3 + $0x40] sm:$0xff] }
  0xa8   : > { %10629 = vmatmul.mubr.msk.f32.vlgmr.msra.gmra.mrb[2].mxu1 %vm226_vm1, %v13037_v35  ;;  %11660 = vmatpush3.bf16.msra.mxu0 %v12844_v36 }
  0xa9   : > { %11732 = vmatpush3.bf16.msra.mxu1 %v12844_v36  ;;  %11662 = vmatprep.subr.bf16.mxu0 %v12853_v39 }
  0xaa   : > { %11734 = vmatprep.subr.bf16.mxu1 %v12853_v39  ;;  %10540 = vmatprep.mubr.msk.f32.mxu0 %vm226_vm1, %v12945_v5 }
  0xab   : > { %10639 = vmatprep.mubr.msk.f32.mxu1 %vm226_vm1, %v13065_v40 }
  0xac   : > { %11664 = vmatpush3.bf16.msra.mxu0 %v12853_v39 }
  0xad   : > { %11736 = vmatpush3.bf16.msra.mxu1 %v12853_v39  ;;  %11666 = vmatprep.subr.bf16.mxu0 %v12865_v43 }
  0xae   : > { %11738 = vmatprep.subr.bf16.mxu1 %v12865_v43 }
  0xaf   : > { %10541 = vmatmul.mubr.msk.f32.vlgmr.msra.gmra.mrb[2].mxu0 %vm226_vm1, %v12993_v28 }
  0xb0   : > { %10640 = vmatmul.mubr.msk.f32.vlgmr.msra.gmra.mrb[2].mxu1 %vm226_vm1, %v9436_v41  ;;  %11668 = vmatpush3.bf16.msra.mxu0 %v12865_v43 }
  0xb1   : > { %11740 = vmatpush3.bf16.msra.mxu1 %v12865_v43  ;;  %11670 = vmatprep.subr.bf16.mxu0 %v12882_v49 }
  0xb2   : > { %11742 = vmatprep.subr.bf16.mxu1 %v12882_v49  ;;  %10551 = vmatprep.mubr.msk.f32.mxu0 %vm226_vm1, %v2097_v33 }
  0xb3   : > { %10650 = vmatprep.mubr.msk.f32.mxu1 %vm226_vm1, %v2360_v45 }
  0xb4   : > { %11672 = vmatpush3.bf16.msra.mxu0 %v12882_v49 }
  0xb5   : > { %11744 = vmatpush3.bf16.msra.mxu1 %v12882_v49  ;;  %11674 = vmatprep.subr.bf16.mxu0 %v12898_v53 }
  0xb6   : > { %11746 = vmatprep.subr.bf16.mxu1 %v12898_v53 }
  0xb7   : > { %10552 = vmatmul.mubr.msk.f32.vlgmr.msra.gmra.mrb[2].mxu0 %vm226_vm1, %v13001_v30  ;;  %v4773_v30 = vld [vmem:[#allocation3 + $0x10] sm:$0xff] }
  0xb8   : > { %10651 = vmatmul.mubr.msk.f32.vlgmr.msra.gmra.mrb[2].mxu1 %vm226_vm1, %v13077_v44  ;;  %11676 = vmatpush3.bf16.msra.mxu0 %v12898_v53  ;;  %v13379_v33 = vpack.c.bf16 %v4774_v32, %v4773_v30 }
  0xb9   : > { %11748 = vmatpush3.bf16.msra.mxu1 %v12898_v53  ;;  %11678 = vmatprep.subr.bf16.mxu0 %v12912_v58 }
  0xba   : > { %11750 = vmatprep.subr.bf16.mxu1 %v12912_v58  ;;  %10562 = vmatprep.mubr.msk.f32.mxu0 %vm226_vm1, %v2185_v38  ;;  %v4944_v38 = vld [vmem:[#allocation3 + $0x50] sm:$0xff] }
  0xbb   : > { %10661 = vmatprep.mubr.msk.f32.mxu1 %vm226_vm1, %v2448_v48 }
  0xbc   : > { %11680 = vmatpush3.bf16.msra.mxu0 %v12912_v58 }
  0xbd   : > { %11752 = vmatpush3.bf16.msra.mxu1 %v12912_v58  ;;  %11682 = vmatprep.subr.bf16.mxu0 %v12928_v62 }
  0xbe   : > { %11754 = vmatprep.subr.bf16.mxu1 %v12928_v62 }
  0xbf   : > { %10563 = vmatmul.mubr.msk.f32.vlgmr.msra.gmra.mrb[2].mxu0 %vm226_vm1, %v13037_v35  ;;  %v4943_v35 = vld [vmem:[#allocation3 + $0x48] sm:$0xff] }
  0xc0   : > { %10662 = vmatmul.mubr.msk.f32.vlgmr.msra.gmra.mrb[2].mxu1 %vm226_vm1, %v13097_v47  ;;  %11684 = vmatpush3.bf16.msra.mxu0 %v12928_v62  ;;  %v13388_v37 = vpack.c.bf16 %v4943_v35, %v4942_v34 }
  0xc1   : > { %11756 = vmatpush3.bf16.msra.mxu1 %v12928_v62  ;;  %11686 = vmatprep.subr.bf16.mxu0 %v12938_v1 }
  0xc2   : > { %11758 = vmatprep.subr.bf16.mxu1 %v12938_v1  ;;  %10573 = vmatprep.mubr.msk.f32.mxu0 %vm226_vm1, %v13065_v40 }
  0xc3   : > { %10672 = vmatprep.mubr.msk.f32.mxu1 %vm226_vm1, %v13126_v50 }
  0xc4   : > { %11688 = vmatpush3.bf16.msra.mxu0 %v12938_v1 }
  0xc5   : > { %11760 = vmatpush3.bf16.msra.mxu1 %v12938_v1  ;;  %11690 = vmatprep.subr.bf16.mxu0 %v12951_v6 }
  0xc6   : > { %11762 = vmatprep.subr.bf16.mxu1 %v12951_v6 }
  0xc7   : > { %10574 = vmatmul.mubr.msk.f32.vlgmr.msra.gmra.mrb[2].mxu0 %vm226_vm1, %v9436_v41 }
  0xc8   : > { %10673 = vmatmul.mubr.msk.f32.vlgmr.msra.gmra.mrb[2].mxu1 %vm226_vm1, %v9438_v51  ;;  %11692 = vmatpush3.bf16.msra.mxu0 %v12951_v6  ;;  %v5032_v51 = vld [vmem:[#allocation3 + $0x70] sm:$0xff] }
  0xc9   : > { %11764 = vmatpush3.bf16.msra.mxu1 %v12951_v6  ;;  %11694 = vmatprep.subr.bf16.mxu0 %v12963_v13 }
  0xca   : > { %11766 = vmatprep.subr.bf16.mxu1 %v12963_v13  ;;  %10584 = vmatprep.mubr.msk.f32.mxu0 %vm226_vm1, %v2360_v45  ;;  %v5030_v45 = vld [vmem:[#allocation3 + $0x60] sm:$0xff] }
  0xcb   : > { %10683 = vmatprep.mubr.msk.f32.mxu1 %vm226_vm1, %v3073_v55  ;;  %v5117_v55 = vld [vmem:[#allocation3 + $0x80] sm:$0xff] }
  0xcc   : > { %11696 = vmatpush3.bf16.msra.mxu0 %v12963_v13 }
  0xcd   : > { %11768 = vmatpush3.bf16.msra.mxu1 %v12963_v13  ;;  %11698 = vmatprep.subr.bf16.mxu0 %v12973_v17 }
  0xce   : > { %11770 = vmatprep.subr.bf16.mxu1 %v12973_v17 }
  0xcf   : > { %10585 = vmatmul.mubr.msk.f32.vlgmr.msra.gmra.mrb[2].mxu0 %vm226_vm1, %v13077_v44 }
  0xd0   : > { %10684 = vmatmul.mubr.msk.f32.vlgmr.msra.gmra.mrb[2].mxu1 %vm226_vm1, %v3072_v54  ;;  %11700 = vmatpush3.bf16.msra.mxu0 %v12973_v17  ;;  %v13430_v54 = vpack.c.bf16 %v5033_v52, %v5032_v51 }
  0xd1   : > { %11772 = vmatpush3.bf16.msra.mxu1 %v12973_v17  ;;  %11702 = vmatprep.subr.bf16.mxu0 %v12983_v25 }
  0xd2   : > { %11774 = vmatprep.subr.bf16.mxu1 %v12983_v25  ;;  %10595 = vmatprep.mubr.msk.f32.mxu0 %vm226_vm1, %v2448_v48 }
  0xd3   : > { %10694 = vmatprep.mubr.msk.f32.mxu1 %vm226_vm1, %v3157_v59 }
  0xd4   : > { %11704 = vmatpush3.bf16.msra.mxu0 %v12983_v25 }
  0xd5   : > { %11776 = vmatpush3.bf16.msra.mxu1 %v12983_v25  ;;  %11778 = vmatprep.subr.bf16.mxu0 %v12767_v3 }
  0xd6   : > { %11850 = vmatprep.subr.bf16.mxu1 %v12767_v3 }
  0xd7   : > { %10596 = vmatmul.mubr.msk.f32.vlgmr.msra.gmra.mrb[2].mxu0 %vm226_vm1, %v13097_v47 }
  0xd8   : > { %10695 = vmatmul.mubr.msk.f32.vlgmr.msra.gmra.mrb[2].mxu1 %vm226_vm1, %v3156_v57  ;;  %11780 = vmatpush3.bf16.msra.mxu0 %v12767_v3  ;;  %v13436_v57 = vld [vmem:[%s12765_s21 + $0x80] sm:$0xff] }
  0xd9   : > { %11852 = vmatpush3.bf16.msra.mxu1 %v12767_v3  ;;  %11782 = vmatprep.subr.bf16.mxu0 %v12773_v7  ;;  %v3434_v3 = vrot.slane %v9476_v60, 2 }
  0xda   : > { %11854 = vmatprep.subr.bf16.mxu1 %v12773_v7  ;;  %10705 = vmatprep.mubr.msk.f32.mxu0 %vm226_vm1, %v3270_v2 }
  0xdb   : > { %10804 = vmatprep.mubr.msk.f32.mxu1 %vm226_vm1, %v3610_v4 }
  0xdc   : > { %11784 = vmatpush3.bf16.msra.mxu0 %v12773_v7 }
  0xdd   : > { %11856 = vmatpush3.bf16.msra.mxu1 %v12773_v7  ;;  %11786 = vmatprep.subr.bf16.mxu0 %v12797_v18  ;;  %v13207_v7 = vrot.slane %v13164_v61, 2 }
  0xde   : > { %11858 = vmatprep.subr.bf16.mxu1 %v12797_v18 }
  0xdf   : > { %10706 = vmatmul.mubr.msk.f32.vlgmr.msra.gmra.mrb[4].mxu0 %vm226_vm1, %v3269_v63  ;;  %v3698_v5 = vsel %vm390_vm2, %v3155_v56, %v13207_v7  ;;  %v5118_v56 = vld [vmem:[#allocation3 + $0x88] sm:$0xff]  ;;  %v5120_v63 = vld [vmem:[#allocation3 + $0x98] sm:$0xff] }
  0xe0   : > { %10805 = vmatmul.mubr.msk.f32.vlgmr.msra.gmra.mrb[4].mxu1 %vm226_vm1, %v13171_v0  ;;  %11788 = vmatpush3.bf16.msra.mxu0 %v12797_v18  ;;  %v13442_v59 = vpack.c.bf16 %v5118_v56, %v5117_v55 }
  0xe1   : > { %11860 = vmatpush3.bf16.msra.mxu1 %v12797_v18  ;;  %11790 = vmatprep.subr.bf16.mxu0 %v12806_v21  ;;  %v3435_v18 = vsel %vm390_vm2, %v2446_v46, %v3434_v3  ;;  %v5031_v46 = vld [vmem:[#allocation3 + $0x68] sm:$0xff] }
  0xe2   : > { %11862 = vmatprep.subr.bf16.mxu1 %v12806_v21  ;;  %10716 = vmatprep.mubr.msk.f32.mxu0 %vm226_vm1, %v13065_v40  ;;  %v4945_v40 = vld [vmem:[#allocation3 + $0x58] sm:$0xff] }
  0xe3   : > { %10815 = vmatprep.mubr.msk.f32.mxu1 %vm226_vm1, %v13126_v50  ;;  %v13402_v44 = vpack.c.bf16 %v4945_v40, %v4944_v38  ;;  %v13571_v38 = vld [vmem:[%s12765_s21 + $0x88] sm:$0x3f]  ;;  %v13574_v40 = vld [vmem:[%s12765_s21 + $0x98] sm:$0x3f] }
  0xe4   : > { %11792 = vmatpush3.bf16.msra.mxu0 %v12806_v21  ;;  %v13583_v51 = vrot.slane %v13574_v40, 1 }
  0xe5   : > { %11864 = vmatpush3.bf16.msra.mxu1 %v12806_v21  ;;  %11794 = vmatprep.subr.bf16.mxu0 %v12815_v24  ;;  %v13235_v21 = vld [vmem:[%s12765_s21 + $0x60] sm:$0xff] }
  0xe6   : > { %11866 = vmatprep.subr.bf16.mxu1 %v12815_v24 }
  0xe7   : > { %10717 = vmatmul.mubr.msk.f32.vlgmr.msra.gmra.mrb[4].mxu0 %vm226_vm1, %v9476_v60  ;;  %v13449_v60 = vld [vmem:[%s12765_s21 + $0x88] sm:$0x3f] }
  0xe8   : > { %10816 = vmatmul.mubr.msk.f32.vlgmr.msra.gmra.mrb[4].mxu1 %vm226_vm1, %v13164_v61  ;;  %11796 = vmatpush3.bf16.msra.mxu0 %v12815_v24  ;;  %v13453_v2 = vrot.slane %v13449_v60, 1 }
  0xe9   : > { %11868 = vmatpush3.bf16.msra.mxu1 %v12815_v24  ;;  %11798 = vmatprep.subr.bf16.mxu0 %v12829_v31  ;;  %v9480_v24 = vld [vmem:[%s12765_s21 + $0x68] sm:$0x3f] }
  0xea   : > { %11870 = vmatprep.subr.bf16.mxu1 %v12829_v31  ;;  %10727 = vmatprep.mubr.msk.f32.mxu0 %vm226_vm1, %v3435_v18  ;;  %v13247_v8 = vrot.slane %v9480_v24, 1  ;;  %v13267_v9 = vrot.slane %v9480_v24, 2 }
  0xeb   : > { %10826 = vmatprep.mubr.msk.f32.mxu1 %vm226_vm1, %v3698_v5 }
  0xec   : > { %11800 = vmatpush3.bf16.msra.mxu0 %v12829_v31 }
  0xed   : > { %11872 = vmatpush3.bf16.msra.mxu1 %v12829_v31  ;;  %11802 = vmatprep.subr.bf16.mxu0 %v12844_v36  ;;  %v3871_v31 = vrot.slane %v13235_v21, 1 }
  0xee   : > { %11874 = vmatprep.subr.bf16.mxu1 %v12844_v36 }
  0xef   : > { %10728 = vmatmul.mubr.msk.f32.vlgmr.msra.gmra.mrb[4].mxu0 %vm226_vm1, %v3434_v3  ;;  %v5205_v3 = vld [vmem:[#allocation3 + $0xa0] sm:$0xff] }
  0xf0   : > { %10827 = vmatmul.mubr.msk.f32.vlgmr.msra.gmra.mrb[4].mxu1 %vm226_vm1, %v13207_v7  ;;  %11804 = vmatpush3.bf16.msra.mxu0 %v12844_v36 }
  0xf1   : > { %11876 = vmatpush3.bf16.msra.mxu1 %v12844_v36  ;;  %11806 = vmatprep.subr.bf16.mxu0 %v12853_v39  ;;  %v3873_v36 = vsel %vm222_vm0, %v3871_v31, %v13247_v8 }
  0xf2   : > { %11878 = vmatprep.subr.bf16.mxu1 %v12853_v39  ;;  %10738 = vmatprep.mubr.msk.f32.mxu0 %vm226_vm1, %v13126_v50  ;;  %v13421_v50 = vpack.c.bf16 %v5031_v46, %v5030_v45 }
  0xf3   : > { %10837 = vmatprep.mubr.msk.f32.mxu1 %vm226_vm1, %v13235_v21 }
  0xf4   : > { %11808 = vmatpush3.bf16.msra.mxu0 %v12853_v39 }
  0xf5   : > { %11880 = vmatpush3.bf16.msra.mxu1 %v12853_v39  ;;  %11810 = vmatprep.subr.bf16.mxu0 %v12865_v43  ;;  %v3959_v39 = vrot.slane %v13235_v21, 2 }
  0xf6   : > { %11882 = vmatprep.subr.bf16.mxu1 %v12865_v43 }
  0xf7   : > { %10739 = vmatmul.mubr.msk.f32.vlgmr.msra.gmra.mrb[4].mxu0 %vm226_vm1, %v13164_v61  ;;  %v5119_v61 = vld [vmem:[#allocation3 + $0x90] sm:$0xff] }
  0xf8   : > { %10838 = vmatmul.mubr.msk.f32.vlgmr.msra.gmra.mrb[4].mxu1 %vm226_vm1, %v9480_v24  ;;  %11812 = vmatpush3.bf16.msra.mxu0 %v12865_v43 }
  0xf9   : > { %11884 = vmatpush3.bf16.msra.mxu1 %v12865_v43  ;;  %11814 = vmatprep.subr.bf16.mxu0 %v12882_v49  ;;  %v3961_v43 = vsel %vm390_vm2, %v3959_v39, %v13267_v9 }
  0xfa   : > { %11886 = vmatprep.subr.bf16.mxu1 %v12882_v49  ;;  %10749 = vmatprep.mubr.msk.f32.mxu0 %vm226_vm1, %v3610_v4  ;;  %v13459_v4 = vpack.c.bf16 %v5120_v63, %v5119_v61 }
  0xfb   : > { %10848 = vmatprep.mubr.msk.f32.mxu1 %vm226_vm1, %v3873_v36 }
  0xfc   : > { %11816 = vmatpush3.bf16.msra.mxu0 %v12882_v49 }
  0xfd   : > { %11888 = vmatpush3.bf16.msra.mxu1 %v12882_v49  ;;  %11818 = vmatprep.subr.bf16.mxu0 %v12898_v53  ;;  %v13296_v49 = vld [vmem:[%s12765_s21 + $0x70] sm:$0xff] }
  0xfe   : > { %11890 = vmatprep.subr.bf16.mxu1 %v12898_v53 }
  0xff   : > { %10750 = vmatmul.mubr.msk.f32.vlgmr.msra.gmra.mrb[4].mxu0 %vm226_vm1, %v13171_v0  ;;  %v5384_v0 = vrot.slane %v13436_v57, 1 }
 0x100   : > { %10849 = vmatmul.mubr.msk.f32.vlgmr.msra.gmra.mrb[4].mxu1 %vm226_vm1, %v13247_v8  ;;  %11820 = vmatpush3.bf16.msra.mxu0 %v12898_v53 }
 0x101   : > { %11892 = vmatpush3.bf16.msra.mxu1 %v12898_v53  ;;  %11822 = vmatprep.subr.bf16.mxu0 %v12912_v58  ;;  %v9482_v53 = vld [vmem:[%s12765_s21 + $0x78] sm:$0x3f]  ;;  %v13469_v18 = vsel %vm222_vm0, %v5384_v0, %v13453_v2 }
 0x102   : > { %11894 = vmatprep.subr.bf16.mxu1 %v12912_v58  ;;  %10760 = vmatprep.mubr.msk.f32.mxu0 %vm226_vm1, %v3698_v5  ;;  %v4585_v10 = vrot.slane %v9482_v53, 1  ;;  %v4669_v11 = vrot.slane %v9482_v53, 2 }
 0x103   : > { %10859 = vmatprep.mubr.msk.f32.mxu1 %vm226_vm1, %v3961_v43 }
 0x104   : > { %11824 = vmatpush3.bf16.msra.mxu0 %v12912_v58 }
 0x105   : > { %11896 = vmatpush3.bf16.msra.mxu1 %v12912_v58  ;;  %11826 = vmatprep.subr.bf16.mxu0 %v12928_v62  ;;  %v4584_v58 = vrot.slane %v13296_v49, 1 }
 0x106   : > { %11898 = vmatprep.subr.bf16.mxu1 %v12928_v62 }
 0x107   : > { %10761 = vmatmul.mubr.msk.f32.vlgmr.msra.gmra.mrb[4].mxu0 %vm226_vm1, %v13207_v7  ;;  %v5206_v7 = vld [vmem:[#allocation3 + $0xa8] sm:$0xff] }
 0x108   : > { %10860 = vmatmul.mubr.msk.f32.vlgmr.msra.gmra.mrb[4].mxu1 %vm226_vm1, %v13267_v9  ;;  %11828 = vmatpush3.bf16.msra.mxu0 %v12928_v62  ;;  %v13475_v5 = vpack.c.bf16 %v5206_v7, %v5205_v3  ;;  %v6460_v3 = vrot.slane %v13571_v38, 2  ;;  %v13636_v7 = vrot.slane %v13574_v40, 2 }
 0x109   : > { %11900 = vmatpush3.bf16.msra.mxu1 %v12928_v62  ;;  %11830 = vmatprep.subr.bf16.mxu0 %v12938_v1  ;;  %v4586_v62 = vsel %vm222_vm0, %v4584_v58, %v4585_v10 }
 0x10a   : > { %11902 = vmatprep.subr.bf16.mxu1 %v12938_v1  ;;  %10771 = vmatprep.mubr.msk.f32.mxu0 %vm226_vm1, %v13235_v21 }
 0x10b   : > { %10870 = vmatprep.mubr.msk.f32.mxu1 %vm226_vm1, %v13296_v49 }
 0x10c   : > { %11832 = vmatpush3.bf16.msra.mxu0 %v12938_v1 }
 0x10d   : > { %11904 = vmatpush3.bf16.msra.mxu1 %v12938_v1  ;;  %11834 = vmatprep.subr.bf16.mxu0 %v12951_v6  ;;  %v4668_v1 = vrot.slane %v13296_v49, 2 }
 0x10e   : > { %11906 = vmatprep.subr.bf16.mxu1 %v12951_v6 }
 0x10f   : > { %10772 = vmatmul.mubr.msk.f32.vlgmr.msra.gmra.mrb[4].mxu0 %vm226_vm1, %v9480_v24  ;;  %v4670_v14 = vsel %vm390_vm2, %v4668_v1, %v4669_v11  ;;  %v13415_v48 = vsel %vm390_vm2, %v4668_v1, %v13396_v42  ;;  %v5208_v24 = vld [vmem:[#allocation3 + $0xb8] sm:$0xff]  ;;  %v5381_v1 = vld [vmem:[#allocation3 + $0xe8] sm:$0xff] }
 0x110   : > { %10871 = vmatmul.mubr.msk.f32.vlgmr.msra.gmra.mrb[4].mxu1 %vm226_vm1, %v9482_v53  ;;  %11836 = vmatpush3.bf16.msra.mxu0 %v12951_v6  ;;  %v5295_v53 = vld [vmem:[#allocation3 + $0xd0] sm:$0xff] }
 0x111   : > { %11908 = vmatpush3.bf16.msra.mxu1 %v12951_v6  ;;  %11838 = vmatprep.subr.bf16.mxu0 %v12963_v13  ;;  %v4775_v6 = vld [vmem:[#allocation3 + $0x20] sm:$0xff] }
 0x112   : > { %11910 = vmatprep.subr.bf16.mxu1 %v12963_v13  ;;  %10782 = vmatprep.mubr.msk.f32.mxu0 %vm226_vm1, %v3873_v36  ;;  %v13342_v16 = vpack.c.bf16 %v4776_v12, %v4775_v6  ;;  %v9526_v12 = vld [vmem:[%s12765_s21 + $0x98] sm:$0x3f] }
 0x113   : > { %10881 = vmatprep.mubr.msk.f32.mxu1 %vm226_vm1, %v4586_v62  ;;  %v5380_v62 = vld [vmem:[#allocation3 + $0xe0] sm:$0xff]  ;;  %v6098_v19 = vrot.slane %v9526_v12, 1  ;;  %v6182_v32 = vrot.slane %v9526_v12, 2 }
 0x114   : > { %11840 = vmatpush3.bf16.msra.mxu0 %v12963_v13  ;;  %v13528_v6 = vpack.c.bf16 %v5381_v1, %v5380_v62  ;;  %v9570_v62 = vld [vmem:[%s12765_s21 + $0xb8] sm:$0x3f] }
 0x115   : > { %11912 = vmatpush3.bf16.msra.mxu1 %v12963_v13  ;;  %11842 = vmatprep.subr.bf16.mxu0 %v12973_v17  ;;  %v13335_v13 = vld [vmem:[%s12765_s21 + $0x68] sm:$0x3f] }
 0x116   : > { %11914 = vmatprep.subr.bf16.mxu1 %v12973_v17  ;;  %v4782_v22 = vrot.slane %v13335_v13, 1  ;;  %v4947_v41 = vrot.slane %v13335_v13, 2 }
 0x117   : > { %10783 = vmatmul.mubr.msk.f32.vlgmr.msra.gmra.mrb[4].mxu0 %vm226_vm1, %v13247_v8  ;;  %v13483_v8 = vrot.slane %v13449_v60, 2 }
 0x118   : > { %10882 = vmatmul.mubr.msk.f32.vlgmr.msra.gmra.mrb[4].mxu1 %vm226_vm1, %v4585_v10  ;;  %11844 = vmatpush3.bf16.msra.mxu0 %v12973_v17  ;;  %v4783_v28 = vsel %vm222_vm0, %v3871_v31, %v4782_v22  ;;  %v4948_v47 = vsel %vm390_vm2, %v3959_v39, %v4947_v41  ;;  %v5472_v31 = vrot.slane %v13436_v57, 2  ;;  %v5293_v39 = vld [vmem:[#allocation3 + $0xc0] sm:$0xff] }
 0x119   : > { %11916 = vmatpush3.bf16.msra.mxu1 %v12973_v17  ;;  %11846 = vmatprep.subr.bf16.mxu0 %v12983_v25  ;;  %v13348_v17 = vrot.slane %v13338_v15, 1 }
 0x11a   : > { %11918 = vmatprep.subr.bf16.mxu1 %v12983_v25  ;;  %10793 = vmatprep.mubr.msk.f32.mxu0 %vm226_vm1, %v3961_v43  ;;  %v13499_v43 = vsel %vm390_vm2, %v5472_v31, %v13483_v8 }
 0x11b   : > { %10892 = vmatprep.mubr.msk.f32.mxu1 %vm226_vm1, %v4670_v14  ;;  %v5382_v14 = vld [vmem:[#allocation3 + $0xf0] sm:$0xff] }
 0x11c   : > { %11848 = vmatpush3.bf16.msra.mxu0 %v12983_v25 }
 0x11d   : > { %11920 = vmatpush3.bf16.msra.mxu1 %v12983_v25  ;;  %11922 = vmatprep.subr.bf16.mxu0 %v13342_v16  ;;  %v13364_v25 = vsel %vm222_vm0, %v4584_v58, %v13348_v17  ;;  %v5296_v58 = vld [vmem:[#allocation3 + $0xd8] sm:$0xff] }
 0x11e   : > { %11994 = vmatprep.subr.bf16.mxu1 %v13342_v16  ;;  %v13515_v10 = vpack.c.bf16 %v5296_v58, %v5295_v53  ;;  %v13729_v58 = vld [vmem:[%s12765_s21 + $0xb0] sm:$0xff] }
 0x11f   : > { %10794 = vmatmul.mubr.msk.f32.vlgmr.msra.gmra.mrb[4].mxu0 %vm226_vm1, %v13267_v9  ;;  %v5294_v9 = vld [vmem:[#allocation3 + $0xc8] sm:$0xff]  ;;  %v7610_v1 = vrot.slane %v13729_v58, 1 }
 0x120   : > { %10893 = vmatmul.mubr.msk.f32.vlgmr.msra.gmra.mrb[4].mxu1 %vm226_vm1, %v4669_v11  ;;  %11924 = vmatpush3.bf16.msra.mxu0 %v13342_v16  ;;  %v13522_v11 = vld [vmem:[%s12765_s21 + $0x90] sm:$0xff] }
 0x121   : > { %11996 = vmatpush3.bf16.msra.mxu1 %v13342_v16  ;;  %11926 = vmatprep.subr.bf16.mxu0 %v13354_v23  ;;  %v6181_v30 = vrot.slane %v13522_v11, 2 }
 0x122   : > { %11998 = vmatprep.subr.bf16.mxu1 %v13354_v23  ;;  %10903 = vmatprep.mubr.msk.f32.mxu0 %vm226_vm1, %v4783_v28  ;;  %v5470_v28 = vld [vmem:[#allocation3 + $0x110] sm:$0xff] }
 0x123   : > { %11002 = vmatprep.mubr.msk.f32.mxu1 %vm226_vm1, %v13364_v25  ;;  %v6183_v35 = vsel %vm390_vm2, %v6181_v30, %v6182_v32 }
 0x124   : > { %11928 = vmatpush3.bf16.msra.mxu0 %v13354_v23 }
 0x125   : > { %12000 = vmatpush3.bf16.msra.mxu1 %v13354_v23  ;;  %11930 = vmatprep.subr.bf16.mxu0 %v13370_v29 }
 0x126   : > { %12002 = vmatprep.subr.bf16.mxu1 %v13370_v29 }
 0x127   : > { %10904 = vmatmul.mubr.msk.f32.vlgmr.msra.gmra.mrb[6].mxu0 %vm226_vm1, %v4782_v22  ;;  %v5468_v22 = vld [vmem:[#allocation3 + $0x100] sm:$0xff] }
 0x128   : > { %11003 = vmatmul.mubr.msk.f32.vlgmr.msra.gmra.mrb[6].mxu1 %vm226_vm1, %v13348_v17  ;;  %11932 = vmatpush3.bf16.msra.mxu0 %v13370_v29 }
 0x129   : > { %12004 = vmatpush3.bf16.msra.mxu1 %v13370_v29  ;;  %11934 = vmatprep.subr.bf16.mxu0 %v13379_v33 }
 0x12a   : > { %12006 = vmatprep.subr.bf16.mxu1 %v13379_v33  ;;  %10914 = vmatprep.mubr.msk.f32.mxu0 %vm226_vm1, %v13235_v21  ;;  %v5207_v21 = vld [vmem:[#allocation3 + $0xb0] sm:$0xff] }
 0x12b   : > { %11013 = vmatprep.mubr.msk.f32.mxu1 %vm226_vm1, %v13296_v49  ;;  %v13489_v36 = vpack.c.bf16 %v5208_v24, %v5207_v21  ;;  %v6724_v21 = vsel %vm390_vm2, %v6181_v30, %v13636_v7  ;;  %v9568_v24 = vld [vmem:[%s12765_s21 + $0xa8] sm:$0x3f] }
 0x12c   : > { %11936 = vmatpush3.bf16.msra.mxu0 %v13379_v33 }
 0x12d   : > { %12008 = vmatpush3.bf16.msra.mxu1 %v13379_v33  ;;  %11938 = vmatprep.subr.bf16.mxu0 %v13388_v37 }
 0x12e   : > { %12010 = vmatprep.subr.bf16.mxu1 %v13388_v37 }
 0x12f   : > { %10915 = vmatmul.mubr.msk.f32.vlgmr.msra.gmra.mrb[6].mxu0 %vm226_vm1, %v13335_v13  ;;  %v5383_v13 = vld [vmem:[#allocation3 + $0xf8] sm:$0xff] }
 0x130   : > { %11014 = vmatmul.mubr.msk.f32.vlgmr.msra.gmra.mrb[6].mxu1 %vm226_vm1, %v13338_v15  ;;  %11940 = vmatpush3.bf16.msra.mxu0 %v13388_v37  ;;  %v13540_v20 = vpack.c.bf16 %v5383_v13, %v5382_v14  ;;  %v7694_v14 = vrot.slane %v13729_v58, 2  ;;  %v7695_v13 = vrot.slane %v9570_v62, 2 }
 0x131   : > { %12012 = vmatpush3.bf16.msra.mxu1 %v13388_v37  ;;  %11942 = vmatprep.subr.bf16.mxu0 %v13402_v44 }
 0x132   : > { %12014 = vmatprep.subr.bf16.mxu1 %v13402_v44  ;;  %10925 = vmatprep.mubr.msk.f32.mxu0 %vm226_vm1, %v4948_v47 }
 0x133   : > { %11024 = vmatprep.mubr.msk.f32.mxu1 %vm226_vm1, %v13415_v48 }
 0x134   : > { %11944 = vmatpush3.bf16.msra.mxu0 %v13402_v44 }
 0x135   : > { %12016 = vmatpush3.bf16.msra.mxu1 %v13402_v44  ;;  %11946 = vmatprep.subr.bf16.mxu0 %v13421_v50 }
 0x136   : > { %12018 = vmatprep.subr.bf16.mxu1 %v13421_v50 }
 0x137   : > { %10926 = vmatmul.mubr.msk.f32.vlgmr.msra.gmra.mrb[6].mxu0 %vm226_vm1, %v4947_v41 }
 0x138   : > { %11025 = vmatmul.mubr.msk.f32.vlgmr.msra.gmra.mrb[6].mxu1 %vm226_vm1, %v13396_v42  ;;  %11948 = vmatpush3.bf16.msra.mxu0 %v13421_v50 }
 0x139   : > { %12020 = vmatpush3.bf16.msra.mxu1 %v13421_v50  ;;  %11950 = vmatprep.subr.bf16.mxu0 %v13430_v54 }
 0x13a   : > { %12022 = vmatprep.subr.bf16.mxu1 %v13430_v54  ;;  %10936 = vmatprep.mubr.msk.f32.mxu0 %vm226_vm1, %v13296_v49  ;;  %v13505_v49 = vpack.c.bf16 %v5294_v9, %v5293_v39 }
 0x13b   : > { %11035 = vmatprep.mubr.msk.f32.mxu1 %vm226_vm1, %v13436_v57 }
 0x13c   : > { %11952 = vmatpush3.bf16.msra.mxu0 %v13430_v54 }
 0x13d   : > { %12024 = vmatpush3.bf16.msra.mxu1 %v13430_v54  ;;  %11954 = vmatprep.subr.bf16.mxu0 %v13442_v59 }
 0x13e   : > { %12026 = vmatprep.subr.bf16.mxu1 %v13442_v59 }
 0x13f   : > { %10937 = vmatmul.mubr.msk.f32.vlgmr.msra.gmra.mrb[6].mxu0 %vm226_vm1, %v13338_v15  ;;  %v6097_v15 = vrot.slane %v13522_v11, 1 }
 0x140   : > { %11036 = vmatmul.mubr.msk.f32.vlgmr.msra.gmra.mrb[6].mxu1 %vm226_vm1, %v13449_v60  ;;  %11956 = vmatpush3.bf16.msra.mxu0 %v13442_v59 }
 0x141   : > { %12028 = vmatpush3.bf16.msra.mxu1 %v13442_v59  ;;  %11958 = vmatprep.subr.bf16.mxu0 %v13459_v4  ;;  %v6099_v26 = vsel %vm222_vm0, %v6097_v15, %v6098_v19  ;;  %v13599_v56 = vsel %vm222_vm0, %v6097_v15, %v13583_v51  ;;  %v7696_v15 = vsel %vm390_vm2, %v7694_v14, %v7695_v13 }
 0x142   : > { %12030 = vmatprep.subr.bf16.mxu1 %v13459_v4  ;;  %10947 = vmatprep.mubr.msk.f32.mxu0 %vm226_vm1, %v13364_v25  ;;  %v5471_v25 = vld [vmem:[#allocation3 + $0x118] sm:$0xff] }
 0x143   : > { %11046 = vmatprep.mubr.msk.f32.mxu1 %vm226_vm1, %v13469_v18  ;;  %v13560_v34 = vpack.c.bf16 %v5471_v25, %v5470_v28 }
 0x144   : > { %11960 = vmatpush3.bf16.msra.mxu0 %v13459_v4 }
 0x145   : > { %12032 = vmatpush3.bf16.msra.mxu1 %v13459_v4  ;;  %11962 = vmatprep.subr.bf16.mxu0 %v13475_v5 }
 0x146   : > { %12034 = vmatprep.subr.bf16.mxu1 %v13475_v5 }
 0x147   : > { %10948 = vmatmul.mubr.msk.f32.vlgmr.msra.gmra.mrb[6].mxu0 %vm226_vm1, %v13348_v17  ;;  %v5469_v17 = vld [vmem:[#allocation3 + $0x108] sm:$0xff] }
 0x148   : > { %11047 = vmatmul.mubr.msk.f32.vlgmr.msra.gmra.mrb[6].mxu1 %vm226_vm1, %v13453_v2  ;;  %11964 = vmatpush3.bf16.msra.mxu0 %v13475_v5  ;;  %v13550_v27 = vpack.c.bf16 %v5469_v17, %v5468_v22  ;;  %v13771_v22 = vld [vmem:[%s12765_s21 + $0xb8] sm:$0x3f] }
 0x149   : > { %12036 = vmatpush3.bf16.msra.mxu1 %v13475_v5  ;;  %11966 = vmatprep.subr.bf16.mxu0 %v13489_v36 }
 0x14a   : > { %12038 = vmatprep.subr.bf16.mxu1 %v13489_v36  ;;  %10958 = vmatprep.mubr.msk.f32.mxu0 %vm226_vm1, %v13415_v48  ;;  %v6295_v48 = vrot.slane %v13571_v38, 1 }
 0x14b   : > { %11057 = vmatprep.mubr.msk.f32.mxu1 %vm226_vm1, %v13499_v43 }
 0x14c   : > { %11968 = vmatpush3.bf16.msra.mxu0 %v13489_v36  ;;  %v6296_v55 = vsel %vm222_vm0, %v5384_v0, %v6295_v48 }
 0x14d   : > { %12040 = vmatpush3.bf16.msra.mxu1 %v13489_v36  ;;  %11970 = vmatprep.subr.bf16.mxu0 %v13505_v49 }
 0x14e   : > { %12042 = vmatprep.subr.bf16.mxu1 %v13505_v49 }
 0x14f   : > { %10959 = vmatmul.mubr.msk.f32.vlgmr.msra.gmra.mrb[6].mxu0 %vm226_vm1, %v13396_v42 }
 0x150   : > { %11058 = vmatmul.mubr.msk.f32.vlgmr.msra.gmra.mrb[6].mxu1 %vm226_vm1, %v13483_v8  ;;  %11972 = vmatpush3.bf16.msra.mxu0 %v13505_v49 }
 0x151   : > { %12044 = vmatpush3.bf16.msra.mxu1 %v13505_v49  ;;  %11974 = vmatprep.subr.bf16.mxu0 %v13515_v10 }
 0x152   : > { %12046 = vmatprep.subr.bf16.mxu1 %v13515_v10  ;;  %10969 = vmatprep.mubr.msk.f32.mxu0 %vm226_vm1, %v13436_v57 }
 0x153   : > { %11068 = vmatprep.mubr.msk.f32.mxu1 %vm226_vm1, %v13522_v11 }
 0x154   : > { %11976 = vmatpush3.bf16.msra.mxu0 %v13515_v10 }
 0x155   : > { %12048 = vmatpush3.bf16.msra.mxu1 %v13515_v10  ;;  %11978 = vmatprep.subr.bf16.mxu0 %v13528_v6 }
 0x156   : > { %12050 = vmatprep.subr.bf16.mxu1 %v13528_v6 }
 0x157   : > { %10970 = vmatmul.mubr.msk.f32.vlgmr.msra.gmra.mrb[6].mxu0 %vm226_vm1, %v13449_v60  ;;  %v13609_v60 = vld [vmem:[#allocation5] ss:$0 sm:$0xff] }
 0x158   : > { %11069 = vmatmul.mubr.msk.f32.vlgmr.msra.gmra.mrb[6].mxu1 %vm226_vm1, %v9526_v12  ;;  %11980 = vmatpush3.bf16.msra.mxu0 %v13528_v6 }
 0x159   : > { %12052 = vmatpush3.bf16.msra.mxu1 %v13528_v6  ;;  %11982 = vmatprep.subr.bf16.mxu0 %v13540_v20 }
 0x15a   : > { %12054 = vmatprep.subr.bf16.mxu1 %v13540_v20  ;;  %10980 = vmatprep.mubr.msk.f32.mxu0 %vm226_vm1, %v13469_v18  ;;  %v6461_v18 = vsel %vm390_vm2, %v5472_v31, %v6460_v3 }
 0x15b   : > { %11079 = vmatprep.mubr.msk.f32.mxu1 %vm226_vm1, %v6099_v26 }
 0x15c   : > { %11984 = vmatpush3.bf16.msra.mxu0 %v13540_v20 }
 0x15d   : > { %12056 = vmatpush3.bf16.msra.mxu1 %v13540_v20  ;;  %11986 = vmatprep.subr.bf16.mxu0 %v13550_v27 }
 0x15e   : > { %12058 = vmatprep.subr.bf16.mxu1 %v13550_v27 }
 0x15f   : > { %10981 = vmatmul.mubr.msk.f32.vlgmr.msra.gmra.mrb[6].mxu0 %vm226_vm1, %v13453_v2 }
 0x160   : > { %11080 = vmatmul.mubr.msk.f32.vlgmr.msra.gmra.mrb[6].mxu1 %vm226_vm1, %v6098_v19  ;;  %11988 = vmatpush3.bf16.msra.mxu0 %v13550_v27  ;;  %v13768_v19 = vld [vmem:[%s12765_s21 + $0xa8] sm:$0x3f] }
 0x161   : > { %12060 = vmatpush3.bf16.msra.mxu1 %v13550_v27  ;;  %11990 = vmatprep.subr.bf16.mxu0 %v13560_v34 }
 0x162   : > { %12062 = vmatprep.subr.bf16.mxu1 %v13560_v34  ;;  %v10399_v41 = vpop.f32.mrb[0].mxu0  ;;  %10991 = vmatprep.mubr.msk.f32.mxu0 %vm226_vm1, %v13499_v43  ;;  %v13700_v43 = vrot.slane %v9568_v24, 2 }
 0x163   : > { %v10498_v42 = vpop.f32.mrb[0].mxu1  ;;  %11090 = vmatprep.mubr.msk.f32.mxu1 %vm226_vm1, %v6183_v35  ;;  %v996_v46 = vpop.f32.mrb[1].mxu0  ;;  %v13779_v35 = vrot.slane %v13771_v22, 1 }
 0x164   : > { %v1717_v45 = vmax.f32 %v10399_v41, %v10498_v42  ;;  %v1705_v47 = vpop.f32.mrb[1].mxu1  ;;  %11992 = vmatpush3.bf16.msra.mxu0 %v13560_v34 }
 0x165   : > { %v1716_v52 = vmax.f32 %v996_v46, %v1705_v47  ;;  %12064 = vmatpush3.bf16.msra.mxu1 %v13560_v34  ;;  %12066 = vmatprep.subr.bf16.mxu0 %v13342_v16  ;;  %v13795_v41 = vsel %vm222_vm0, %v7610_v1, %v13779_v35  ;;  %v13824_v47 = vrot.slane %v13771_v22, 2 }
 0x166   : > { %1721 = vst.msk [vmem:[#allocation2 + $0x8] sm:$0xf] %vm1720_vm3, %v1717_v45  ;;  %12138 = vmatprep.subr.bf16.mxu1 %v13342_v16 }
 0x167   : > { %1719 = vst.msk [vmem:[#allocation2] sm:$0xff] %vm1718_vm4, %v1716_v52  ;;  %10992 = vmatmul.mubr.msk.f32.vlgmr.msra.gmra.mrb[6].mxu0 %vm226_vm1, %v13483_v8  ;;  %v13679_v8 = vrot.slane %v9568_v24, 1 }
 0x168   : > { %11091 = vmatmul.mubr.msk.f32.vlgmr.msra.gmra.mrb[6].mxu1 %vm226_vm1, %v6182_v32  ;;  %12068 = vmatpush3.bf16.msra.mxu0 %v13342_v16  ;;  %v7808_v32 = vrot.slane %v13768_v19, 1 }
 0x169   : > { %12140 = vmatpush3.bf16.msra.mxu1 %v13342_v16  ;;  %12070 = vmatprep.subr.bf16.mxu0 %v13354_v23 }
 0x16a   : > { %12142 = vmatprep.subr.bf16.mxu1 %v13354_v23  ;;  %11101 = vmatprep.mubr.msk.f32.mxu0 %vm226_vm1, %v6296_v55 }
 0x16b   : > { %11200 = vmatprep.mubr.msk.f32.mxu1 %vm226_vm1, %v13599_v56 }
 0x16c   : > { %12072 = vmatpush3.bf16.msra.mxu0 %v13354_v23 }
 0x16d   : > { %12144 = vmatpush3.bf16.msra.mxu1 %v13354_v23  ;;  %12074 = vmatprep.subr.bf16.mxu0 %v13370_v29 }
 0x16e   : > { %v1722_v61 = vld [vmem:[#allocation2] ss:$2 sm:$0x3f]  ;;  %v1724_v63 = vld [vmem:[#allocation2 + $0x1] ss:$2 sm:$0x3f]  ;;  %12146 = vmatprep.subr.bf16.mxu1 %v13370_v29 }
 0x16f   : > { %v1725_v0 = vmax.f32 %v1722_v61, %v1724_v63  ;;  %11102 = vmatmul.mubr.msk.f32.vlgmr.msra.gmra.mrb[8].mxu0 %vm226_vm1, %v6295_v48 }
 0x170   : > { %11201 = vmatmul.mubr.msk.f32.vlgmr.msra.gmra.mrb[8].mxu1 %vm226_vm1, %v13583_v51  ;;  %12076 = vmatpush3.bf16.msra.mxu0 %v13370_v29 }
 0x171   : > { %v1732_v2 = vadd.f32 %v13609_v60, %v1725_v0  ;;  %12148 = vmatpush3.bf16.msra.mxu1 %v13370_v29  ;;  %12078 = vmatprep.subr.bf16.mxu0 %v13379_v33 }
 0x172   : > { %12150 = vmatprep.subr.bf16.mxu1 %v13379_v33  ;;  %11112 = vmatprep.mubr.msk.f32.mxu0 %vm226_vm1, %v13436_v57  ;;  %v13667_v57 = vld [vmem:[%s12765_s21 + $0xa0] sm:$0xff] }
 0x173   : > { %1734 = vst.msk [vmem:[%s13618_s25] sm:$0x3f] %vm1733_vm5, %v1732_v2  ;;  %11211 = vmatprep.mubr.msk.f32.mxu1 %vm226_vm1, %v13522_v11  ;;  %v6897_v31 = vrot.slane %v13667_v57, 1  ;;  %v6985_v9 = vrot.slane %v13667_v57, 2 }
 0x174   : > { %12080 = vmatpush3.bf16.msra.mxu0 %v13379_v33 }
 0x175   : > { %12152 = vmatpush3.bf16.msra.mxu1 %v13379_v33  ;;  %12082 = vmatprep.subr.bf16.mxu0 %v13388_v37  ;;  %v6899_v39 = vsel %vm222_vm0, %v6897_v31, %v13679_v8  ;;  %v6987_v53 = vsel %vm390_vm2, %v6985_v9, %v13700_v43 }
 0x176   : > { %12154 = vmatprep.subr.bf16.mxu1 %v13388_v37 }
 0x177   : > { %11113 = vmatmul.mubr.msk.f32.vlgmr.msra.gmra.mrb[8].mxu0 %vm226_vm1, %v13571_v38 }
 0x178   : > { %11212 = vmatmul.mubr.msk.f32.vlgmr.msra.gmra.mrb[8].mxu1 %vm226_vm1, %v13574_v40  ;;  %12084 = vmatpush3.bf16.msra.mxu0 %v13388_v37 }
 0x179   : > { %12156 = vmatpush3.bf16.msra.mxu1 %v13388_v37  ;;  %12086 = vmatprep.subr.bf16.mxu0 %v13402_v44 }
 0x17a   : > { %12158 = vmatprep.subr.bf16.mxu1 %v13402_v44  ;;  %11123 = vmatprep.mubr.msk.f32.mxu0 %vm226_vm1, %v6461_v18 }
 0x17b   : > { %11222 = vmatprep.mubr.msk.f32.mxu1 %vm226_vm1, %v6724_v21 }
 0x17c   : > { %12088 = vmatpush3.bf16.msra.mxu0 %v13402_v44 }
 0x17d   : > { %12160 = vmatpush3.bf16.msra.mxu1 %v13402_v44  ;;  %12090 = vmatprep.subr.bf16.mxu0 %v13421_v50 }
 0x17e   : > { %12162 = vmatprep.subr.bf16.mxu1 %v13421_v50 }
 0x17f   : > { %11124 = vmatmul.mubr.msk.f32.vlgmr.msra.gmra.mrb[8].mxu0 %vm226_vm1, %v6460_v3 }
 0x180   : > { %11223 = vmatmul.mubr.msk.f32.vlgmr.msra.gmra.mrb[8].mxu1 %vm226_vm1, %v13636_v7  ;;  %12092 = vmatpush3.bf16.msra.mxu0 %v13421_v50 }
 0x181   : > { %12164 = vmatpush3.bf16.msra.mxu1 %v13421_v50  ;;  %12094 = vmatprep.subr.bf16.mxu0 %v13430_v54 }
 0x182   : > { %12166 = vmatprep.subr.bf16.mxu1 %v13430_v54  ;;  %11134 = vmatprep.mubr.msk.f32.mxu0 %vm226_vm1, %v13522_v11  ;;  %v7611_v11 = vrot.slane %v9570_v62, 1 }
 0x183   : > { %11233 = vmatprep.mubr.msk.f32.mxu1 %vm226_vm1, %v13667_v57 }
 0x184   : > { %12096 = vmatpush3.bf16.msra.mxu0 %v13430_v54  ;;  %v7612_v12 = vsel %vm222_vm0, %v7610_v1, %v7611_v11 }
 0x185   : > { %12168 = vmatpush3.bf16.msra.mxu1 %v13430_v54  ;;  %12098 = vmatprep.subr.bf16.mxu0 %v13442_v59 }
 0x186   : > { %12170 = vmatprep.subr.bf16.mxu1 %v13442_v59 }
 0x187   : > { %11135 = vmatmul.mubr.msk.f32.vlgmr.msra.gmra.mrb[8].mxu0 %vm226_vm1, %v13574_v40  ;;  %v7809_v40 = vsel %vm222_vm0, %v6897_v31, %v7808_v32 }
 0x188   : > { %11234 = vmatmul.mubr.msk.f32.vlgmr.msra.gmra.mrb[8].mxu1 %vm226_vm1, %v9568_v24  ;;  %12100 = vmatpush3.bf16.msra.mxu0 %v13442_v59 }
 0x189   : > { %12172 = vmatpush3.bf16.msra.mxu1 %v13442_v59  ;;  %12102 = vmatprep.subr.bf16.mxu0 %v13459_v4 }
 0x18a   : > { %12174 = vmatprep.subr.bf16.mxu1 %v13459_v4  ;;  %11145 = vmatprep.mubr.msk.f32.mxu0 %vm226_vm1, %v13599_v56 }
 0x18b   : > { %11244 = vmatprep.mubr.msk.f32.mxu1 %vm226_vm1, %v6899_v39 }
 0x18c   : > { %12104 = vmatpush3.bf16.msra.mxu0 %v13459_v4 }
 0x18d   : > { %12176 = vmatpush3.bf16.msra.mxu1 %v13459_v4  ;;  %12106 = vmatprep.subr.bf16.mxu0 %v13475_v5 }
 0x18e   : > { %12178 = vmatprep.subr.bf16.mxu1 %v13475_v5 }
 0x18f   : > { %11146 = vmatmul.mubr.msk.f32.vlgmr.msra.gmra.mrb[8].mxu0 %vm226_vm1, %v13583_v51 }
 0x190   : > { %11245 = vmatmul.mubr.msk.f32.vlgmr.msra.gmra.mrb[8].mxu1 %vm226_vm1, %v13679_v8  ;;  %12108 = vmatpush3.bf16.msra.mxu0 %v13475_v5 }
 0x191   : > { %12180 = vmatpush3.bf16.msra.mxu1 %v13475_v5  ;;  %12110 = vmatprep.subr.bf16.mxu0 %v13489_v36 }
 0x192   : > { %12182 = vmatprep.subr.bf16.mxu1 %v13489_v36  ;;  %11156 = vmatprep.mubr.msk.f32.mxu0 %vm226_vm1, %v6724_v21 }
 0x193   : > { %11255 = vmatprep.mubr.msk.f32.mxu1 %vm226_vm1, %v6987_v53 }
 0x194   : > { %12112 = vmatpush3.bf16.msra.mxu0 %v13489_v36 }
 0x195   : > { %12184 = vmatpush3.bf16.msra.mxu1 %v13489_v36  ;;  %12114 = vmatprep.subr.bf16.mxu0 %v13505_v49 }
 0x196   : > { %12186 = vmatprep.subr.bf16.mxu1 %v13505_v49 }
 0x197   : > { %11157 = vmatmul.mubr.msk.f32.vlgmr.msra.gmra.mrb[8].mxu0 %vm226_vm1, %v13636_v7 }
 0x198   : > { %11256 = vmatmul.mubr.msk.f32.vlgmr.msra.gmra.mrb[8].mxu1 %vm226_vm1, %v13700_v43  ;;  %12116 = vmatpush3.bf16.msra.mxu0 %v13505_v49 }
 0x199   : > { %12188 = vmatpush3.bf16.msra.mxu1 %v13505_v49  ;;  %12118 = vmatprep.subr.bf16.mxu0 %v13515_v10 }
 0x19a   : > { %12190 = vmatprep.subr.bf16.mxu1 %v13515_v10  ;;  %11167 = vmatprep.mubr.msk.f32.mxu0 %vm226_vm1, %v13667_v57 }
 0x19b   : > { %11266 = vmatprep.mubr.msk.f32.mxu1 %vm226_vm1, %v13729_v58 }
 0x19c   : > { %12120 = vmatpush3.bf16.msra.mxu0 %v13515_v10 }
 0x19d   : > { %12192 = vmatpush3.bf16.msra.mxu1 %v13515_v10  ;;  %12122 = vmatprep.subr.bf16.mxu0 %v13528_v6 }
 0x19e   : > { %12194 = vmatprep.subr.bf16.mxu1 %v13528_v6 }
 0x19f   : > { %11168 = vmatmul.mubr.msk.f32.vlgmr.msra.gmra.mrb[8].mxu0 %vm226_vm1, %v9568_v24 }
 0x1a0   : > { %11267 = vmatmul.mubr.msk.f32.vlgmr.msra.gmra.mrb[8].mxu1 %vm226_vm1, %v9570_v62  ;;  %12124 = vmatpush3.bf16.msra.mxu0 %v13528_v6 }
 0x1a1   : > { %12196 = vmatpush3.bf16.msra.mxu1 %v13528_v6  ;;  %12126 = vmatprep.subr.bf16.mxu0 %v13540_v20 }
 0x1a2   : > { %12198 = vmatprep.subr.bf16.mxu1 %v13540_v20  ;;  %11178 = vmatprep.mubr.msk.f32.mxu0 %vm226_vm1, %v6899_v39 }
 0x1a3   : > { %11277 = vmatprep.mubr.msk.f32.mxu1 %vm226_vm1, %v7612_v12 }
 0x1a4   : > { %12128 = vmatpush3.bf16.msra.mxu0 %v13540_v20 }
 0x1a5   : > { %12200 = vmatpush3.bf16.msra.mxu1 %v13540_v20  ;;  %12130 = vmatprep.subr.bf16.mxu0 %v13550_v27 }
 0x1a6   : > { %12202 = vmatprep.subr.bf16.mxu1 %v13550_v27 }
 0x1a7   : > { %11179 = vmatmul.mubr.msk.f32.vlgmr.msra.gmra.mrb[8].mxu0 %vm226_vm1, %v13679_v8 }
 0x1a8   : > { %11278 = vmatmul.mubr.msk.f32.vlgmr.msra.gmra.mrb[8].mxu1 %vm226_vm1, %v7611_v11  ;;  %12132 = vmatpush3.bf16.msra.mxu0 %v13550_v27 }
 0x1a9   : > { %12204 = vmatpush3.bf16.msra.mxu1 %v13550_v27  ;;  %12134 = vmatprep.subr.bf16.mxu0 %v13560_v34 }
 0x1aa   : > { %12206 = vmatprep.subr.bf16.mxu1 %v13560_v34  ;;  %v10597_v17 = vpop.f32.mrb[2].mxu0  ;;  %11189 = vmatprep.mubr.msk.f32.mxu0 %vm226_vm1, %v6987_v53 }
 0x1ab   : > { %v10696_v26 = vpop.f32.mrb[2].mxu1  ;;  %11288 = vmatprep.mubr.msk.f32.mxu1 %vm226_vm1, %v7696_v15  ;;  %v2519_v25 = vpop.f32.mrb[3].mxu0 }
 0x1ac   : > { %v3240_v28 = vmax.f32 %v10597_v17, %v10696_v26  ;;  %v3228_v30 = vpop.f32.mrb[3].mxu1  ;;  %12136 = vmatpush3.bf16.msra.mxu0 %v13560_v34 }
 0x1ad   : > { %v3239_v38 = vmax.f32 %v2519_v25, %v3228_v30  ;;  %12208 = vmatpush3.bf16.msra.mxu1 %v13560_v34  ;;  %12210 = vmatprep.subr.bf16.mxu0 %v13342_v16 }
 0x1ae   : > { %3242 = vst.msk [vmem:[#allocation2 + $0x8] sm:$0xf] %vm1720_vm3, %v3240_v28  ;;  %12282 = vmatprep.subr.bf16.mxu1 %v13342_v16 }
 0x1af   : > { %3241 = vst.msk [vmem:[#allocation2] sm:$0xff] %vm1718_vm4, %v3239_v38  ;;  %11190 = vmatmul.mubr.msk.f32.vlgmr.msra.gmra.mrb[8].mxu0 %vm226_vm1, %v13700_v43 }
 0x1b0   : > { %11289 = vmatmul.mubr.msk.f32.vlgmr.msra.gmra.mrb[8].mxu1 %vm226_vm1, %v7695_v13  ;;  %12212 = vmatpush3.bf16.msra.mxu0 %v13342_v16 }
 0x1b1   : > { %12284 = vmatpush3.bf16.msra.mxu1 %v13342_v16  ;;  %12214 = vmatprep.subr.bf16.mxu0 %v13354_v23 }
 0x1b2   : > { %12286 = vmatprep.subr.bf16.mxu1 %v13354_v23  ;;  %11299 = vmatprep.mubr.msk.f32.mxu0 %vm226_vm1, %v7809_v40 }
 0x1b3   : > { %11398 = vmatprep.mubr.msk.f32.mxu1 %vm226_vm1, %v13795_v41 }
 0x1b4   : > { %12216 = vmatpush3.bf16.msra.mxu0 %v13354_v23 }
 0x1b5   : > { %12288 = vmatpush3.bf16.msra.mxu1 %v13354_v23  ;;  %12218 = vmatprep.subr.bf16.mxu0 %v13370_v29  ;;  %v7973_v23 = vrot.slane %v13768_v19, 2 }
 0x1b6   : > { %v3243_v42 = vld [vmem:[#allocation2] ss:$2 sm:$0x3f]  ;;  %v3244_v45 = vld [vmem:[#allocation2 + $0x1] ss:$2 sm:$0x3f]  ;;  %12290 = vmatprep.subr.bf16.mxu1 %v13370_v29 }
 0x1b7   : > { %v3245_v16 = vmax.f32 %v3243_v42, %v3244_v45  ;;  %11300 = vmatmul.mubr.msk.f32.vlgmr.msra.gmra.mrb[10].mxu0 %vm226_vm1, %v7808_v32 }
 0x1b8   : > { %11399 = vmatmul.mubr.msk.f32.vlgmr.msra.gmra.mrb[10].mxu1 %vm226_vm1, %v13779_v35  ;;  %12220 = vmatpush3.bf16.msra.mxu0 %v13370_v29 }
 0x1b9   : > { %v3246_v46 = vadd.f32 %v13609_v60, %v3245_v16  ;;  %12292 = vmatpush3.bf16.msra.mxu1 %v13370_v29  ;;  %12222 = vmatprep.subr.bf16.mxu0 %v13379_v33  ;;  %v7974_v29 = vsel %vm390_vm2, %v6985_v9, %v7973_v23 }
 0x1ba   : > { %12294 = vmatprep.subr.bf16.mxu1 %v13379_v33  ;;  %11310 = vmatprep.mubr.msk.f32.mxu0 %vm226_vm1, %v13667_v57 }
 0x1bb   : > { %3247 = vst.msk [vmem:[%s13618_s25 + $0x6] sm:$0x3f] %vm1733_vm5, %v3246_v46  ;;  %11409 = vmatprep.mubr.msk.f32.mxu1 %vm226_vm1, %v13729_v58 }
 0x1bc   : > { %12224 = vmatpush3.bf16.msra.mxu0 %v13379_v33 }
 0x1bd   : > { %12296 = vmatpush3.bf16.msra.mxu1 %v13379_v33  ;;  %12226 = vmatprep.subr.bf16.mxu0 %v13388_v37  ;;  %v8237_v33 = vsel %vm390_vm2, %v7694_v14, %v13824_v47 }
 0x1be   : > { %12298 = vmatprep.subr.bf16.mxu1 %v13388_v37 }
 0x1bf   : > { %11311 = vmatmul.mubr.msk.f32.vlgmr.msra.gmra.mrb[10].mxu0 %vm226_vm1, %v13768_v19 }
 0x1c0   : > { %11410 = vmatmul.mubr.msk.f32.vlgmr.msra.gmra.mrb[10].mxu1 %vm226_vm1, %v13771_v22  ;;  %12228 = vmatpush3.bf16.msra.mxu0 %v13388_v37 }
 0x1c1   : > { %12300 = vmatpush3.bf16.msra.mxu1 %v13388_v37  ;;  %12230 = vmatprep.subr.bf16.mxu0 %v13402_v44  ;;  %v9611_v37 = vld [vmem:[%s12765_s21 + $0xc0] sm:$0xff] }
 0x1c2   : > { %12302 = vmatprep.subr.bf16.mxu1 %v13402_v44  ;;  %11321 = vmatprep.mubr.msk.f32.mxu0 %vm226_vm1, %v7974_v29  ;;  %v8410_v48 = vrot.slane %v9611_v37, 1 }
 0x1c3   : > { %11420 = vmatprep.mubr.msk.f32.mxu1 %vm226_vm1, %v8237_v33 }
 0x1c4   : > { %12232 = vmatpush3.bf16.msra.mxu0 %v13402_v44 }
 0x1c5   : > { %12304 = vmatpush3.bf16.msra.mxu1 %v13402_v44  ;;  %12234 = vmatprep.subr.bf16.mxu0 %v13421_v50  ;;  %v9612_v44 = vld [vmem:[%s12765_s21 + $0xc8] sm:$0x3f] }
 0x1c6   : > { %12306 = vmatprep.subr.bf16.mxu1 %v13421_v50  ;;  %v13863_v51 = vrot.slane %v9612_v44, 1  ;;  %v13881_v52 = vrot.slane %v9612_v44, 2 }
 0x1c7   : > { %11322 = vmatmul.mubr.msk.f32.vlgmr.msra.gmra.mrb[10].mxu0 %vm226_vm1, %v7973_v23 }
 0x1c8   : > { %11421 = vmatmul.mubr.msk.f32.vlgmr.msra.gmra.mrb[10].mxu1 %vm226_vm1, %v13824_v47  ;;  %12236 = vmatpush3.bf16.msra.mxu0 %v13421_v50 }
 0x1c9   : > { %12308 = vmatpush3.bf16.msra.mxu1 %v13421_v50  ;;  %12238 = vmatprep.subr.bf16.mxu0 %v13430_v54  ;;  %v8412_v50 = vsel %vm222_vm0, %v8410_v48, %v13863_v51 }
 0x1ca   : > { %12310 = vmatprep.subr.bf16.mxu1 %v13430_v54  ;;  %11332 = vmatprep.mubr.msk.f32.mxu0 %vm226_vm1, %v13729_v58 }
 0x1cb   : > { %11431 = vmatprep.mubr.msk.f32.mxu1 %vm226_vm1, %v9611_v37 }
 0x1cc   : > { %12240 = vmatpush3.bf16.msra.mxu0 %v13430_v54 }
 0x1cd   : > { %12312 = vmatpush3.bf16.msra.mxu1 %v13430_v54  ;;  %12242 = vmatprep.subr.bf16.mxu0 %v13442_v59  ;;  %v8498_v54 = vrot.slane %v9611_v37, 2 }
 0x1ce   : > { %12314 = vmatprep.subr.bf16.mxu1 %v13442_v59 }
 0x1cf   : > { %11333 = vmatmul.mubr.msk.f32.vlgmr.msra.gmra.mrb[10].mxu0 %vm226_vm1, %v13771_v22 }
 0x1d0   : > { %11432 = vmatmul.mubr.msk.f32.vlgmr.msra.gmra.mrb[10].mxu1 %vm226_vm1, %v9612_v44  ;;  %12244 = vmatpush3.bf16.msra.mxu0 %v13442_v59 }
 0x1d1   : > { %12316 = vmatpush3.bf16.msra.mxu1 %v13442_v59  ;;  %12246 = vmatprep.subr.bf16.mxu0 %v13459_v4  ;;  %v8500_v59 = vsel %vm390_vm2, %v8498_v54, %v13881_v52 }
 0x1d2   : > { %12318 = vmatprep.subr.bf16.mxu1 %v13459_v4  ;;  %11343 = vmatprep.mubr.msk.f32.mxu0 %vm226_vm1, %v13795_v41 }
 0x1d3   : > { %11442 = vmatprep.mubr.msk.f32.mxu1 %vm226_vm1, %v8412_v50 }
 0x1d4   : > { %12248 = vmatpush3.bf16.msra.mxu0 %v13459_v4 }
 0x1d5   : > { %12320 = vmatpush3.bf16.msra.mxu1 %v13459_v4  ;;  %12250 = vmatprep.subr.bf16.mxu0 %v13475_v5  ;;  %v9613_v4 = vld [vmem:[%s12765_s21 + $0xd0] sm:$0xff] }
 0x1d6   : > { %12322 = vmatprep.subr.bf16.mxu1 %v13475_v5 }
 0x1d7   : > { %11344 = vmatmul.mubr.msk.f32.vlgmr.msra.gmra.mrb[10].mxu0 %vm226_vm1, %v13779_v35 }
 0x1d8   : > { %11443 = vmatmul.mubr.msk.f32.vlgmr.msra.gmra.mrb[10].mxu1 %vm226_vm1, %v13863_v51  ;;  %12252 = vmatpush3.bf16.msra.mxu0 %v13475_v5 }
 0x1d9   : > { %12324 = vmatpush3.bf16.msra.mxu1 %v13475_v5  ;;  %12254 = vmatprep.subr.bf16.mxu0 %v13489_v36  ;;  %v9614_v5 = vld [vmem:[%s12765_s21 + $0xd8] sm:$0x3f] }
 0x1da   : > { %12326 = vmatprep.subr.bf16.mxu1 %v13489_v36  ;;  %11354 = vmatprep.mubr.msk.f32.mxu0 %vm226_vm1, %v8237_v33  ;;  %v9124_v55 = vrot.slane %v9614_v5, 1  ;;  %v9208_v56 = vrot.slane %v9614_v5, 2 }
 0x1db   : > { %11453 = vmatprep.mubr.msk.f32.mxu1 %vm226_vm1, %v8500_v59 }
 0x1dc   : > { %12256 = vmatpush3.bf16.msra.mxu0 %v13489_v36 }
 0x1dd   : > { %12328 = vmatpush3.bf16.msra.mxu1 %v13489_v36  ;;  %12258 = vmatprep.subr.bf16.mxu0 %v13505_v49  ;;  %v9123_v36 = vrot.slane %v9613_v4, 1 }
 0x1de   : > { %12330 = vmatprep.subr.bf16.mxu1 %v13505_v49 }
 0x1df   : > { %11355 = vmatmul.mubr.msk.f32.vlgmr.msra.gmra.mrb[10].mxu0 %vm226_vm1, %v13824_v47 }
 0x1e0   : > { %11454 = vmatmul.mubr.msk.f32.vlgmr.msra.gmra.mrb[10].mxu1 %vm226_vm1, %v13881_v52  ;;  %12260 = vmatpush3.bf16.msra.mxu0 %v13505_v49 }
 0x1e1   : > { %12332 = vmatpush3.bf16.msra.mxu1 %v13505_v49  ;;  %12262 = vmatprep.subr.bf16.mxu0 %v13515_v10  ;;  %v9125_v49 = vsel %vm222_vm0, %v9123_v36, %v9124_v55 }
 0x1e2   : > { %12334 = vmatprep.subr.bf16.mxu1 %v13515_v10  ;;  %11365 = vmatprep.mubr.msk.f32.mxu0 %vm226_vm1, %v9611_v37 }
 0x1e3   : > { %11464 = vmatprep.mubr.msk.f32.mxu1 %vm226_vm1, %v9613_v4 }
 0x1e4   : > { %12264 = vmatpush3.bf16.msra.mxu0 %v13515_v10 }
 0x1e5   : > { %12336 = vmatpush3.bf16.msra.mxu1 %v13515_v10  ;;  %12266 = vmatprep.subr.bf16.mxu0 %v13528_v6  ;;  %v9207_v10 = vrot.slane %v9613_v4, 2 }
 0x1e6   : > { %12338 = vmatprep.subr.bf16.mxu1 %v13528_v6 }
 0x1e7   : > { %11366 = vmatmul.mubr.msk.f32.vlgmr.msra.gmra.mrb[10].mxu0 %vm226_vm1, %v9612_v44 }
 0x1e8   : > { %11465 = vmatmul.mubr.msk.f32.vlgmr.msra.gmra.mrb[10].mxu1 %vm226_vm1, %v9614_v5  ;;  %12268 = vmatpush3.bf16.msra.mxu0 %v13528_v6 }
 0x1e9   : > { %12340 = vmatpush3.bf16.msra.mxu1 %v13528_v6  ;;  %12270 = vmatprep.subr.bf16.mxu0 %v13540_v20  ;;  %v9209_v6 = vsel %vm390_vm2, %v9207_v10, %v9208_v56 }
 0x1ea   : > { %12342 = vmatprep.subr.bf16.mxu1 %v13540_v20  ;;  %11376 = vmatprep.mubr.msk.f32.mxu0 %vm226_vm1, %v8412_v50 }
 0x1eb   : > { %11475 = vmatprep.mubr.msk.f32.mxu1 %vm226_vm1, %v9125_v49 }
 0x1ec   : > { %12272 = vmatpush3.bf16.msra.mxu0 %v13540_v20 }
 0x1ed   : > { %12344 = vmatpush3.bf16.msra.mxu1 %v13540_v20  ;;  %12274 = vmatprep.subr.bf16.mxu0 %v13550_v27 }
 0x1ee   : > { %12346 = vmatprep.subr.bf16.mxu1 %v13550_v27 }
 0x1ef   : > { %11377 = vmatmul.mubr.msk.f32.vlgmr.msra.gmra.mrb[10].mxu0 %vm226_vm1, %v13863_v51 }
 0x1f0   : > { %11476 = vmatmul.mubr.msk.f32.vlgmr.msra.gmra.mrb[10].mxu1 %vm226_vm1, %v9124_v55  ;;  %12276 = vmatpush3.bf16.msra.mxu0 %v13550_v27 }
 0x1f1   : > { %12348 = vmatpush3.bf16.msra.mxu1 %v13550_v27  ;;  %12278 = vmatprep.subr.bf16.mxu0 %v13560_v34 }
 0x1f2   : > { %12350 = vmatprep.subr.bf16.mxu1 %v13560_v34  ;;  %v10795_v20 = vpop.f32.mrb[4].mxu0  ;;  %11387 = vmatprep.mubr.msk.f32.mxu0 %vm226_vm1, %v8500_v59 }
 0x1f3   : > { %v10894_v61 = vpop.f32.mrb[4].mxu1  ;;  %11486 = vmatprep.mubr.msk.f32.mxu1 %vm226_vm1, %v9209_v6  ;;  %v4032_v0 = vpop.f32.mrb[5].mxu0 }
 0x1f4   : > { %v4753_v63 = vmax.f32 %v10795_v20, %v10894_v61  ;;  %v4741_v2 = vpop.f32.mrb[5].mxu1  ;;  %12280 = vmatpush3.bf16.msra.mxu0 %v13560_v34 }
 0x1f5   : > { %v4752_v3 = vmax.f32 %v4032_v0, %v4741_v2  ;;  %12352 = vmatpush3.bf16.msra.mxu1 %v13560_v34 }
 0x1f6   : > { %4755 = vst.msk [vmem:[#allocation2 + $0x8] sm:$0xf] %vm1720_vm3, %v4753_v63 }
 0x1f7   : > { %4754 = vst.msk [vmem:[#allocation2] sm:$0xff] %vm1718_vm4, %v4752_v3  ;;  %11388 = vmatmul.mubr.msk.f32.vlgmr.msra.gmra.mrb[10].mxu0 %vm226_vm1, %v13881_v52 }
 0x1f8   : > { %11487 = vmatmul.mubr.msk.f32.vlgmr.msra.gmra.mrb[10].mxu1 %vm226_vm1, %v9208_v56 }
 0x1fe   : > { %v4756_v27 = vld [vmem:[#allocation2] ss:$2 sm:$0x3f]  ;;  %v4757_v7 = vld [vmem:[#allocation2 + $0x1] ss:$2 sm:$0x3f] }
 0x1ff   : > { %v4758_v18 = vmax.f32 %v4756_v27, %v4757_v7 }
 0x201   : > { %v4759_v21 = vadd.f32 %v13609_v60, %v4758_v18 }
 0x203   : > { %4760 = vst.msk [vmem:[%s13618_s25 + $0xc] sm:$0x3f] %vm1733_vm5, %v4759_v21 }
 0x23a   : > { %v10993_v57 = vpop.f32.mrb[6].mxu0 }
 0x23b   : > { %v11092_v24 = vpop.f32.mrb[6].mxu1  ;;  %v5545_v31 = vpop.f32.mrb[7].mxu0 }
 0x23c   : > { %v6266_v34 = vmax.f32 %v10993_v57, %v11092_v24  ;;  %v6254_v8 = vpop.f32.mrb[7].mxu1 }
 0x23d   : > { %v6265_v39 = vmax.f32 %v5545_v31, %v6254_v8 }
 0x23e   : > { %6268 = vst.msk [vmem:[#allocation2 + $0x8] sm:$0xf] %vm1720_vm3, %v6266_v34 }
 0x23f   : > { %6267 = vst.msk [vmem:[#allocation2] sm:$0xff] %vm1718_vm4, %v6265_v39 }
 0x246   : > { %v6269_v9 = vld [vmem:[#allocation2] ss:$2 sm:$0x3f]  ;;  %v6270_v43 = vld [vmem:[#allocation2 + $0x1] ss:$2 sm:$0x3f] }
 0x247   : > { %v6271_v53 = vmax.f32 %v6269_v9, %v6270_v43 }
 0x249   : > { %v6272_v58 = vadd.f32 %v13609_v60, %v6271_v53 }
 0x24b   : > { %6273 = vst.msk [vmem:[%s13618_s25 + $0x12] sm:$0x3f] %vm1733_vm5, %v6272_v58 }
 0x282   : > { %v11191_v62 = vpop.f32.mrb[8].mxu0 }
 0x283   : > { %v11290_v1 = vpop.f32.mrb[8].mxu1  ;;  %v7058_v12 = vpop.f32.mrb[9].mxu0 }
 0x284   : > { %v7779_v11 = vmax.f32 %v11191_v62, %v11290_v1  ;;  %v7767_v14 = vpop.f32.mrb[9].mxu1 }
 0x285   : > { %v7778_v13 = vmax.f32 %v7058_v12, %v7767_v14 }
 0x286   : > { %7781 = vst.msk [vmem:[#allocation2 + $0x8] sm:$0xf] %vm1720_vm3, %v7779_v11 }
 0x287   : > { %7780 = vst.msk [vmem:[#allocation2] sm:$0xff] %vm1718_vm4, %v7778_v13 }
 0x28e   : > { %v7782_v15 = vld [vmem:[#allocation2] ss:$2 sm:$0x3f]  ;;  %v7783_v19 = vld [vmem:[#allocation2 + $0x1] ss:$2 sm:$0x3f] }
 0x28f   : > { %v7784_v22 = vmax.f32 %v7782_v15, %v7783_v19 }
 0x291   : > { %v7785_v17 = vadd.f32 %v13609_v60, %v7784_v22 }
 0x293   : > { %7786 = vst.msk [vmem:[%s13618_s25 + $0x18] sm:$0x3f] %vm1733_vm5, %v7785_v17 }
 0x2ca   : > { %v11389_v26 = vpop.f32.mrb[10].mxu0 }
 0x2cb   : > { %v11488_v28 = vpop.f32.mrb[10].mxu1  ;;  %v8571_v30 = vpop.f32.mrb[11].mxu0 }
 0x2cc   : > { %v9292_v25 = vmax.f32 %v11389_v26, %v11488_v28  ;;  %v9280_v32 = vpop.f32.mrb[11].mxu1 }
 0x2cd   : > { %v9291_v35 = vmax.f32 %v8571_v30, %v9280_v32 }
 0x2ce   : > { %9294 = vst.msk [vmem:[#allocation2 + $0x8] sm:$0xf] %vm1720_vm3, %v9292_v25 }
 0x2cf   : > { %9293 = vst.msk [vmem:[#allocation2] sm:$0xff] %vm1718_vm4, %v9291_v35 }
 0x2d6   : > { %v9295_v38 = vld [vmem:[#allocation2] ss:$2 sm:$0x3f]  ;;  %v9296_v40 = vld [vmem:[#allocation2 + $0x1] ss:$2 sm:$0x3f] }
 0x2d7   : > { %v9297_v41 = vmax.f32 %v9295_v38, %v9296_v40 }
 0x2d9   : > { %v9298_v42 = vadd.f32 %v13609_v60, %v9297_v41 }
 0x2db   : > { %9299 = vst.msk [vmem:[%s13618_s25 + $0x1e] sm:$0x3f] %vm1733_vm5, %v9298_v42 }
 0x2dc PF: > { %s15_s12 = sadd.s32 1, %s12648_s12  }
 0x2dd   : > { %p12_p5 = scmp.ge.s32.totalorder %s15_s12, 4  }
 0x2df   :  { %14 = sbr.rel (!%p12_p5) target bundleno = 2 (0x2), region = 93 }
 0x2e6   :  { %9321 = vsyncpa [#allocation4], 1 }
 0x2e7   :  { %9323 = vsyncpa [#allocation4 + $0x1], 1 }
 0x2e8   :  { %9324 = vsyncpa [#allocation6], 1 }

</bundles_post_ra>
